<compile_context>
chip_gen: v6e
topology: v6e:2x2x1
jax: 0.10.0
libtpu: 0.0.40
codegen_flags: <defaults>
</compile_context>

<pallas_src>
import functools

import jax
import jax.numpy as jnp
from jax.experimental import pallas as pl
from jax.experimental.pallas import tpu as pltpu


def _sigmoid(x):
    return 1.0 / (1.0 + jnp.exp(-x))


def _cbam_kernel(x_ref, w1_ref, b1_ref, w2_ref, b2_ref, wsa_ref, bsa_ref,
                 o_ref, *, ksize):
    """One batch element per grid step.

    x_ref   : (1, H, W, C)  input block (NHWC; channels on lanes)
    w1_ref  : (C, Cr)       SE fc1 weight (input-major)
    b1_ref  : (1, Cr)       SE fc1 bias
    w2_ref  : (Cr, C)       SE fc2 weight
    b2_ref  : (1, C)        SE fc2 bias
    wsa_ref : (2*K*K,)      spatial-attention conv weight, flat, SMEM scalars
    bsa_ref : (1,)          spatial-attention conv bias, SMEM scalar
    o_ref   : (1, H, W, C)  output block
    """
    f32 = jnp.float32
    x = x_ref[0].astype(f32)                                    # (H, W, C)
    H, W, C = x.shape
    p = ksize // 2
    inv_hw = 1.0 / float(H * W)
    inv_c = 1.0 / float(C)

    # ---------------- channel attention ----------------
    # Per-channel spatial statistics.  Reductions run over the leading
    # (untiled) H axis on the VPU, then over the sublane W axis on the XLU;
    # channels stay on lanes throughout.
    sum_w = jnp.sum(x, axis=0)                                  # (W, C)
    mean_c = jnp.sum(sum_w, axis=0, keepdims=True) * inv_hw     # (1, C)
    max_w = jnp.max(x, axis=0)                                  # (W, C)
    max_c = jnp.max(max_w, axis=0, keepdims=True)               # (1, C)
    diff = x - mean_c[None]                                     # (H, W, C)
    sq_w = jnp.sum(diff * diff, axis=0)                         # (W, C)
    var_c = jnp.sum(sq_w, axis=0, keepdims=True) * inv_hw       # (1, C)
    std_c = jnp.sqrt(var_c)                                     # (1, C)

    w1 = w1_ref[...].astype(f32)                                # (C, Cr)
    b1 = b1_ref[...].astype(f32)                                # (1, Cr)
    w2 = w2_ref[...].astype(f32)                                # (Cr, C)
    b2 = b2_ref[...].astype(f32)                                # (1, C)

    # Both SE branches in one matmul pair: rows = [maxpool, avgpool+contrast].
    pooled = jnp.concatenate([max_c, mean_c + std_c], axis=0)   # (2, C)
    h = jnp.dot(pooled, w1, preferred_element_type=f32) + b1    # (2, Cr)
    h = jnp.maximum(h, 0.0)
    se_out = jnp.dot(h, w2, preferred_element_type=f32) + b2    # (2, C)

    ca = _sigmoid(se_out[0:1] + se_out[1:2])                    # (1, C)
    out1 = x * ca[None]                                         # (H, W, C)

    # ---------------- spatial attention ----------------
    max_sp = jnp.max(out1, axis=2)                              # (H, W)
    mean_sp = jnp.sum(out1, axis=2) * inv_c                     # (H, W)

    # Zero-padded [max | mean] maps as register values (no scratch stores).
    zrow = jnp.zeros((p, W), f32)
    zcol = jnp.zeros((H + 2 * p, p), f32)

    def _pad(m):
        m = jnp.concatenate([zrow, m, zrow], axis=0)            # (H+2p, W)
        return jnp.concatenate([zcol, m, zcol], axis=1)         # (H+2p, W+2p)

    pmax = _pad(max_sp)
    pmean = _pad(mean_sp)

    # KxK conv, 2 in-channels -> 1 out-channel: unrolled shifted MAC.
    acc = jnp.zeros((H, W), f32) + bsa_ref[0]
    for kh in range(ksize):
        for kw in range(ksize):
            w_max = wsa_ref[(0 * ksize + kh) * ksize + kw]      # SMEM scalar
            w_mean = wsa_ref[(1 * ksize + kh) * ksize + kw]     # SMEM scalar
            acc = acc + w_max * pmax[kh:kh + H, kw:kw + W]
            acc = acc + w_mean * pmean[kh:kh + H, kw:kw + W]

    sa = _sigmoid(acc)                                          # (H, W)
    o_ref[0] = (out1 * sa[:, :, None]).astype(o_ref.dtype)


def cbam_pallas(x, w1, b1, w2, b2, w_sa, b_sa, *, kernel_size=7):
    """CBAM forward.  x: (B, C, H, W) NCHW (PyTorch layout), returns NCHW.

    Weight layouts (relative to the PyTorch module):
      w1  : (C, C//r)  == se[0].weight.reshape(Cr, C).T
      b1  : (C//r,)    == se[0].bias
      w2  : (C//r, C)  == se[2].weight.reshape(C, Cr).T
      b2  : (C,)       == se[2].bias
      w_sa: (2, K, K)  == sa.conv.weight.reshape(2, K, K)
      b_sa: (1,)       == sa.conv.bias
    """
    B, C, H, W = x.shape
    Cr = w1.shape[1]
    assert w1.shape == (C, Cr)
    assert b1.shape == (Cr,)
    assert w2.shape == (Cr, C)
    assert b2.shape == (C,)
    assert w_sa.shape == (2, kernel_size, kernel_size)
    assert b_sa.shape == (1,)

    # NHWC so channels land on the lane dimension inside the kernel.
    x_nhwc = jnp.transpose(x, (0, 2, 3, 1))
    b1_row = b1.reshape(1, Cr)
    b2_row = b2.reshape(1, C)
    wsa_flat = w_sa.reshape(-1).astype(jnp.float32)
    bsa_flat = b_sa.reshape(1).astype(jnp.float32)

    kernel = functools.partial(_cbam_kernel, ksize=kernel_size)

    flops = B * (9 * C * H * W                               # stats + gatings
                 + 8 * C * Cr                                # SE on (2, C)
                 + 4 * kernel_size * kernel_size * H * W)    # KxK conv, 2 in-ch
    transcendentals = B * (2 * C + H * W)                    # sigmoids + sqrt
    bytes_accessed = (2 * x.size * x.dtype.itemsize
                      + 4 * (w1.size + b1.size + w2.size + b2.size
                             + w_sa.size + b_sa.size))

    out_nhwc = pl.pallas_call(
        kernel,
        out_shape=jax.ShapeDtypeStruct((B, H, W, C), x.dtype),
        grid_spec=pltpu.PrefetchScalarGridSpec(
            num_scalar_prefetch=0,
            grid=(B,),
            in_specs=[
                pl.BlockSpec((1, H, W, C), lambda b: (b, 0, 0, 0)),   # x
                pl.BlockSpec((C, Cr), lambda b: (0, 0)),              # w1 (resident)
                pl.BlockSpec((1, Cr), lambda b: (0, 0)),              # b1
                pl.BlockSpec((Cr, C), lambda b: (0, 0)),              # w2 (resident)
                pl.BlockSpec((1, C), lambda b: (0, 0)),               # b2
                pl.BlockSpec(memory_space=pltpu.MemorySpace.SMEM),    # conv w (scalars)
                pl.BlockSpec(memory_space=pltpu.MemorySpace.SMEM),    # conv b (scalar)
            ],
            out_specs=pl.BlockSpec((1, H, W, C), lambda b: (b, 0, 0, 0)),
        ),
        compiler_params=pltpu.CompilerParams(
            dimension_semantics=("parallel",)),
        cost_estimate=pl.CostEstimate(
            flops=flops,
            transcendentals=transcendentals,
            bytes_accessed=bytes_accessed),
    )(x_nhwc, w1, b1_row, w2, b2_row, wsa_flat, bsa_flat)

    return jnp.transpose(out_nhwc, (0, 3, 1, 2))


def cbam_reference(x, w1, b1, w2, b2, w_sa, b_sa):
    """Pure-JAX reference matching the PyTorch CBAMBlock forward."""
    hi = jax.lax.Precision.HIGHEST
    xf = x.astype(jnp.float32)
    mean = jnp.mean(xf, axis=(2, 3), keepdims=True)
    var = jnp.mean((xf - mean) ** 2, axis=(2, 3), keepdims=True)
    std = jnp.sqrt(var)                                         # contrast
    maxp = jnp.max(xf, axis=(2, 3), keepdims=True)
    avgp = mean + std

    def se(v):                                                  # v: (B, C, 1, 1)
        vv = v[:, :, 0, 0]                                      # (B, C)
        h = jnp.maximum(jnp.dot(vv, w1, precision=hi) + b1, 0.0)
        return jnp.dot(h, w2, precision=hi) + b2                # (B, C)

    ca = jax.nn.sigmoid(se(maxp) + se(avgp))[:, :, None, None]
    out1 = xf * ca

    max_sp = jnp.max(out1, axis=1, keepdims=True)
    mean_sp = jnp.mean(out1, axis=1, keepdims=True)
    sa_in = jnp.concatenate([max_sp, mean_sp], axis=1)          # (B, 2, H, W)
    conv = jax.lax.conv_general_dilated(
        sa_in, w_sa[None].astype(jnp.float32),
        window_strides=(1, 1), padding="SAME",
        dimension_numbers=("NCHW", "OIHW", "NCHW"), precision=hi)
    sa = jax.nn.sigmoid(conv + b_sa.reshape(1, 1, 1, 1))
    return (out1 * sa).astype(x.dtype)


if __name__ == "__main__":
    # Small but representative CBAM config: channel=64, reduction=16, k=7.
    batch, channel, height, width = 2, 64, 16, 16
    reduction, kernel_size = 16, 7
    cr = channel // reduction

    key = jax.random.PRNGKey(0)
    kx, k1, k2, k3, k4, k5, k6 = jax.random.split(key, 7)

    x = jax.random.normal(kx, (batch, channel, height, width), dtype=jnp.float32)

    # Deterministic init mimicking nn.Conv2d's uniform(-1/sqrt(fan_in), +).
    bnd1 = 1.0 / (channel ** 0.5)
    bnd2 = 1.0 / (cr ** 0.5)
    bnd3 = 1.0 / ((2 * kernel_size * kernel_size) ** 0.5)
    w1 = jax.random.uniform(k1, (channel, cr), jnp.float32, -bnd1, bnd1)
    b1 = jax.random.uniform(k2, (cr,), jnp.float32, -bnd1, bnd1)
    w2 = jax.random.uniform(k3, (cr, channel), jnp.float32, -bnd2, bnd2)
    b2 = jax.random.uniform(k4, (channel,), jnp.float32, -bnd2, bnd2)
    w_sa = jax.random.uniform(k5, (2, kernel_size, kernel_size),
                              jnp.float32, -bnd3, bnd3)
    b_sa = jax.random.uniform(k6, (1,), jnp.float32, -bnd3, bnd3)

    out = cbam_pallas(x, w1, b1, w2, b2, w_sa, b_sa, kernel_size=kernel_size)
    out = jax.block_until_ready(out)

    ref = cbam_reference(x, w1, b1, w2, b2, w_sa, b_sa)
    max_err = float(jnp.max(jnp.abs(out - ref)))
    assert out.shape == x.shape
    assert jnp.allclose(out, ref, atol=2e-3, rtol=2e-3), (
        "mismatch vs reference, max abs err = %e" % max_err)

    print("KERNEL_OK")
</pallas_src>

<mosaic_0001>
module attributes {stable_mosaic.version = 11 : i64} {
  func.func @_cbam_kernel(%arg0: i32, %arg1: memref<1x16x16x64xf32, #tpu.memory_space<vmem>>, %arg2: memref<64x4xf32, #tpu.memory_space<vmem>>, %arg3: memref<1x4xf32, #tpu.memory_space<vmem>>, %arg4: memref<4x64xf32, #tpu.memory_space<vmem>>, %arg5: memref<1x64xf32, #tpu.memory_space<vmem>>, %arg6: memref<98xf32, #tpu.memory_space<smem>>, %arg7: memref<1xf32, #tpu.memory_space<smem>>, %arg8: memref<1x16x16x64xf32, #tpu.memory_space<vmem>>) attributes {dimension_semantics = [#tpu.dimension_semantics<parallel>], iteration_bounds = array<i64: 2>, scalar_prefetch = 0 : i64, scratch_operands = 0 : i64, tpu.core_type = #tpu.core_type<tc>, window_params = [{transform_indices = @transform_0, window_bounds = array<i64: 1, 16, 16, 64>}, {pipeline_mode = #tpu.pipeline_mode<synchronous>, transform_indices = @transform_1, window_bounds = array<i64: 64, 4>}, {pipeline_mode = #tpu.pipeline_mode<synchronous>, transform_indices = @transform_2, window_bounds = array<i64: 1, 4>}, {pipeline_mode = #tpu.pipeline_mode<synchronous>, transform_indices = @transform_3, window_bounds = array<i64: 4, 64>}, {pipeline_mode = #tpu.pipeline_mode<synchronous>, transform_indices = @transform_4, window_bounds = array<i64: 1, 64>}, {transform_indices = @transform_5, window_bounds = array<i64: 98>}, {transform_indices = @transform_6, window_bounds = array<i64: 1>}, {transform_indices = @transform_7, window_bounds = array<i64: 1, 16, 16, 64>}]} {
    %c0 = arith.constant 0 : index
    %c0_0 = arith.constant 0 : index
    %c0_1 = arith.constant 0 : index
    %c0_2 = arith.constant 0 : index
    %0 = vector.load %arg1[%c0, %c0_0, %c0_1, %c0_2] : memref<1x16x16x64xf32, #tpu.memory_space<vmem>>, vector<1x16x16x64xf32>
    %1 = vector.shape_cast %0 : vector<1x16x16x64xf32> to vector<16x16x64xf32>
    %cst = arith.constant dense<0.000000e+00> : vector<16x64xf32>
    %2 = vector.multi_reduction <add>, %1, %cst [0] : vector<16x16x64xf32> to vector<16x64xf32>
    %cst_3 = arith.constant dense<0.000000e+00> : vector<64xf32>
    %3 = vector.multi_reduction <add>, %2, %cst_3 [0] : vector<16x64xf32> to vector<64xf32>
    %4 = vector.shape_cast %3 : vector<64xf32> to vector<1x64xf32>
    %cst_4 = arith.constant 3.906250e-03 : f32
    %5 = vector.broadcast %cst_4 : f32 to vector<1x64xf32>
    %6 = arith.mulf %4, %5 : vector<1x64xf32>
    %cst_5 = arith.constant dense<0xFF800000> : vector<16x64xf32>
    %7 = vector.multi_reduction <maximumf>, %1, %cst_5 [0] : vector<16x16x64xf32> to vector<16x64xf32>
    %cst_6 = arith.constant dense<0xFF800000> : vector<64xf32>
    %8 = vector.multi_reduction <maximumf>, %7, %cst_6 [0] : vector<16x64xf32> to vector<64xf32>
    %9 = vector.shape_cast %8 : vector<64xf32> to vector<1x64xf32>
    %10 = vector.shape_cast %6 : vector<1x64xf32> to vector<1x1x64xf32>
    %11 = vector.broadcast %10 : vector<1x1x64xf32> to vector<16x16x64xf32>
    %12 = arith.subf %1, %11 : vector<16x16x64xf32>
    %13 = arith.mulf %12, %12 : vector<16x16x64xf32>
    %cst_7 = arith.constant dense<0.000000e+00> : vector<16x64xf32>
    %14 = vector.multi_reduction <add>, %13, %cst_7 [0] : vector<16x16x64xf32> to vector<16x64xf32>
    %cst_8 = arith.constant dense<0.000000e+00> : vector<64xf32>
    %15 = vector.multi_reduction <add>, %14, %cst_8 [0] : vector<16x64xf32> to vector<64xf32>
    %16 = vector.shape_cast %15 : vector<64xf32> to vector<1x64xf32>
    %cst_9 = arith.constant 3.906250e-03 : f32
    %17 = vector.broadcast %cst_9 : f32 to vector<1x64xf32>
    %18 = arith.mulf %16, %17 : vector<1x64xf32>
    %19 = math.sqrt %18 : vector<1x64xf32>
    %c0_10 = arith.constant 0 : index
    %c0_11 = arith.constant 0 : index
    %20 = vector.load %arg2[%c0_10, %c0_11] : memref<64x4xf32, #tpu.memory_space<vmem>>, vector<64x4xf32>
    %c0_12 = arith.constant 0 : index
    %c0_13 = arith.constant 0 : index
    %21 = vector.load %arg3[%c0_12, %c0_13] : memref<1x4xf32, #tpu.memory_space<vmem>>, vector<1x4xf32>
    %c0_14 = arith.constant 0 : index
    %c0_15 = arith.constant 0 : index
    %22 = vector.load %arg4[%c0_14, %c0_15] : memref<4x64xf32, #tpu.memory_space<vmem>>, vector<4x64xf32>
    %c0_16 = arith.constant 0 : index
    %c0_17 = arith.constant 0 : index
    %23 = vector.load %arg5[%c0_16, %c0_17] : memref<1x64xf32, #tpu.memory_space<vmem>>, vector<1x64xf32>
    %24 = arith.addf %6, %19 : vector<1x64xf32>
    %25 = tpu.concatenate %9, %24 in 0 : vector<1x64xf32>, vector<1x64xf32> -> vector<2x64xf32>
    %cst_18 = arith.constant dense<0.000000e+00> : vector<2x4xf32>
    %26 = tpu.matmul %25, %20, %cst_18 {dimension_numbers = #tpu.dot_dimension_numbers<[1], [0], [0], [1], [0, 0, 1, 1], [], []>} : vector<2x64xf32>, vector<64x4xf32>, vector<2x4xf32> -> vector<2x4xf32>
    %27 = vector.broadcast %21 : vector<1x4xf32> to vector<2x4xf32>
    %28 = arith.addf %26, %27 : vector<2x4xf32>
    %cst_19 = arith.constant 0.000000e+00 : f32
    %29 = vector.broadcast %cst_19 : f32 to vector<2x4xf32>
    %30 = arith.maximumf %28, %29 : vector<2x4xf32>
    %cst_20 = arith.constant dense<0.000000e+00> : vector<2x64xf32>
    %31 = tpu.matmul %30, %22, %cst_20 {dimension_numbers = #tpu.dot_dimension_numbers<[1], [0], [0], [1], [0, 0, 1, 1], [], []>} : vector<2x4xf32>, vector<4x64xf32>, vector<2x64xf32> -> vector<2x64xf32>
    %32 = vector.broadcast %23 : vector<1x64xf32> to vector<2x64xf32>
    %33 = arith.addf %31, %32 : vector<2x64xf32>
    %34 = vector.extract_strided_slice %33 {offsets = [0, 0], sizes = [1, 64], strides = [1, 1]} : vector<2x64xf32> to vector<1x64xf32>
    %35 = vector.extract_strided_slice %33 {offsets = [1, 0], sizes = [1, 64], strides = [1, 1]} : vector<2x64xf32> to vector<1x64xf32>
    %36 = arith.addf %34, %35 : vector<1x64xf32>
    %cst_21 = arith.constant 0.000000e+00 : f32
    %37 = vector.broadcast %cst_21 : f32 to vector<1x64xf32>
    %38 = arith.subf %37, %36 : vector<1x64xf32>
    %39 = math.exp %38 : vector<1x64xf32>
    %cst_22 = arith.constant 1.000000e+00 : f32
    %40 = vector.broadcast %cst_22 : f32 to vector<1x64xf32>
    %41 = arith.addf %40, %39 : vector<1x64xf32>
    %cst_23 = arith.constant 1.000000e+00 : f32
    %42 = vector.broadcast %cst_23 : f32 to vector<1x64xf32>
    %43 = arith.divf %42, %41 : vector<1x64xf32>
    %44 = vector.shape_cast %43 : vector<1x64xf32> to vector<1x1x64xf32>
    %45 = vector.broadcast %44 : vector<1x1x64xf32> to vector<16x16x64xf32>
    %46 = arith.mulf %1, %45 : vector<16x16x64xf32>
    %cst_24 = arith.constant dense<0xFF800000> : vector<16x16xf32>
    %47 = vector.multi_reduction <maximumf>, %46, %cst_24 [2] : vector<16x16x64xf32> to vector<16x16xf32>
    %cst_25 = arith.constant dense<0.000000e+00> : vector<16x16xf32>
    %48 = vector.multi_reduction <add>, %46, %cst_25 [2] : vector<16x16x64xf32> to vector<16x16xf32>
    %cst_26 = arith.constant 1.562500e-02 : f32
    %49 = vector.broadcast %cst_26 : f32 to vector<16x16xf32>
    %50 = arith.mulf %48, %49 : vector<16x16xf32>
    %cst_27 = arith.constant 0.000000e+00 : f32
    %51 = vector.broadcast %cst_27 : f32 to vector<3x16xf32>
    %cst_28 = arith.constant 0.000000e+00 : f32
    %52 = vector.broadcast %cst_28 : f32 to vector<22x3xf32>
    %53 = tpu.concatenate %51, %47, %51 in 0 : vector<3x16xf32>, vector<16x16xf32>, vector<3x16xf32> -> vector<22x16xf32>
    %54 = tpu.concatenate %52, %53, %52 in 1 : vector<22x3xf32>, vector<22x16xf32>, vector<22x3xf32> -> vector<22x22xf32>
    %55 = tpu.concatenate %51, %50, %51 in 0 : vector<3x16xf32>, vector<16x16xf32>, vector<3x16xf32> -> vector<22x16xf32>
    %56 = tpu.concatenate %52, %55, %52 in 1 : vector<22x3xf32>, vector<22x16xf32>, vector<22x3xf32> -> vector<22x22xf32>
    %cst_29 = arith.constant 0.000000e+00 : f32
    %57 = vector.broadcast %cst_29 : f32 to vector<16x16xf32>
    %c0_30 = arith.constant 0 : index
    %58 = memref.load %arg7[%c0_30] : memref<1xf32, #tpu.memory_space<smem>>
    %59 = vector.broadcast %58 : f32 to vector<16x16xf32>
    %60 = arith.addf %57, %59 : vector<16x16xf32>
    %c0_31 = arith.constant 0 : index
    %61 = memref.load %arg6[%c0_31] : memref<98xf32, #tpu.memory_space<smem>>
    %c49 = arith.constant 49 : index
    %62 = memref.load %arg6[%c49] : memref<98xf32, #tpu.memory_space<smem>>
    %63 = vector.extract_strided_slice %54 {offsets = [0, 0], sizes = [16, 16], strides = [1, 1]} : vector<22x22xf32> to vector<16x16xf32>
    %64 = vector.broadcast %61 : f32 to vector<16x16xf32>
    %65 = arith.mulf %64, %63 : vector<16x16xf32>
    %66 = arith.addf %60, %65 : vector<16x16xf32>
    %67 = vector.extract_strided_slice %56 {offsets = [0, 0], sizes = [16, 16], strides = [1, 1]} : vector<22x22xf32> to vector<16x16xf32>
    %68 = vector.broadcast %62 : f32 to vector<16x16xf32>
    %69 = arith.mulf %68, %67 : vector<16x16xf32>
    %70 = arith.addf %66, %69 : vector<16x16xf32>
    %c1 = arith.constant 1 : index
    %71 = memref.load %arg6[%c1] : memref<98xf32, #tpu.memory_space<smem>>
    %c50 = arith.constant 50 : index
    %72 = memref.load %arg6[%c50] : memref<98xf32, #tpu.memory_space<smem>>
    %73 = vector.extract_strided_slice %54 {offsets = [0, 1], sizes = [16, 16], strides = [1, 1]} : vector<22x22xf32> to vector<16x16xf32>
    %74 = vector.broadcast %71 : f32 to vector<16x16xf32>
    %75 = arith.mulf %74, %73 : vector<16x16xf32>
    %76 = arith.addf %70, %75 : vector<16x16xf32>
    %77 = vector.extract_strided_slice %56 {offsets = [0, 1], sizes = [16, 16], strides = [1, 1]} : vector<22x22xf32> to vector<16x16xf32>
    %78 = vector.broadcast %72 : f32 to vector<16x16xf32>
    %79 = arith.mulf %78, %77 : vector<16x16xf32>
    %80 = arith.addf %76, %79 : vector<16x16xf32>
    %c2 = arith.constant 2 : index
    %81 = memref.load %arg6[%c2] : memref<98xf32, #tpu.memory_space<smem>>
    %c51 = arith.constant 51 : index
    %82 = memref.load %arg6[%c51] : memref<98xf32, #tpu.memory_space<smem>>
    %83 = vector.extract_strided_slice %54 {offsets = [0, 2], sizes = [16, 16], strides = [1, 1]} : vector<22x22xf32> to vector<16x16xf32>
    %84 = vector.broadcast %81 : f32 to vector<16x16xf32>
    %85 = arith.mulf %84, %83 : vector<16x16xf32>
    %86 = arith.addf %80, %85 : vector<16x16xf32>
    %87 = vector.extract_strided_slice %56 {offsets = [0, 2], sizes = [16, 16], strides = [1, 1]} : vector<22x22xf32> to vector<16x16xf32>
    %88 = vector.broadcast %82 : f32 to vector<16x16xf32>
    %89 = arith.mulf %88, %87 : vector<16x16xf32>
    %90 = arith.addf %86, %89 : vector<16x16xf32>
    %c3 = arith.constant 3 : index
    %91 = memref.load %arg6[%c3] : memref<98xf32, #tpu.memory_space<smem>>
    %c52 = arith.constant 52 : index
    %92 = memref.load %arg6[%c52] : memref<98xf32, #tpu.memory_space<smem>>
    %93 = vector.extract_strided_slice %54 {offsets = [0, 3], sizes = [16, 16], strides = [1, 1]} : vector<22x22xf32> to vector<16x16xf32>
    %94 = vector.broadcast %91 : f32 to vector<16x16xf32>
    %95 = arith.mulf %94, %93 : vector<16x16xf32>
    %96 = arith.addf %90, %95 : vector<16x16xf32>
    %97 = vector.extract_strided_slice %56 {offsets = [0, 3], sizes = [16, 16], strides = [1, 1]} : vector<22x22xf32> to vector<16x16xf32>
    %98 = vector.broadcast %92 : f32 to vector<16x16xf32>
    %99 = arith.mulf %98, %97 : vector<16x16xf32>
    %100 = arith.addf %96, %99 : vector<16x16xf32>
    %c4 = arith.constant 4 : index
    %101 = memref.load %arg6[%c4] : memref<98xf32, #tpu.memory_space<smem>>
    %c53 = arith.constant 53 : index
    %102 = memref.load %arg6[%c53] : memref<98xf32, #tpu.memory_space<smem>>
    %103 = vector.extract_strided_slice %54 {offsets = [0, 4], sizes = [16, 16], strides = [1, 1]} : vector<22x22xf32> to vector<16x16xf32>
    %104 = vector.broadcast %101 : f32 to vector<16x16xf32>
    %105 = arith.mulf %104, %103 : vector<16x16xf32>
    %106 = arith.addf %100, %105 : vector<16x16xf32>
    %107 = vector.extract_strided_slice %56 {offsets = [0, 4], sizes = [16, 16], strides = [1, 1]} : vector<22x22xf32> to vector<16x16xf32>
    %108 = vector.broadcast %102 : f32 to vector<16x16xf32>
    %109 = arith.mulf %108, %107 : vector<16x16xf32>
    %110 = arith.addf %106, %109 : vector<16x16xf32>
    %c5 = arith.constant 5 : index
    %111 = memref.load %arg6[%c5] : memref<98xf32, #tpu.memory_space<smem>>
    %c54 = arith.constant 54 : index
    %112 = memref.load %arg6[%c54] : memref<98xf32, #tpu.memory_space<smem>>
    %113 = vector.extract_strided_slice %54 {offsets = [0, 5], sizes = [16, 16], strides = [1, 1]} : vector<22x22xf32> to vector<16x16xf32>
    %114 = vector.broadcast %111 : f32 to vector<16x16xf32>
    %115 = arith.mulf %114, %113 : vector<16x16xf32>
    %116 = arith.addf %110, %115 : vector<16x16xf32>
    %117 = vector.extract_strided_slice %56 {offsets = [0, 5], sizes = [16, 16], strides = [1, 1]} : vector<22x22xf32> to vector<16x16xf32>
    %118 = vector.broadcast %112 : f32 to vector<16x16xf32>
    %119 = arith.mulf %118, %117 : vector<16x16xf32>
    %120 = arith.addf %116, %119 : vector<16x16xf32>
    %c6 = arith.constant 6 : index
    %121 = memref.load %arg6[%c6] : memref<98xf32, #tpu.memory_space<smem>>
    %c55 = arith.constant 55 : index
    %122 = memref.load %arg6[%c55] : memref<98xf32, #tpu.memory_space<smem>>
    %123 = vector.extract_strided_slice %54 {offsets = [0, 6], sizes = [16, 16], strides = [1, 1]} : vector<22x22xf32> to vector<16x16xf32>
    %124 = vector.broadcast %121 : f32 to vector<16x16xf32>
    %125 = arith.mulf %124, %123 : vector<16x16xf32>
    %126 = arith.addf %120, %125 : vector<16x16xf32>
    %127 = vector.extract_strided_slice %56 {offsets = [0, 6], sizes = [16, 16], strides = [1, 1]} : vector<22x22xf32> to vector<16x16xf32>
    %128 = vector.broadcast %122 : f32 to vector<16x16xf32>
    %129 = arith.mulf %128, %127 : vector<16x16xf32>
    %130 = arith.addf %126, %129 : vector<16x16xf32>
    %c7 = arith.constant 7 : index
    %131 = memref.load %arg6[%c7] : memref<98xf32, #tpu.memory_space<smem>>
    %c56 = arith.constant 56 : index
    %132 = memref.load %arg6[%c56] : memref<98xf32, #tpu.memory_space<smem>>
    %133 = vector.extract_strided_slice %54 {offsets = [1, 0], sizes = [16, 16], strides = [1, 1]} : vector<22x22xf32> to vector<16x16xf32>
    %134 = vector.broadcast %131 : f32 to vector<16x16xf32>
    %135 = arith.mulf %134, %133 : vector<16x16xf32>
    %136 = arith.addf %130, %135 : vector<16x16xf32>
    %137 = vector.extract_strided_slice %56 {offsets = [1, 0], sizes = [16, 16], strides = [1, 1]} : vector<22x22xf32> to vector<16x16xf32>
    %138 = vector.broadcast %132 : f32 to vector<16x16xf32>
    %139 = arith.mulf %138, %137 : vector<16x16xf32>
    %140 = arith.addf %136, %139 : vector<16x16xf32>
    %c8 = arith.constant 8 : index
    %141 = memref.load %arg6[%c8] : memref<98xf32, #tpu.memory_space<smem>>
    %c57 = arith.constant 57 : index
    %142 = memref.load %arg6[%c57] : memref<98xf32, #tpu.memory_space<smem>>
    %143 = vector.extract_strided_slice %54 {offsets = [1, 1], sizes = [16, 16], strides = [1, 1]} : vector<22x22xf32> to vector<16x16xf32>
    %144 = vector.broadcast %141 : f32 to vector<16x16xf32>
    %145 = arith.mulf %144, %143 : vector<16x16xf32>
    %146 = arith.addf %140, %145 : vector<16x16xf32>
    %147 = vector.extract_strided_slice %56 {offsets = [1, 1], sizes = [16, 16], strides = [1, 1]} : vector<22x22xf32> to vector<16x16xf32>
    %148 = vector.broadcast %142 : f32 to vector<16x16xf32>
    %149 = arith.mulf %148, %147 : vector<16x16xf32>
    %150 = arith.addf %146, %149 : vector<16x16xf32>
    %c9 = arith.constant 9 : index
    %151 = memref.load %arg6[%c9] : memref<98xf32, #tpu.memory_space<smem>>
    %c58 = arith.constant 58 : index
    %152 = memref.load %arg6[%c58] : memref<98xf32, #tpu.memory_space<smem>>
    %153 = vector.extract_strided_slice %54 {offsets = [1, 2], sizes = [16, 16], strides = [1, 1]} : vector<22x22xf32> to vector<16x16xf32>
    %154 = vector.broadcast %151 : f32 to vector<16x16xf32>
    %155 = arith.mulf %154, %153 : vector<16x16xf32>
    %156 = arith.addf %150, %155 : vector<16x16xf32>
    %157 = vector.extract_strided_slice %56 {offsets = [1, 2], sizes = [16, 16], strides = [1, 1]} : vector<22x22xf32> to vector<16x16xf32>
    %158 = vector.broadcast %152 : f32 to vector<16x16xf32>
    %159 = arith.mulf %158, %157 : vector<16x16xf32>
    %160 = arith.addf %156, %159 : vector<16x16xf32>
    %c10 = arith.constant 10 : index
    %161 = memref.load %arg6[%c10] : memref<98xf32, #tpu.memory_space<smem>>
    %c59 = arith.constant 59 : index
    %162 = memref.load %arg6[%c59] : memref<98xf32, #tpu.memory_space<smem>>
    %163 = vector.extract_strided_slice %54 {offsets = [1, 3], sizes = [16, 16], strides = [1, 1]} : vector<22x22xf32> to vector<16x16xf32>
    %164 = vector.broadcast %161 : f32 to vector<16x16xf32>
    %165 = arith.mulf %164, %163 : vector<16x16xf32>
    %166 = arith.addf %160, %165 : vector<16x16xf32>
    %167 = vector.extract_strided_slice %56 {offsets = [1, 3], sizes = [16, 16], strides = [1, 1]} : vector<22x22xf32> to vector<16x16xf32>
    %168 = vector.broadcast %162 : f32 to vector<16x16xf32>
    %169 = arith.mulf %168, %167 : vector<16x16xf32>
    %170 = arith.addf %166, %169 : vector<16x16xf32>
    %c11 = arith.constant 11 : index
    %171 = memref.load %arg6[%c11] : memref<98xf32, #tpu.memory_space<smem>>
    %c60 = arith.constant 60 : index
    %172 = memref.load %arg6[%c60] : memref<98xf32, #tpu.memory_space<smem>>
    %173 = vector.extract_strided_slice %54 {offsets = [1, 4], sizes = [16, 16], strides = [1, 1]} : vector<22x22xf32> to vector<16x16xf32>
    %174 = vector.broadcast %171 : f32 to vector<16x16xf32>
    %175 = arith.mulf %174, %173 : vector<16x16xf32>
    %176 = arith.addf %170, %175 : vector<16x16xf32>
    %177 = vector.extract_strided_slice %56 {offsets = [1, 4], sizes = [16, 16], strides = [1, 1]} : vector<22x22xf32> to vector<16x16xf32>
    %178 = vector.broadcast %172 : f32 to vector<16x16xf32>
    %179 = arith.mulf %178, %177 : vector<16x16xf32>
    %180 = arith.addf %176, %179 : vector<16x16xf32>
    %c12 = arith.constant 12 : index
    %181 = memref.load %arg6[%c12] : memref<98xf32, #tpu.memory_space<smem>>
    %c61 = arith.constant 61 : index
    %182 = memref.load %arg6[%c61] : memref<98xf32, #tpu.memory_space<smem>>
    %183 = vector.extract_strided_slice %54 {offsets = [1, 5], sizes = [16, 16], strides = [1, 1]} : vector<22x22xf32> to vector<16x16xf32>
    %184 = vector.broadcast %181 : f32 to vector<16x16xf32>
    %185 = arith.mulf %184, %183 : vector<16x16xf32>
    %186 = arith.addf %180, %185 : vector<16x16xf32>
    %187 = vector.extract_strided_slice %56 {offsets = [1, 5], sizes = [16, 16], strides = [1, 1]} : vector<22x22xf32> to vector<16x16xf32>
    %188 = vector.broadcast %182 : f32 to vector<16x16xf32>
    %189 = arith.mulf %188, %187 : vector<16x16xf32>
    %190 = arith.addf %186, %189 : vector<16x16xf32>
    %c13 = arith.constant 13 : index
    %191 = memref.load %arg6[%c13] : memref<98xf32, #tpu.memory_space<smem>>
    %c62 = arith.constant 62 : index
    %192 = memref.load %arg6[%c62] : memref<98xf32, #tpu.memory_space<smem>>
    %193 = vector.extract_strided_slice %54 {offsets = [1, 6], sizes = [16, 16], strides = [1, 1]} : vector<22x22xf32> to vector<16x16xf32>
    %194 = vector.broadcast %191 : f32 to vector<16x16xf32>
    %195 = arith.mulf %194, %193 : vector<16x16xf32>
    %196 = arith.addf %190, %195 : vector<16x16xf32>
    %197 = vector.extract_strided_slice %56 {offsets = [1, 6], sizes = [16, 16], strides = [1, 1]} : vector<22x22xf32> to vector<16x16xf32>
    %198 = vector.broadcast %192 : f32 to vector<16x16xf32>
    %199 = arith.mulf %198, %197 : vector<16x16xf32>
    %200 = arith.addf %196, %199 : vector<16x16xf32>
    %c14 = arith.constant 14 : index
    %201 = memref.load %arg6[%c14] : memref<98xf32, #tpu.memory_space<smem>>
    %c63 = arith.constant 63 : index
    %202 = memref.load %arg6[%c63] : memref<98xf32, #tpu.memory_space<smem>>
    %203 = vector.extract_strided_slice %54 {offsets = [2, 0], sizes = [16, 16], strides = [1, 1]} : vector<22x22xf32> to vector<16x16xf32>
    %204 = vector.broadcast %201 : f32 to vector<16x16xf32>
    %205 = arith.mulf %204, %203 : vector<16x16xf32>
    %206 = arith.addf %200, %205 : vector<16x16xf32>
    %207 = vector.extract_strided_slice %56 {offsets = [2, 0], sizes = [16, 16], strides = [1, 1]} : vector<22x22xf32> to vector<16x16xf32>
    %208 = vector.broadcast %202 : f32 to vector<16x16xf32>
    %209 = arith.mulf %208, %207 : vector<16x16xf32>
    %210 = arith.addf %206, %209 : vector<16x16xf32>
    %c15 = arith.constant 15 : index
    %211 = memref.load %arg6[%c15] : memref<98xf32, #tpu.memory_space<smem>>
    %c64 = arith.constant 64 : index
    %212 = memref.load %arg6[%c64] : memref<98xf32, #tpu.memory_space<smem>>
    %213 = vector.extract_strided_slice %54 {offsets = [2, 1], sizes = [16, 16], strides = [1, 1]} : vector<22x22xf32> to vector<16x16xf32>
    %214 = vector.broadcast %211 : f32 to vector<16x16xf32>
    %215 = arith.mulf %214, %213 : vector<16x16xf32>
    %216 = arith.addf %210, %215 : vector<16x16xf32>
    %217 = vector.extract_strided_slice %56 {offsets = [2, 1], sizes = [16, 16], strides = [1, 1]} : vector<22x22xf32> to vector<16x16xf32>
    %218 = vector.broadcast %212 : f32 to vector<16x16xf32>
    %219 = arith.mulf %218, %217 : vector<16x16xf32>
    %220 = arith.addf %216, %219 : vector<16x16xf32>
    %c16 = arith.constant 16 : index
    %221 = memref.load %arg6[%c16] : memref<98xf32, #tpu.memory_space<smem>>
    %c65 = arith.constant 65 : index
    %222 = memref.load %arg6[%c65] : memref<98xf32, #tpu.memory_space<smem>>
    %223 = vector.extract_strided_slice %54 {offsets = [2, 2], sizes = [16, 16], strides = [1, 1]} : vector<22x22xf32> to vector<16x16xf32>
    %224 = vector.broadcast %221 : f32 to vector<16x16xf32>
    %225 = arith.mulf %224, %223 : vector<16x16xf32>
    %226 = arith.addf %220, %225 : vector<16x16xf32>
    %227 = vector.extract_strided_slice %56 {offsets = [2, 2], sizes = [16, 16], strides = [1, 1]} : vector<22x22xf32> to vector<16x16xf32>
    %228 = vector.broadcast %222 : f32 to vector<16x16xf32>
    %229 = arith.mulf %228, %227 : vector<16x16xf32>
    %230 = arith.addf %226, %229 : vector<16x16xf32>
    %c17 = arith.constant 17 : index
    %231 = memref.load %arg6[%c17] : memref<98xf32, #tpu.memory_space<smem>>
    %c66 = arith.constant 66 : index
    %232 = memref.load %arg6[%c66] : memref<98xf32, #tpu.memory_space<smem>>
    %233 = vector.extract_strided_slice %54 {offsets = [2, 3], sizes = [16, 16], strides = [1, 1]} : vector<22x22xf32> to vector<16x16xf32>
    %234 = vector.broadcast %231 : f32 to vector<16x16xf32>
    %235 = arith.mulf %234, %233 : vector<16x16xf32>
    %236 = arith.addf %230, %235 : vector<16x16xf32>
    %237 = vector.extract_strided_slice %56 {offsets = [2, 3], sizes = [16, 16], strides = [1, 1]} : vector<22x22xf32> to vector<16x16xf32>
    %238 = vector.broadcast %232 : f32 to vector<16x16xf32>
    %239 = arith.mulf %238, %237 : vector<16x16xf32>
    %240 = arith.addf %236, %239 : vector<16x16xf32>
    %c18 = arith.constant 18 : index
    %241 = memref.load %arg6[%c18] : memref<98xf32, #tpu.memory_space<smem>>
    %c67 = arith.constant 67 : index
    %242 = memref.load %arg6[%c67] : memref<98xf32, #tpu.memory_space<smem>>
    %243 = vector.extract_strided_slice %54 {offsets = [2, 4], sizes = [16, 16], strides = [1, 1]} : vector<22x22xf32> to vector<16x16xf32>
    %244 = vector.broadcast %241 : f32 to vector<16x16xf32>
    %245 = arith.mulf %244, %243 : vector<16x16xf32>
    %246 = arith.addf %240, %245 : vector<16x16xf32>
    %247 = vector.extract_strided_slice %56 {offsets = [2, 4], sizes = [16, 16], strides = [1, 1]} : vector<22x22xf32> to vector<16x16xf32>
    %248 = vector.broadcast %242 : f32 to vector<16x16xf32>
    %249 = arith.mulf %248, %247 : vector<16x16xf32>
    %250 = arith.addf %246, %249 : vector<16x16xf32>
    %c19 = arith.constant 19 : index
    %251 = memref.load %arg6[%c19] : memref<98xf32, #tpu.memory_space<smem>>
    %c68 = arith.constant 68 : index
    %252 = memref.load %arg6[%c68] : memref<98xf32, #tpu.memory_space<smem>>
    %253 = vector.extract_strided_slice %54 {offsets = [2, 5], sizes = [16, 16], strides = [1, 1]} : vector<22x22xf32> to vector<16x16xf32>
    %254 = vector.broadcast %251 : f32 to vector<16x16xf32>
    %255 = arith.mulf %254, %253 : vector<16x16xf32>
    %256 = arith.addf %250, %255 : vector<16x16xf32>
    %257 = vector.extract_strided_slice %56 {offsets = [2, 5], sizes = [16, 16], strides = [1, 1]} : vector<22x22xf32> to vector<16x16xf32>
    %258 = vector.broadcast %252 : f32 to vector<16x16xf32>
    %259 = arith.mulf %258, %257 : vector<16x16xf32>
    %260 = arith.addf %256, %259 : vector<16x16xf32>
    %c20 = arith.constant 20 : index
    %261 = memref.load %arg6[%c20] : memref<98xf32, #tpu.memory_space<smem>>
    %c69 = arith.constant 69 : index
    %262 = memref.load %arg6[%c69] : memref<98xf32, #tpu.memory_space<smem>>
    %263 = vector.extract_strided_slice %54 {offsets = [2, 6], sizes = [16, 16], strides = [1, 1]} : vector<22x22xf32> to vector<16x16xf32>
    %264 = vector.broadcast %261 : f32 to vector<16x16xf32>
    %265 = arith.mulf %264, %263 : vector<16x16xf32>
    %266 = arith.addf %260, %265 : vector<16x16xf32>
    %267 = vector.extract_strided_slice %56 {offsets = [2, 6], sizes = [16, 16], strides = [1, 1]} : vector<22x22xf32> to vector<16x16xf32>
    %268 = vector.broadcast %262 : f32 to vector<16x16xf32>
    %269 = arith.mulf %268, %267 : vector<16x16xf32>
    %270 = arith.addf %266, %269 : vector<16x16xf32>
    %c21 = arith.constant 21 : index
    %271 = memref.load %arg6[%c21] : memref<98xf32, #tpu.memory_space<smem>>
    %c70 = arith.constant 70 : index
    %272 = memref.load %arg6[%c70] : memref<98xf32, #tpu.memory_space<smem>>
    %273 = vector.extract_strided_slice %54 {offsets = [3, 0], sizes = [16, 16], strides = [1, 1]} : vector<22x22xf32> to vector<16x16xf32>
    %274 = vector.broadcast %271 : f32 to vector<16x16xf32>
    %275 = arith.mulf %274, %273 : vector<16x16xf32>
    %276 = arith.addf %270, %275 : vector<16x16xf32>
    %277 = vector.extract_strided_slice %56 {offsets = [3, 0], sizes = [16, 16], strides = [1, 1]} : vector<22x22xf32> to vector<16x16xf32>
    %278 = vector.broadcast %272 : f32 to vector<16x16xf32>
    %279 = arith.mulf %278, %277 : vector<16x16xf32>
    %280 = arith.addf %276, %279 : vector<16x16xf32>
    %c22 = arith.constant 22 : index
    %281 = memref.load %arg6[%c22] : memref<98xf32, #tpu.memory_space<smem>>
    %c71 = arith.constant 71 : index
    %282 = memref.load %arg6[%c71] : memref<98xf32, #tpu.memory_space<smem>>
    %283 = vector.extract_strided_slice %54 {offsets = [3, 1], sizes = [16, 16], strides = [1, 1]} : vector<22x22xf32> to vector<16x16xf32>
    %284 = vector.broadcast %281 : f32 to vector<16x16xf32>
    %285 = arith.mulf %284, %283 : vector<16x16xf32>
    %286 = arith.addf %280, %285 : vector<16x16xf32>
    %287 = vector.extract_strided_slice %56 {offsets = [3, 1], sizes = [16, 16], strides = [1, 1]} : vector<22x22xf32> to vector<16x16xf32>
    %288 = vector.broadcast %282 : f32 to vector<16x16xf32>
    %289 = arith.mulf %288, %287 : vector<16x16xf32>
    %290 = arith.addf %286, %289 : vector<16x16xf32>
    %c23 = arith.constant 23 : index
    %291 = memref.load %arg6[%c23] : memref<98xf32, #tpu.memory_space<smem>>
    %c72 = arith.constant 72 : index
    %292 = memref.load %arg6[%c72] : memref<98xf32, #tpu.memory_space<smem>>
    %293 = vector.extract_strided_slice %54 {offsets = [3, 2], sizes = [16, 16], strides = [1, 1]} : vector<22x22xf32> to vector<16x16xf32>
    %294 = vector.broadcast %291 : f32 to vector<16x16xf32>
    %295 = arith.mulf %294, %293 : vector<16x16xf32>
    %296 = arith.addf %290, %295 : vector<16x16xf32>
    %297 = vector.extract_strided_slice %56 {offsets = [3, 2], sizes = [16, 16], strides = [1, 1]} : vector<22x22xf32> to vector<16x16xf32>
    %298 = vector.broadcast %292 : f32 to vector<16x16xf32>
    %299 = arith.mulf %298, %297 : vector<16x16xf32>
    %300 = arith.addf %296, %299 : vector<16x16xf32>
    %c24 = arith.constant 24 : index
    %301 = memref.load %arg6[%c24] : memref<98xf32, #tpu.memory_space<smem>>
    %c73 = arith.constant 73 : index
    %302 = memref.load %arg6[%c73] : memref<98xf32, #tpu.memory_space<smem>>
    %303 = vector.extract_strided_slice %54 {offsets = [3, 3], sizes = [16, 16], strides = [1, 1]} : vector<22x22xf32> to vector<16x16xf32>
    %304 = vector.broadcast %301 : f32 to vector<16x16xf32>
    %305 = arith.mulf %304, %303 : vector<16x16xf32>
    %306 = arith.addf %300, %305 : vector<16x16xf32>
    %307 = vector.extract_strided_slice %56 {offsets = [3, 3], sizes = [16, 16], strides = [1, 1]} : vector<22x22xf32> to vector<16x16xf32>
    %308 = vector.broadcast %302 : f32 to vector<16x16xf32>
    %309 = arith.mulf %308, %307 : vector<16x16xf32>
    %310 = arith.addf %306, %309 : vector<16x16xf32>
    %c25 = arith.constant 25 : index
    %311 = memref.load %arg6[%c25] : memref<98xf32, #tpu.memory_space<smem>>
    %c74 = arith.constant 74 : index
    %312 = memref.load %arg6[%c74] : memref<98xf32, #tpu.memory_space<smem>>
    %313 = vector.extract_strided_slice %54 {offsets = [3, 4], sizes = [16, 16], strides = [1, 1]} : vector<22x22xf32> to vector<16x16xf32>
    %314 = vector.broadcast %311 : f32 to vector<16x16xf32>
    %315 = arith.mulf %314, %313 : vector<16x16xf32>
    %316 = arith.addf %310, %315 : vector<16x16xf32>
    %317 = vector.extract_strided_slice %56 {offsets = [3, 4], sizes = [16, 16], strides = [1, 1]} : vector<22x22xf32> to vector<16x16xf32>
    %318 = vector.broadcast %312 : f32 to vector<16x16xf32>
    %319 = arith.mulf %318, %317 : vector<16x16xf32>
    %320 = arith.addf %316, %319 : vector<16x16xf32>
    %c26 = arith.constant 26 : index
    %321 = memref.load %arg6[%c26] : memref<98xf32, #tpu.memory_space<smem>>
    %c75 = arith.constant 75 : index
    %322 = memref.load %arg6[%c75] : memref<98xf32, #tpu.memory_space<smem>>
    %323 = vector.extract_strided_slice %54 {offsets = [3, 5], sizes = [16, 16], strides = [1, 1]} : vector<22x22xf32> to vector<16x16xf32>
    %324 = vector.broadcast %321 : f32 to vector<16x16xf32>
    %325 = arith.mulf %324, %323 : vector<16x16xf32>
    %326 = arith.addf %320, %325 : vector<16x16xf32>
    %327 = vector.extract_strided_slice %56 {offsets = [3, 5], sizes = [16, 16], strides = [1, 1]} : vector<22x22xf32> to vector<16x16xf32>
    %328 = vector.broadcast %322 : f32 to vector<16x16xf32>
    %329 = arith.mulf %328, %327 : vector<16x16xf32>
    %330 = arith.addf %326, %329 : vector<16x16xf32>
    %c27 = arith.constant 27 : index
    %331 = memref.load %arg6[%c27] : memref<98xf32, #tpu.memory_space<smem>>
    %c76 = arith.constant 76 : index
    %332 = memref.load %arg6[%c76] : memref<98xf32, #tpu.memory_space<smem>>
    %333 = vector.extract_strided_slice %54 {offsets = [3, 6], sizes = [16, 16], strides = [1, 1]} : vector<22x22xf32> to vector<16x16xf32>
    %334 = vector.broadcast %331 : f32 to vector<16x16xf32>
    %335 = arith.mulf %334, %333 : vector<16x16xf32>
    %336 = arith.addf %330, %335 : vector<16x16xf32>
    %337 = vector.extract_strided_slice %56 {offsets = [3, 6], sizes = [16, 16], strides = [1, 1]} : vector<22x22xf32> to vector<16x16xf32>
    %338 = vector.broadcast %332 : f32 to vector<16x16xf32>
    %339 = arith.mulf %338, %337 : vector<16x16xf32>
    %340 = arith.addf %336, %339 : vector<16x16xf32>
    %c28 = arith.constant 28 : index
    %341 = memref.load %arg6[%c28] : memref<98xf32, #tpu.memory_space<smem>>
    %c77 = arith.constant 77 : index
    %342 = memref.load %arg6[%c77] : memref<98xf32, #tpu.memory_space<smem>>
    %343 = vector.extract_strided_slice %54 {offsets = [4, 0], sizes = [16, 16], strides = [1, 1]} : vector<22x22xf32> to vector<16x16xf32>
    %344 = vector.broadcast %341 : f32 to vector<16x16xf32>
    %345 = arith.mulf %344, %343 : vector<16x16xf32>
    %346 = arith.addf %340, %345 : vector<16x16xf32>
    %347 = vector.extract_strided_slice %56 {offsets = [4, 0], sizes = [16, 16], strides = [1, 1]} : vector<22x22xf32> to vector<16x16xf32>
    %348 = vector.broadcast %342 : f32 to vector<16x16xf32>
    %349 = arith.mulf %348, %347 : vector<16x16xf32>
    %350 = arith.addf %346, %349 : vector<16x16xf32>
    %c29 = arith.constant 29 : index
    %351 = memref.load %arg6[%c29] : memref<98xf32, #tpu.memory_space<smem>>
    %c78 = arith.constant 78 : index
    %352 = memref.load %arg6[%c78] : memref<98xf32, #tpu.memory_space<smem>>
    %353 = vector.extract_strided_slice %54 {offsets = [4, 1], sizes = [16, 16], strides = [1, 1]} : vector<22x22xf32> to vector<16x16xf32>
    %354 = vector.broadcast %351 : f32 to vector<16x16xf32>
    %355 = arith.mulf %354, %353 : vector<16x16xf32>
    %356 = arith.addf %350, %355 : vector<16x16xf32>
    %357 = vector.extract_strided_slice %56 {offsets = [4, 1], sizes = [16, 16], strides = [1, 1]} : vector<22x22xf32> to vector<16x16xf32>
    %358 = vector.broadcast %352 : f32 to vector<16x16xf32>
    %359 = arith.mulf %358, %357 : vector<16x16xf32>
    %360 = arith.addf %356, %359 : vector<16x16xf32>
    %c30 = arith.constant 30 : index
    %361 = memref.load %arg6[%c30] : memref<98xf32, #tpu.memory_space<smem>>
    %c79 = arith.constant 79 : index
    %362 = memref.load %arg6[%c79] : memref<98xf32, #tpu.memory_space<smem>>
    %363 = vector.extract_strided_slice %54 {offsets = [4, 2], sizes = [16, 16], strides = [1, 1]} : vector<22x22xf32> to vector<16x16xf32>
    %364 = vector.broadcast %361 : f32 to vector<16x16xf32>
    %365 = arith.mulf %364, %363 : vector<16x16xf32>
    %366 = arith.addf %360, %365 : vector<16x16xf32>
    %367 = vector.extract_strided_slice %56 {offsets = [4, 2], sizes = [16, 16], strides = [1, 1]} : vector<22x22xf32> to vector<16x16xf32>
    %368 = vector.broadcast %362 : f32 to vector<16x16xf32>
    %369 = arith.mulf %368, %367 : vector<16x16xf32>
    %370 = arith.addf %366, %369 : vector<16x16xf32>
    %c31 = arith.constant 31 : index
    %371 = memref.load %arg6[%c31] : memref<98xf32, #tpu.memory_space<smem>>
    %c80 = arith.constant 80 : index
    %372 = memref.load %arg6[%c80] : memref<98xf32, #tpu.memory_space<smem>>
    %373 = vector.extract_strided_slice %54 {offsets = [4, 3], sizes = [16, 16], strides = [1, 1]} : vector<22x22xf32> to vector<16x16xf32>
    %374 = vector.broadcast %371 : f32 to vector<16x16xf32>
    %375 = arith.mulf %374, %373 : vector<16x16xf32>
    %376 = arith.addf %370, %375 : vector<16x16xf32>
    %377 = vector.extract_strided_slice %56 {offsets = [4, 3], sizes = [16, 16], strides = [1, 1]} : vector<22x22xf32> to vector<16x16xf32>
    %378 = vector.broadcast %372 : f32 to vector<16x16xf32>
    %379 = arith.mulf %378, %377 : vector<16x16xf32>
    %380 = arith.addf %376, %379 : vector<16x16xf32>
    %c32 = arith.constant 32 : index
    %381 = memref.load %arg6[%c32] : memref<98xf32, #tpu.memory_space<smem>>
    %c81 = arith.constant 81 : index
    %382 = memref.load %arg6[%c81] : memref<98xf32, #tpu.memory_space<smem>>
    %383 = vector.extract_strided_slice %54 {offsets = [4, 4], sizes = [16, 16], strides = [1, 1]} : vector<22x22xf32> to vector<16x16xf32>
    %384 = vector.broadcast %381 : f32 to vector<16x16xf32>
    %385 = arith.mulf %384, %383 : vector<16x16xf32>
    %386 = arith.addf %380, %385 : vector<16x16xf32>
    %387 = vector.extract_strided_slice %56 {offsets = [4, 4], sizes = [16, 16], strides = [1, 1]} : vector<22x22xf32> to vector<16x16xf32>
    %388 = vector.broadcast %382 : f32 to vector<16x16xf32>
    %389 = arith.mulf %388, %387 : vector<16x16xf32>
    %390 = arith.addf %386, %389 : vector<16x16xf32>
    %c33 = arith.constant 33 : index
    %391 = memref.load %arg6[%c33] : memref<98xf32, #tpu.memory_space<smem>>
    %c82 = arith.constant 82 : index
    %392 = memref.load %arg6[%c82] : memref<98xf32, #tpu.memory_space<smem>>
    %393 = vector.extract_strided_slice %54 {offsets = [4, 5], sizes = [16, 16], strides = [1, 1]} : vector<22x22xf32> to vector<16x16xf32>
    %394 = vector.broadcast %391 : f32 to vector<16x16xf32>
    %395 = arith.mulf %394, %393 : vector<16x16xf32>
    %396 = arith.addf %390, %395 : vector<16x16xf32>
    %397 = vector.extract_strided_slice %56 {offsets = [4, 5], sizes = [16, 16], strides = [1, 1]} : vector<22x22xf32> to vector<16x16xf32>
    %398 = vector.broadcast %392 : f32 to vector<16x16xf32>
    %399 = arith.mulf %398, %397 : vector<16x16xf32>
    %400 = arith.addf %396, %399 : vector<16x16xf32>
    %c34 = arith.constant 34 : index
    %401 = memref.load %arg6[%c34] : memref<98xf32, #tpu.memory_space<smem>>
    %c83 = arith.constant 83 : index
    %402 = memref.load %arg6[%c83] : memref<98xf32, #tpu.memory_space<smem>>
    %403 = vector.extract_strided_slice %54 {offsets = [4, 6], sizes = [16, 16], strides = [1, 1]} : vector<22x22xf32> to vector<16x16xf32>
    %404 = vector.broadcast %401 : f32 to vector<16x16xf32>
    %405 = arith.mulf %404, %403 : vector<16x16xf32>
    %406 = arith.addf %400, %405 : vector<16x16xf32>
    %407 = vector.extract_strided_slice %56 {offsets = [4, 6], sizes = [16, 16], strides = [1, 1]} : vector<22x22xf32> to vector<16x16xf32>
    %408 = vector.broadcast %402 : f32 to vector<16x16xf32>
    %409 = arith.mulf %408, %407 : vector<16x16xf32>
    %410 = arith.addf %406, %409 : vector<16x16xf32>
    %c35 = arith.constant 35 : index
    %411 = memref.load %arg6[%c35] : memref<98xf32, #tpu.memory_space<smem>>
    %c84 = arith.constant 84 : index
    %412 = memref.load %arg6[%c84] : memref<98xf32, #tpu.memory_space<smem>>
    %413 = vector.extract_strided_slice %54 {offsets = [5, 0], sizes = [16, 16], strides = [1, 1]} : vector<22x22xf32> to vector<16x16xf32>
    %414 = vector.broadcast %411 : f32 to vector<16x16xf32>
    %415 = arith.mulf %414, %413 : vector<16x16xf32>
    %416 = arith.addf %410, %415 : vector<16x16xf32>
    %417 = vector.extract_strided_slice %56 {offsets = [5, 0], sizes = [16, 16], strides = [1, 1]} : vector<22x22xf32> to vector<16x16xf32>
    %418 = vector.broadcast %412 : f32 to vector<16x16xf32>
    %419 = arith.mulf %418, %417 : vector<16x16xf32>
    %420 = arith.addf %416, %419 : vector<16x16xf32>
    %c36 = arith.constant 36 : index
    %421 = memref.load %arg6[%c36] : memref<98xf32, #tpu.memory_space<smem>>
    %c85 = arith.constant 85 : index
    %422 = memref.load %arg6[%c85] : memref<98xf32, #tpu.memory_space<smem>>
    %423 = vector.extract_strided_slice %54 {offsets = [5, 1], sizes = [16, 16], strides = [1, 1]} : vector<22x22xf32> to vector<16x16xf32>
    %424 = vector.broadcast %421 : f32 to vector<16x16xf32>
    %425 = arith.mulf %424, %423 : vector<16x16xf32>
    %426 = arith.addf %420, %425 : vector<16x16xf32>
    %427 = vector.extract_strided_slice %56 {offsets = [5, 1], sizes = [16, 16], strides = [1, 1]} : vector<22x22xf32> to vector<16x16xf32>
    %428 = vector.broadcast %422 : f32 to vector<16x16xf32>
    %429 = arith.mulf %428, %427 : vector<16x16xf32>
    %430 = arith.addf %426, %429 : vector<16x16xf32>
    %c37 = arith.constant 37 : index
    %431 = memref.load %arg6[%c37] : memref<98xf32, #tpu.memory_space<smem>>
    %c86 = arith.constant 86 : index
    %432 = memref.load %arg6[%c86] : memref<98xf32, #tpu.memory_space<smem>>
    %433 = vector.extract_strided_slice %54 {offsets = [5, 2], sizes = [16, 16], strides = [1, 1]} : vector<22x22xf32> to vector<16x16xf32>
    %434 = vector.broadcast %431 : f32 to vector<16x16xf32>
    %435 = arith.mulf %434, %433 : vector<16x16xf32>
    %436 = arith.addf %430, %435 : vector<16x16xf32>
    %437 = vector.extract_strided_slice %56 {offsets = [5, 2], sizes = [16, 16], strides = [1, 1]} : vector<22x22xf32> to vector<16x16xf32>
    %438 = vector.broadcast %432 : f32 to vector<16x16xf32>
    %439 = arith.mulf %438, %437 : vector<16x16xf32>
    %440 = arith.addf %436, %439 : vector<16x16xf32>
    %c38 = arith.constant 38 : index
    %441 = memref.load %arg6[%c38] : memref<98xf32, #tpu.memory_space<smem>>
    %c87 = arith.constant 87 : index
    %442 = memref.load %arg6[%c87] : memref<98xf32, #tpu.memory_space<smem>>
    %443 = vector.extract_strided_slice %54 {offsets = [5, 3], sizes = [16, 16], strides = [1, 1]} : vector<22x22xf32> to vector<16x16xf32>
    %444 = vector.broadcast %441 : f32 to vector<16x16xf32>
    %445 = arith.mulf %444, %443 : vector<16x16xf32>
    %446 = arith.addf %440, %445 : vector<16x16xf32>
    %447 = vector.extract_strided_slice %56 {offsets = [5, 3], sizes = [16, 16], strides = [1, 1]} : vector<22x22xf32> to vector<16x16xf32>
    %448 = vector.broadcast %442 : f32 to vector<16x16xf32>
    %449 = arith.mulf %448, %447 : vector<16x16xf32>
    %450 = arith.addf %446, %449 : vector<16x16xf32>
    %c39 = arith.constant 39 : index
    %451 = memref.load %arg6[%c39] : memref<98xf32, #tpu.memory_space<smem>>
    %c88 = arith.constant 88 : index
    %452 = memref.load %arg6[%c88] : memref<98xf32, #tpu.memory_space<smem>>
    %453 = vector.extract_strided_slice %54 {offsets = [5, 4], sizes = [16, 16], strides = [1, 1]} : vector<22x22xf32> to vector<16x16xf32>
    %454 = vector.broadcast %451 : f32 to vector<16x16xf32>
    %455 = arith.mulf %454, %453 : vector<16x16xf32>
    %456 = arith.addf %450, %455 : vector<16x16xf32>
    %457 = vector.extract_strided_slice %56 {offsets = [5, 4], sizes = [16, 16], strides = [1, 1]} : vector<22x22xf32> to vector<16x16xf32>
    %458 = vector.broadcast %452 : f32 to vector<16x16xf32>
    %459 = arith.mulf %458, %457 : vector<16x16xf32>
    %460 = arith.addf %456, %459 : vector<16x16xf32>
    %c40 = arith.constant 40 : index
    %461 = memref.load %arg6[%c40] : memref<98xf32, #tpu.memory_space<smem>>
    %c89 = arith.constant 89 : index
    %462 = memref.load %arg6[%c89] : memref<98xf32, #tpu.memory_space<smem>>
    %463 = vector.extract_strided_slice %54 {offsets = [5, 5], sizes = [16, 16], strides = [1, 1]} : vector<22x22xf32> to vector<16x16xf32>
    %464 = vector.broadcast %461 : f32 to vector<16x16xf32>
    %465 = arith.mulf %464, %463 : vector<16x16xf32>
    %466 = arith.addf %460, %465 : vector<16x16xf32>
    %467 = vector.extract_strided_slice %56 {offsets = [5, 5], sizes = [16, 16], strides = [1, 1]} : vector<22x22xf32> to vector<16x16xf32>
    %468 = vector.broadcast %462 : f32 to vector<16x16xf32>
    %469 = arith.mulf %468, %467 : vector<16x16xf32>
    %470 = arith.addf %466, %469 : vector<16x16xf32>
    %c41 = arith.constant 41 : index
    %471 = memref.load %arg6[%c41] : memref<98xf32, #tpu.memory_space<smem>>
    %c90 = arith.constant 90 : index
    %472 = memref.load %arg6[%c90] : memref<98xf32, #tpu.memory_space<smem>>
    %473 = vector.extract_strided_slice %54 {offsets = [5, 6], sizes = [16, 16], strides = [1, 1]} : vector<22x22xf32> to vector<16x16xf32>
    %474 = vector.broadcast %471 : f32 to vector<16x16xf32>
    %475 = arith.mulf %474, %473 : vector<16x16xf32>
    %476 = arith.addf %470, %475 : vector<16x16xf32>
    %477 = vector.extract_strided_slice %56 {offsets = [5, 6], sizes = [16, 16], strides = [1, 1]} : vector<22x22xf32> to vector<16x16xf32>
    %478 = vector.broadcast %472 : f32 to vector<16x16xf32>
    %479 = arith.mulf %478, %477 : vector<16x16xf32>
    %480 = arith.addf %476, %479 : vector<16x16xf32>
    %c42 = arith.constant 42 : index
    %481 = memref.load %arg6[%c42] : memref<98xf32, #tpu.memory_space<smem>>
    %c91 = arith.constant 91 : index
    %482 = memref.load %arg6[%c91] : memref<98xf32, #tpu.memory_space<smem>>
    %483 = vector.extract_strided_slice %54 {offsets = [6, 0], sizes = [16, 16], strides = [1, 1]} : vector<22x22xf32> to vector<16x16xf32>
    %484 = vector.broadcast %481 : f32 to vector<16x16xf32>
    %485 = arith.mulf %484, %483 : vector<16x16xf32>
    %486 = arith.addf %480, %485 : vector<16x16xf32>
    %487 = vector.extract_strided_slice %56 {offsets = [6, 0], sizes = [16, 16], strides = [1, 1]} : vector<22x22xf32> to vector<16x16xf32>
    %488 = vector.broadcast %482 : f32 to vector<16x16xf32>
    %489 = arith.mulf %488, %487 : vector<16x16xf32>
    %490 = arith.addf %486, %489 : vector<16x16xf32>
    %c43 = arith.constant 43 : index
    %491 = memref.load %arg6[%c43] : memref<98xf32, #tpu.memory_space<smem>>
    %c92 = arith.constant 92 : index
    %492 = memref.load %arg6[%c92] : memref<98xf32, #tpu.memory_space<smem>>
    %493 = vector.extract_strided_slice %54 {offsets = [6, 1], sizes = [16, 16], strides = [1, 1]} : vector<22x22xf32> to vector<16x16xf32>
    %494 = vector.broadcast %491 : f32 to vector<16x16xf32>
    %495 = arith.mulf %494, %493 : vector<16x16xf32>
    %496 = arith.addf %490, %495 : vector<16x16xf32>
    %497 = vector.extract_strided_slice %56 {offsets = [6, 1], sizes = [16, 16], strides = [1, 1]} : vector<22x22xf32> to vector<16x16xf32>
    %498 = vector.broadcast %492 : f32 to vector<16x16xf32>
    %499 = arith.mulf %498, %497 : vector<16x16xf32>
    %500 = arith.addf %496, %499 : vector<16x16xf32>
    %c44 = arith.constant 44 : index
    %501 = memref.load %arg6[%c44] : memref<98xf32, #tpu.memory_space<smem>>
    %c93 = arith.constant 93 : index
    %502 = memref.load %arg6[%c93] : memref<98xf32, #tpu.memory_space<smem>>
    %503 = vector.extract_strided_slice %54 {offsets = [6, 2], sizes = [16, 16], strides = [1, 1]} : vector<22x22xf32> to vector<16x16xf32>
    %504 = vector.broadcast %501 : f32 to vector<16x16xf32>
    %505 = arith.mulf %504, %503 : vector<16x16xf32>
    %506 = arith.addf %500, %505 : vector<16x16xf32>
    %507 = vector.extract_strided_slice %56 {offsets = [6, 2], sizes = [16, 16], strides = [1, 1]} : vector<22x22xf32> to vector<16x16xf32>
    %508 = vector.broadcast %502 : f32 to vector<16x16xf32>
    %509 = arith.mulf %508, %507 : vector<16x16xf32>
    %510 = arith.addf %506, %509 : vector<16x16xf32>
    %c45 = arith.constant 45 : index
    %511 = memref.load %arg6[%c45] : memref<98xf32, #tpu.memory_space<smem>>
    %c94 = arith.constant 94 : index
    %512 = memref.load %arg6[%c94] : memref<98xf32, #tpu.memory_space<smem>>
    %513 = vector.extract_strided_slice %54 {offsets = [6, 3], sizes = [16, 16], strides = [1, 1]} : vector<22x22xf32> to vector<16x16xf32>
    %514 = vector.broadcast %511 : f32 to vector<16x16xf32>
    %515 = arith.mulf %514, %513 : vector<16x16xf32>
    %516 = arith.addf %510, %515 : vector<16x16xf32>
    %517 = vector.extract_strided_slice %56 {offsets = [6, 3], sizes = [16, 16], strides = [1, 1]} : vector<22x22xf32> to vector<16x16xf32>
    %518 = vector.broadcast %512 : f32 to vector<16x16xf32>
    %519 = arith.mulf %518, %517 : vector<16x16xf32>
    %520 = arith.addf %516, %519 : vector<16x16xf32>
    %c46 = arith.constant 46 : index
    %521 = memref.load %arg6[%c46] : memref<98xf32, #tpu.memory_space<smem>>
    %c95 = arith.constant 95 : index
    %522 = memref.load %arg6[%c95] : memref<98xf32, #tpu.memory_space<smem>>
    %523 = vector.extract_strided_slice %54 {offsets = [6, 4], sizes = [16, 16], strides = [1, 1]} : vector<22x22xf32> to vector<16x16xf32>
    %524 = vector.broadcast %521 : f32 to vector<16x16xf32>
    %525 = arith.mulf %524, %523 : vector<16x16xf32>
    %526 = arith.addf %520, %525 : vector<16x16xf32>
    %527 = vector.extract_strided_slice %56 {offsets = [6, 4], sizes = [16, 16], strides = [1, 1]} : vector<22x22xf32> to vector<16x16xf32>
    %528 = vector.broadcast %522 : f32 to vector<16x16xf32>
    %529 = arith.mulf %528, %527 : vector<16x16xf32>
    %530 = arith.addf %526, %529 : vector<16x16xf32>
    %c47 = arith.constant 47 : index
    %531 = memref.load %arg6[%c47] : memref<98xf32, #tpu.memory_space<smem>>
    %c96 = arith.constant 96 : index
    %532 = memref.load %arg6[%c96] : memref<98xf32, #tpu.memory_space<smem>>
    %533 = vector.extract_strided_slice %54 {offsets = [6, 5], sizes = [16, 16], strides = [1, 1]} : vector<22x22xf32> to vector<16x16xf32>
    %534 = vector.broadcast %531 : f32 to vector<16x16xf32>
    %535 = arith.mulf %534, %533 : vector<16x16xf32>
    %536 = arith.addf %530, %535 : vector<16x16xf32>
    %537 = vector.extract_strided_slice %56 {offsets = [6, 5], sizes = [16, 16], strides = [1, 1]} : vector<22x22xf32> to vector<16x16xf32>
    %538 = vector.broadcast %532 : f32 to vector<16x16xf32>
    %539 = arith.mulf %538, %537 : vector<16x16xf32>
    %540 = arith.addf %536, %539 : vector<16x16xf32>
    %c48 = arith.constant 48 : index
    %541 = memref.load %arg6[%c48] : memref<98xf32, #tpu.memory_space<smem>>
    %c97 = arith.constant 97 : index
    %542 = memref.load %arg6[%c97] : memref<98xf32, #tpu.memory_space<smem>>
    %543 = vector.extract_strided_slice %54 {offsets = [6, 6], sizes = [16, 16], strides = [1, 1]} : vector<22x22xf32> to vector<16x16xf32>
    %544 = vector.broadcast %541 : f32 to vector<16x16xf32>
    %545 = arith.mulf %544, %543 : vector<16x16xf32>
    %546 = arith.addf %540, %545 : vector<16x16xf32>
    %547 = vector.extract_strided_slice %56 {offsets = [6, 6], sizes = [16, 16], strides = [1, 1]} : vector<22x22xf32> to vector<16x16xf32>
    %548 = vector.broadcast %542 : f32 to vector<16x16xf32>
    %549 = arith.mulf %548, %547 : vector<16x16xf32>
    %550 = arith.addf %546, %549 : vector<16x16xf32>
    %cst_32 = arith.constant 0.000000e+00 : f32
    %551 = vector.broadcast %cst_32 : f32 to vector<16x16xf32>
    %552 = arith.subf %551, %550 : vector<16x16xf32>
    %553 = math.exp %552 : vector<16x16xf32>
    %cst_33 = arith.constant 1.000000e+00 : f32
    %554 = vector.broadcast %cst_33 : f32 to vector<16x16xf32>
    %555 = arith.addf %554, %553 : vector<16x16xf32>
    %cst_34 = arith.constant 1.000000e+00 : f32
    %556 = vector.broadcast %cst_34 : f32 to vector<16x16xf32>
    %557 = arith.divf %556, %555 : vector<16x16xf32>
    %558 = vector.shape_cast %557 : vector<16x16xf32> to vector<16x16x1xf32>
    %559 = vector.broadcast %558 : vector<16x16x1xf32> to vector<16x16x64xf32>
    %560 = arith.mulf %46, %559 : vector<16x16x64xf32>
    %c0_35 = arith.constant 0 : index
    %c0_36 = arith.constant 0 : index
    %c0_37 = arith.constant 0 : index
    %c0_38 = arith.constant 0 : index
    %561 = vector.load %arg8[%c0_35, %c0_36, %c0_37, %c0_38] : memref<1x16x16x64xf32, #tpu.memory_space<vmem>>, vector<1x16x16x64xf32>
    %562 = vector.shape_cast %561 : vector<1x16x16x64xf32> to vector<16x16x64xf32>
    %563 = vector.shape_cast %560 : vector<16x16x64xf32> to vector<1x16x16x64xf32>
    tpu.vector_store %arg8[%c0_35, %c0_36, %c0_37, %c0_38], %563 {strides = array<i32>} : memref<1x16x16x64xf32, #tpu.memory_space<vmem>>, vector<1x16x16x64xf32>,
    return
  }
  func.func @transform_0(%arg0: i32) -> (i32, i32, i32, i32) {
    %c0_i32 = arith.constant 0 : i32
    %c0_i32_0 = arith.constant 0 : i32
    %c0_i32_1 = arith.constant 0 : i32
    %c0_i32_2 = arith.constant 0 : i32
    return %arg0, %c0_i32, %c0_i32_0, %c0_i32_1 : i32, i32, i32, i32
  }
  func.func @transform_1(%arg0: i32) -> (i32, i32) {
    %c0_i32 = arith.constant 0 : i32
    %c0_i32_0 = arith.constant 0 : i32
    %c0_i32_1 = arith.constant 0 : i32
    return %c0_i32, %c0_i32_0 : i32, i32
  }
  func.func @transform_2(%arg0: i32) -> (i32, i32) {
    %c0_i32 = arith.constant 0 : i32
    %c0_i32_0 = arith.constant 0 : i32
    %c0_i32_1 = arith.constant 0 : i32
    return %c0_i32, %c0_i32_0 : i32, i32
  }
  func.func @transform_3(%arg0: i32) -> (i32, i32) {
    %c0_i32 = arith.constant 0 : i32
    %c0_i32_0 = arith.constant 0 : i32
    %c0_i32_1 = arith.constant 0 : i32
    return %c0_i32, %c0_i32_0 : i32, i32
  }
  func.func @transform_4(%arg0: i32) -> (i32, i32) {
    %c0_i32 = arith.constant 0 : i32
    %c0_i32_0 = arith.constant 0 : i32
    %c0_i32_1 = arith.constant 0 : i32
    return %c0_i32, %c0_i32_0 : i32, i32
  }
  func.func @transform_5(%arg0: i32) -> i32 {
    %c0_i32 = arith.constant 0 : i32
    %c0_i32_0 = arith.constant 0 : i32
    return %c0_i32 : i32
  }
  func.func @transform_6(%arg0: i32) -> i32 {
    %c0_i32 = arith.constant 0 : i32
    %c0_i32_0 = arith.constant 0 : i32
    return %c0_i32 : i32
  }
  func.func @transform_7(%arg0: i32) -> (i32, i32, i32, i32) {
    %c0_i32 = arith.constant 0 : i32
    %c0_i32_0 = arith.constant 0 : i32
    %c0_i32_1 = arith.constant 0 : i32
    %c0_i32_2 = arith.constant 0 : i32
    return %arg0, %c0_i32, %c0_i32_0, %c0_i32_1 : i32, i32, i32, i32
  }
}

</mosaic_0001>

<bundles_post_ra>
// kernel: tpu_custom_call.1
= control target key start
LH: loop header
LB: loop body
LE: loop exit
PB: predicated region body
PF: predicated region fallthrough
CT: control target
= control target key end

     0   :  { %s7394_s0 = inlined_call_operand.hbm [shape: f32[2,16,16,64], index: 0, kind: input, shape index: {}]   ;;  %s7395_s1 = inlined_call_operand.vmem [shape: f32[64,4], index: 1, kind: input, shape index: {}]   ;;  %s7396_s2 = inlined_call_operand.vmem [shape: f32[1,4], index: 2, kind: input, shape index: {}]   ;;  %s7397_s3 = inlined_call_operand.vmem [shape: f32[4,64], index: 3, kind: input, shape index: {}]   ;;  %s7398_s4 = inlined_call_operand.vmem [shape: f32[1,64], index: 4, kind: input, shape index: {}]   ;;  %s7399_s5 = inlined_call_operand.vmem [shape: f32[98], index: 5, kind: input, shape index: {}]   ;;  %s7400_s6 = inlined_call_operand.<no memory space> [shape: f32[1], index: 6, kind: input, shape index: {}]   ;;  %s7401_s7 = inlined_call_operand.hbm [shape: f32[2,16,16,64], index: 7, kind: output, shape index: {}]  }
   0x1   :  { %7489 = sst [smem:[#allocation82_spill]] %s7399_s5 }
   0x2   :  { %12 = sst [smem:[#allocation2]] %s7400_s6 }
   0x3   :  { %13 = vsyncpa [#allocation4], 0 }
   0x4   :  { %15 = vsyncpa [#allocation4 + $0x1], 0 }
   0x5   :  { %16 = vsyncpa [#allocation6], 0 }
   0x6   :  { %17 = vsyncpa [#allocation5], 0 }
   0x7   :  { %19 = vsyncpa [#allocation5 + $0x1], 0  ;;  %s4178_s26 = smov 0   ;;  %s4180_s27 = smov 0  }
   0x8   :  { %s4182_s28 = smov 0   ;;  %s4184_s29 = smov 0  }
   0x9 LB: > { %s4199_s6 = sadd.s32 4294967295, %s4117_s29   ;;  %s3767_s30 = sadd.s32 4294967294, %s4117_s29   ;;  %s4117_s29 = sphi %s4184_s29, %s7708_s29   ;;  %s4113_s28 = sphi %s4182_s28, %s7707_s28   ;;  %s4109_s27 = sphi %s4180_s27, %s7706_s27   ;;  %s4105_s26 = sphi %s4178_s26, %s7705_s26  }
   0xa   : > { %s4203_s8 = sadd.s32 1, %s4117_s29   ;;  %s32_s9 = sadd.s32 1, %s4113_s28 }
   0xb   : > { %s29_s10 = ssub.s32 %s4117_s29, %s4203_s8  ;;  %p39_p0 = scmp.ne.s32.totalorder %s4113_s28, %s4109_s27 }
   0xc   : > { %p30_p1 = scmp.eq.s32.totalorder %s29_s10, 0  ;;  %p40_p2 = scmp.eq.s32.totalorder %s4117_s29, 0 }
   0xd   : > { %p45_p3 = scmp.ne.s32.totalorder %s4109_s27, %s4105_s26  ;;  %p7403_p4 = scmp.eq.s32.totalorder %s4199_s6, 0 }
   0xe   : > { %s4215_s11 = scalar_select %p30_p1, %s4113_s28, %s32_s9  }
   0xf   : > { %p4217_p5 = por %p40_p2, %p39_p0  ;;  %p4223_p6 = por %p7403_p4, %p45_p3 }
  0x10   : > { %p195_p7 = scmp.eq.s32.totalorder %s4199_s6, 1  ;;  %p201_p8 = scmp.eq.s32.totalorder %s3767_s30, 1 }
  0x11   : > { %s7491_s13 = scalar_select %p4223_p6, 1, 0 }
  0x12   : > { %p3768_p9 = scmp.ge.s32.totalorder %s4117_s29, 1  ;;  %p208_p10 = scmp.lt.s32.totalorder %s4117_s29, 3 }
  0x13   : > { %p4230_p11 = por %p195_p7, %p39_p0  ;;  %p4234_p12 = por %p201_p8, %p45_p3 }
  0x14   : > { %p4238_p13 = pnand %p3768_p9, %p208_p10  ;;  %s7495_s5 = sld [smem:[#allocation82_spill]] }
  0x15   : > { %s7492_s14 = scalar_select %p4230_p11, 1, 0 }
  0x16   : > { %s7493_s15 = scalar_select %p4234_p12, 1, 0 }
  0x17   : > { %s7494_s16 = scalar_select %p4238_p13, 1, 0 }
  0x18   : > { %p3930_p1 = pneg %p4238_p13  ;;  %p3943_p2 = scmp.lt.s32.totalorder %s4117_s29, 2 }
  0x19   : > { %s247_s21 = sand.u32 1, %s4113_s28  }
  0x1a   : > { %s233_s19 = sshll.u32 %s7495_s5, 4  ;;  %p4251_p7 = pnand %p3930_p1, %p7403_p4  ;;  %s234_s19 = int_to_ptr.vmem [resolvable:$true] %s233_s19 }
  0x1b   : > { %p4258_p3 = pnand %p3943_p2, %p4217_p5  ;;  %s3771_s23 = sshll.u32 %s247_s21, 8 }
  0x1c   : > { %s4006_s24 = scalar_lea.vmem %s234_s19, 16  ;;  %p4008_p9 = pneg %p4251_p7 }
  0x1d   : > { %p4007_p8 = scmp.ne.s32.totalorder %s234_s19, %s4006_s24  ;;  %p4014_p12 = scmp.lt.s32.totalorder %s234_s19, %s234_s19 }
  0x1e   : > { %p4015_p11 = scmp.lt.s32.totalorder %s4006_s24, %s4006_s24 }
  0x1f   : > { %p4009_p10 = pnand %p4008_p9, %p4007_p8 }
  0x20   : > { %p4016_p1 = por %p4015_p11, %p4014_p12 }
  0x21   : > { %p4010_p0 = pneg %p4009_p10 }
  0x23   : > { %p4017_p4 = pnand %p4016_p1, %p4010_p0 }
  0x25   : > { %4020 = shalt.err (!%p4017_p4)
}
  0x26   : > { %s4119_s25 = smov [#allocation7]   ;;  %s3885_s30 = sshll.u32 %s4117_s29, 12 }
  0x27   : > { %3933 = dma.vmem_to_smem (!%p4251_p7), %s234_s19, 16, %s4119_s25, [#allocation6]  }
  0x28   : > { %s251_s9 = scalar_lea.vmem [#allocation3], %s3771_s23  ;;  %s4270_s18 = scalar_lea.hbm %s7394_s0, %s3885_s30 }
  0x29   : > { %s258_s10 = sshll.u32 %s251_s9, 4  ;;  %s4274_s24 = scalar_lea.sflag [#allocation4], %s247_s21  ;;  %s4272_s10 = int_to_ptr.vmem [resolvable:$true] %s258_s10 }
  0x2a   : > { %s4021_s5 = scalar_lea.hbm %s4270_s18, 4096  ;;  %p4023_p5 = pneg %p4258_p3 }
  0x2b   : > { %p4022_p4 = scmp.ne.s32.totalorder %s4270_s18, %s4021_s5  ;;  %s4026_s23 = scalar_lea.hbm %s7394_s0, 8192 }
  0x2c   : > { %p4027_p0 = scmp.lt.s32.totalorder %s4270_s18, %s7394_s0  ;;  %p4028_p2 = scmp.lt.s32.totalorder %s4026_s23, %s4021_s5 }
  0x2d   : > { %p4024_p11 = pnand %p4023_p5, %p4022_p4 }
  0x2e   : > { %p4029_p7 = por %p4028_p2, %p4027_p0 }
  0x2f   : > { %p4025_p12 = pneg %p4024_p11 }
  0x31   : > { %p4030_p8 = pnand %p4029_p7, %p4025_p12 }
  0x33   : > { %4033 = shalt.err (!%p4030_p8)
}
  0x34   : > { %s4034_s21 = scalar_lea.vmem %s4272_s10, 4096  ;;  %s4120_s9 = smov [#allocation3]  }
  0x35   : > { %p4035_p9 = scmp.ne.s32.totalorder %s4272_s10, %s4034_s21  ;;  %s4039_s12 = sshll.u32 %s4120_s9, 4  ;;  %s4040_s12 = int_to_ptr.vmem [resolvable:$false] %s4039_s12 }
  0x36   : > { %s4041_s17 = scalar_lea.vmem %s4040_s12, 8192  ;;  %p4042_p4 = scmp.lt.s32.totalorder %s4272_s10, %s4040_s12 }
  0x37   : > { %p4037_p10 = pnand %p4035_p9, %p4023_p5  ;;  %p4043_p11 = scmp.lt.s32.totalorder %s4041_s17, %s4034_s21 }
  0x39   : > { %p4038_p1 = pneg %p4037_p10  ;;  %p4044_p6 = por %p4043_p11, %p4042_p4 }
  0x3b   : > { %p4045_p13 = pnand %p4044_p6, %p4038_p1 }
  0x3d   : > { %4048 = shalt.err (!%p4045_p13)
}
  0x3e   : > { %s4121_s5 = smov 128   ;;  %s4122_s19 = smov 8  }
  0x3f   : > { %3937 = dma.hbm_to_vmem [thread:$0]  (!%p4258_p3), %s4270_s18, 4096, %s4272_s10, %s4274_s24, %s4121_s5, %s4121_s5, %s4122_s19  }
  0x40   : > { %p7498_p5 = scmp.ne.s32.totalorder %s7494_s16, 0 }
  0x42   : > { %270 = sbr.rel (%p7498_p5) target bundleno = 1694 (0x69e), region = 48 }
  0x47   : > { %s4298_s20 = sand.u32 1, %s4109_s27   ;;  %p7499_p6 = scmp.ne.s32.totalorder %s7491_s13, 0 }
  0x48   : > { %s3775_s23 = sshll.u32 %s4298_s20, 8  ;;  %s273_s25 = scalar_lea.sflag [#allocation4], %s4298_s20 }
  0x49   : > { %s4304_s30 = scalar_lea.vmem [#allocation3], %s3775_s23 }
  0x4a   : > { %4092 = dma.done.wait (%p7499_p6), %s273_s25, 4096  }
  0x4b   : > { %4094 = vsyncadd (%p7499_p6), %s273_s25, 4294963200  ;;  %p7500_p13 = scmp.eq.s32.totalorder %s4199_s6, 0 }
  0x4d   : > { %4096 = dma.done.wait (%p7500_p13), [#allocation6], 16   ;;  %p7501_p3 = pmov %p7500_p13 }
  0x4f   : > { %4098 = vsyncadd (%p7501_p3), [#allocation6], 4294967280 }
  0x50   : > { %285 = sfence }
  0x51   : > { %v638_v0 = vld [vmem:[%s7395_s1 + $0x38] sm:$0xff]  ;;  %vm344_vm0 = vcmask 523264   ;;  %v4123_v1 = vmov 0.0   ;;  %v637_v2 = vld [vmem:[%s7395_s1 + $0x30] sm:$0xff]  ;;  %vm4124_vm1 = vmmov 0   ;;  %v636_v3 = vld [vmem:[%s7395_s1 + $0x28] sm:$0xff] }
  0x52   : > { %3898 = vmatprep.subr.mxu0 %v4123_v1  ;;  %3914 = vmatprep.mubr.msk.f32.mxu0 %vm4124_vm1, %v4123_v1  ;;  %v4326_v4 = vld [vmem:[%s4304_s30] sm:$0xff]  ;;  %v4334_v6 = vld [vmem:[%s4304_s30 + $0x8] sm:$0xff]  ;;  %v4337_v7 = vld [vmem:[%s4304_s30 + $0x10] sm:$0xff]  ;;  %vm643_vm4 = vcmask 1040384   ;;  %vm735_vm5 = vcmask 1043456   ;;  %vm731_vm6 = vcmask 31744  }
  0x53   : > { %3899 = vmatpush3.msra.mxu0 %v638_v0  ;;  %3917 = vmatprep.subr.mxu1 %v4123_v1  ;;  %v635_v5 = vld [vmem:[%s7395_s1 + $0x20] sm:$0xff]  ;;  %v4340_v8 = vld [vmem:[%s4304_s30 + $0x18] sm:$0xff]  ;;  %v345_v9 = vsel %vm344_vm0, %v4326_v4, 0.0  ;;  %v4349_v11 = vld [vmem:[%s4304_s30 + $0x28] sm:$0xff]  ;;  %v346_v13 = vsel %vm344_vm0, %v4337_v7, 0.0  ;;  %v376_v14 = vsel %vm344_vm0, %v4334_v6, 0.0 }
  0x54   : > { %3900 = vmatprep.subr.mxu0 %v4123_v1  ;;  %3919 = vmatprep.mubr.msk.f32.mxu1 %vm4124_vm1, %v4123_v1  ;;  %v4346_v10 = vld [vmem:[%s4304_s30 + $0x20] sm:$0xff]  ;;  %v4352_v12 = vld [vmem:[%s4304_s30 + $0x30] sm:$0xff]  ;;  %v377_v15 = vsel %vm344_vm0, %v4340_v8, 0.0  ;;  %v4362_v16 = vld [vmem:[%s4304_s30 + $0x38] sm:$0xff]  ;;  %v347_v19 = vadd.f32 %v346_v13, %v345_v9  ;;  %v379_v23 = vsel %vm344_vm0, %v4349_v11, 0.0  ;;  %vm1122_vm7 = vcmask 130112  }
  0x55   : > { %3901 = vmatpush3.msra.mxu0 %v637_v2  ;;  %7502 = vst [vmem:[#allocation12_spill] sm:$0xff] %v4352_v12  ;;  %7503 = vst [vmem:[#allocation13_spill] sm:$0xff] %v4362_v16  ;;  %v4365_v17 = vld [vmem:[%s4304_s30 + $0x40] sm:$0xff]  ;;  %v4368_v18 = vld [vmem:[%s4304_s30 + $0x48] sm:$0xff]  ;;  %v348_v20 = vsel %vm344_vm0, %v4346_v10, 0.0  ;;  %v378_v21 = vadd.f32 %v377_v15, %v376_v14  ;;  %v350_v22 = vsel %vm344_vm0, %v4352_v12, 0.0 }
  0x56   : > { %3902 = vmatprep.subr.mxu0 %v4123_v1  ;;  %7504 = vst [vmem:[#allocation14_spill] sm:$0xff] %v4365_v17  ;;  %7505 = vst [vmem:[#allocation15_spill] sm:$0xff] %v4368_v18  ;;  %v381_v24 = vsel %vm344_vm0, %v4362_v16, 0.0  ;;  %v634_v25 = vld [vmem:[%s7395_s1 + $0x18] sm:$0xff]  ;;  %v4383_v26 = vld [vmem:[%s4304_s30 + $0x50] sm:$0xff]  ;;  %v349_v28 = vadd.f32 %v348_v20, %v347_v19  ;;  %v352_v30 = vsel %vm344_vm0, %v4365_v17, 0.0 }
  0x57   : > { %3903 = vmatpush3.msra.mxu0 %v636_v3  ;;  %7506 = vst [vmem:[#allocation16_spill] sm:$0xff] %v4383_v26  ;;  %v4386_v27 = vld [vmem:[%s4304_s30 + $0x58] sm:$0xff]  ;;  %v380_v29 = vadd.f32 %v379_v23, %v378_v21  ;;  %v383_v31 = vsel %vm344_vm0, %v4368_v18, 0.0  ;;  %v633_v32 = vld [vmem:[%s7395_s1 + $0x10] sm:$0xff]  ;;  %v4397_v33 = vld [vmem:[%s4304_s30 + $0x60] sm:$0xff]  ;;  %v354_v37 = vsel %vm344_vm0, %v4383_v26, 0.0 }
  0x58   : > { %3904 = vmatprep.subr.mxu0 %v4123_v1  ;;  %7507 = vst [vmem:[#allocation17_spill] sm:$0xff] %v4386_v27  ;;  %7508 = vst [vmem:[#allocation18_spill] sm:$0xff] %v4397_v33  ;;  %v4400_v34 = vld [vmem:[%s4304_s30 + $0x68] sm:$0xff]  ;;  %v351_v35 = vadd.f32 %v350_v22, %v349_v28  ;;  %v385_v38 = vsel %vm344_vm0, %v4386_v27, 0.0  ;;  %v4411_v40 = vld [vmem:[%s4304_s30 + $0x70] sm:$0xff]  ;;  %v356_v44 = vsel %vm344_vm0, %v4397_v33, 0.0 }
  0x59   : > { %3905 = vmatpush3.msra.mxu0 %v635_v5  ;;  %7509 = vst [vmem:[#allocation19_spill] sm:$0xff] %v4400_v34  ;;  %v382_v36 = vadd.f32 %v381_v24, %v380_v29  ;;  %v632_v39 = vld [vmem:[%s7395_s1 + $0x8] sm:$0xff]  ;;  %7510 = vst [vmem:[#allocation20_spill] sm:$0xff] %v4411_v40  ;;  %v4414_v41 = vld [vmem:[%s4304_s30 + $0x78] sm:$0xff]  ;;  %v387_v45 = vsel %vm344_vm0, %v4400_v34, 0.0  ;;  %v358_v51 = vsel %vm344_vm0, %v4411_v40, 0.0 }
  0x5a   : > { %3906 = vmatprep.subr.mxu0 %v4123_v1  ;;  %v353_v42 = vadd.f32 %v352_v30, %v351_v35  ;;  %v631_v46 = vld [vmem:[%s7395_s1] sm:$0xff]  ;;  %v4428_v48 = vld [vmem:[%s4304_s30 + $0x88] sm:$0xff]  ;;  %v389_v52 = vsel %vm344_vm0, %v4414_v41, 0.0  ;;  %v4436_v53 = vld [vmem:[%s4304_s30 + $0x90] sm:$0xff]  ;;  %vm1259_vm8 = vcmask 1044484   ;;  %vm1261_vm9 = vcmask 1045509  }
  0x5b   : > { %3907 = vmatpush3.msra.mxu0 %v634_v25  ;;  %v384_v43 = vadd.f32 %v383_v31, %v382_v36  ;;  %v4425_v47 = vld [vmem:[%s4304_s30 + $0x80] sm:$0xff]  ;;  %v4439_v54 = vld [vmem:[%s4304_s30 + $0x98] sm:$0xff]  ;;  %v391_v58 = vsel %vm344_vm0, %v4428_v48, 0.0  ;;  %v4449_v60 = vld [vmem:[%s4304_s30 + $0xa8] sm:$0xff]  ;;  %v362_v63 = vsel %vm344_vm0, %v4436_v53, 0.0  ;;  %vm1263_vm10 = vcmask 1046534  }
  0x5c   : > { %3908 = vmatprep.subr.mxu0 %v4123_v1  ;;  %v355_v49 = vadd.f32 %v354_v37, %v353_v42  ;;  %v360_v57 = vsel %vm344_vm0, %v4425_v47, 0.0  ;;  %v4446_v59 = vld [vmem:[%s4304_s30 + $0xa0] sm:$0xff]  ;;  %v393_v0 = vsel %vm344_vm0, %v4439_v54, 0.0  ;;  %v4459_v2 = vld [vmem:[%s4304_s30 + $0xb8] sm:$0xff]  ;;  %v395_v13 = vsel %vm344_vm0, %v4449_v60, 0.0  ;;  %v4469_v15 = vld [vmem:[%s4304_s30 + $0xc8] sm:$0xff] }
  0x5d   : > { %3909 = vmatpush3.msra.mxu0 %v633_v32  ;;  %v386_v50 = vadd.f32 %v385_v38, %v384_v43  ;;  %v364_v9 = vsel %vm344_vm0, %v4446_v59, 0.0  ;;  %v4466_v14 = vld [vmem:[%s4304_s30 + $0xc0] sm:$0xff]  ;;  %v397_v22 = vsel %vm344_vm0, %v4459_v2, 0.0  ;;  %v4476_v23 = vld [vmem:[%s4304_s30 + $0xd0] sm:$0xff]  ;;  %v4479_v24 = vld [vmem:[%s4304_s30 + $0xd8] sm:$0xff]  ;;  %v399_v30 = vsel %vm344_vm0, %v4469_v15, 0.0 }
  0x5e   : > { %3910 = vmatprep.subr.mxu0 %v4123_v1  ;;  %v357_v55 = vadd.f32 %v356_v44, %v355_v49  ;;  %v368_v29 = vsel %vm344_vm0, %v4466_v14, 0.0  ;;  %v4486_v31 = vld [vmem:[%s4304_s30 + $0xe0] sm:$0xff]  ;;  %v4489_v32 = vld [vmem:[%s4304_s30 + $0xe8] sm:$0xff]  ;;  %v370_v37 = vsel %vm344_vm0, %v4476_v23, 0.0  ;;  %v401_v38 = vsel %vm344_vm0, %v4479_v24, 0.0  ;;  %v4499_v42 = vld [vmem:[%s4304_s30 + $0xf8] sm:$0xff] }
  0x5f   : > { %3911 = vmatpush3.msra.mxu0 %v632_v39  ;;  %v388_v56 = vadd.f32 %v387_v45, %v386_v50  ;;  %v4496_v39 = vld [vmem:[%s4304_s30 + $0xf0] sm:$0xff]  ;;  %v372_v45 = vsel %vm344_vm0, %v4486_v31, 0.0  ;;  %vm1265_vm11 = vcmask 1047559   ;;  %vm1281_vm12 = vcmask 1042432   ;;  %s4125_s12 = smov 3   ;;  %s5209_s17 = sld [smem:[#allocation7 + $0x1]] }
  0x60   : > { %3912 = vmatprep.subr.mxu0 %v4123_v1  ;;  %v359_v61 = vadd.f32 %v358_v51, %v357_v55  ;;  %v4456_v1 = vld [vmem:[%s4304_s30 + $0xb0] sm:$0xff]  ;;  %v374_v51 = vsel %vm344_vm0, %v4496_v39, 0.0  ;;  %vm1267_vm13 = vcmask 1041409   ;;  %vm1269_vm14 = vcmask 1042434   ;;  %s5231_s5 = sld [smem:[#allocation7 + $0x2]]  ;;  %s4126_s16 = smov 127  }
  0x61   : > { %3913 = vmatpush3.msra.mxu0 %v631_v46  ;;  %v390_v62 = vadd.f32 %v389_v52, %v388_v56  ;;  %v366_v21 = vsel %vm344_vm0, %v4456_v1, 0.0  ;;  %v403_v46 = vsel %vm344_vm0, %v4489_v32, 0.0  ;;  %v405_v52 = vsel %vm344_vm0, %v4499_v42, 0.0  ;;  %s5243_s19 = sld [smem:[#allocation7 + $0x3]]  ;;  %s4127_s13 = smov 126  }
  0x62   : > { %v361_v3 = vadd.f32 %v360_v57, %v359_v61  ;;  %vm1271_vm15 = vcmask 1043459   ;;  %vm1295_vm1 = vcmask 23552   ;;  %s5253_s25 = sld [smem:[#allocation7 + $0x4]]  ;;  %s4128_s10 = smov 125  }
  0x63   : > { %v392_v5 = vadd.f32 %v391_v58, %v390_v62  ;;  %s5258_s22 = sld [smem:[#allocation7 + $0x5]]  ;;  %s4129_s18 = smov 124  }
  0x64   : > { %v363_v19 = vadd.f32 %v362_v63, %v361_v3  ;;  %s5263_s30 = sld [smem:[#allocation7 + $0x6]]  ;;  %s4130_s24 = smov 123  }
  0x65   : > { %v394_v20 = vadd.f32 %v393_v0, %v392_v5  ;;  %s4131_s21 = smov 122   ;;  %s5278_s9 = sld [smem:[#allocation7 + $0x32]] }
  0x66   : > { %v365_v25 = vadd.f32 %v364_v9, %v363_v19  ;;  %p7702_p0 = scmp.ne.s32.totalorder %s7492_s14, 0 }
  0x67   : > { %v396_v28 = vadd.f32 %v395_v13, %v394_v20  ;;  %v417_v13 = vsel %vm344_vm0, %v4326_v4, -inf  ;;  %v418_v20 = vsel %vm344_vm0, %v4337_v7, -inf }
  0x68   : > { %v367_v35 = vadd.f32 %v366_v21, %v365_v25  ;;  %v419_v21 = vsel %vm344_vm0, %v4346_v10, -inf }
  0x69   : > { %v398_v36 = vadd.f32 %v397_v22, %v396_v28  ;;  %v421_v22 = vsel %vm344_vm0, %v4352_v12, -inf  ;;  %v420_v25 = vmax.f32 %v417_v13, %v419_v21 }
  0x6a   : > { %v369_v43 = vadd.f32 %v368_v29, %v367_v35  ;;  %v422_v28 = vmax.f32 %v418_v20, %v421_v22  ;;  %v425_v35 = vsel %vm344_vm0, %v4383_v26, -inf  ;;  %v4567_v20 = vsel %vm344_vm0, %v4476_v23, -inf }
  0x6b   : > { %v400_v44 = vadd.f32 %v399_v30, %v398_v36  ;;  %v423_v30 = vsel %vm344_vm0, %v4365_v17, -inf  ;;  %v448_v36 = vsel %vm344_vm0, %v4334_v6, -inf  ;;  %v4573_v22 = vsel %vm344_vm0, %v4400_v34, -inf }
  0x6c   : > { %v371_v49 = vadd.f32 %v370_v37, %v369_v43  ;;  %v450_v37 = vsel %vm344_vm0, %v4349_v11, -inf  ;;  %v426_v43 = vmax.f32 %v422_v28, %v425_v35  ;;  %v4587_v35 = vsel %vm344_vm0, %v4428_v48, -inf }
  0x6d   : > { %v402_v50 = vadd.f32 %v401_v38, %v400_v44  ;;  %v424_v38 = vmax.f32 %v420_v25, %v423_v30  ;;  %v449_v44 = vsel %vm344_vm0, %v4340_v8, -inf  ;;  %v4583_v30 = vsel %vm344_vm0, %v4414_v41, -inf }
  0x6e   : > { %v373_v55 = vadd.f32 %v372_v45, %v371_v49  ;;  %v452_v45 = vsel %vm344_vm0, %v4362_v16, -inf  ;;  %v427_v49 = vsel %vm344_vm0, %v4397_v33, -inf }
  0x6f   : > { %v404_v56 = vadd.f32 %v403_v46, %v402_v50  ;;  %v429_v50 = vsel %vm344_vm0, %v4411_v40, -inf }
  0x70   : > { %v375_v57 = vadd.f32 %v374_v51, %v373_v55  ;;  %v451_v51 = vmax.f32 %v448_v36, %v450_v37  ;;  %v454_v55 = vsel %vm344_vm0, %v4368_v18, -inf }
  0x71   : > { %v406_v58 = vadd.f32 %v405_v52, %v404_v56  ;;  %v453_v52 = vmax.f32 %v449_v44, %v452_v45  ;;  %v428_v56 = vmax.f32 %v424_v38, %v427_v49 }
  0x72   : > { %v407_v61 = vsel %vm344_vm0, %v375_v57, 0.0  ;;  %v430_v57 = vmax.f32 %v426_v43, %v429_v50  ;;  %v4561_v13 = vmax.f32 %v451_v51, %v454_v55 }
  0x73   : > { %v408_v62 = vsel %vm344_vm0, %v406_v58, 0.0  ;;  %v431_v58 = vsel %vm344_vm0, %v4425_v47, -inf }
  0x74   : > { %v409_v63 = vadd.f32 %v408_v62, %v407_v61  ;;  %v456_v61 = vsel %vm344_vm0, %v4386_v27, -inf  ;;  %v433_v62 = vsel %vm344_vm0, %v4436_v53, -inf  ;;  %v4577_v28 = vmax.f32 %v428_v56, %v431_v58 }
  0x75   : > { %v4569_v21 = vmax.f32 %v453_v52, %v456_v61  ;;  %v4603_v52 = vsel %vm344_vm0, %v4439_v54, -inf }
  0x76   : > { %v410_v0 = vrot.slane %v409_v63, 4 }
  0x78   : > { %v411_v3 = vadd.f32 %v410_v0, %v409_v63  ;;  %v4547_v63 = vsel %vm344_vm0, %v4446_v59, -inf }
  0x7a   : > { %v412_v5 = vrot.slane %v411_v3, 2 }
  0x7c   : > { %v413_v9 = vadd.f32 %v412_v5, %v411_v3  ;;  %v4555_v5 = vsel %vm344_vm0, %v4456_v1, -inf }
  0x7e   : > { %v414_v19 = vrot.slane %v413_v9, 1 }
  0x80   : > { %v415_v29 = vadd.f32 %v414_v19, %v413_v9  ;;  %v4559_v9 = vsel %vm344_vm0, %v4466_v14, -inf }
  0x82   : > { %v4531_v46 = vmul.f32 0.00390625, %v415_v29  ;;  %v4579_v29 = vmax.f32 %v430_v57, %v433_v62  ;;  %v4609_v57 = vsel %vm344_vm0, %v4449_v60, -inf }
  0x84   : > { %v488_v0 = vsub.f32 %v4326_v4, %v4531_v46  ;;  %v490_v3 = vsub.f32 %v4337_v7, %v4531_v46  ;;  %v492_v19 = vsub.f32 %v4346_v10, %v4531_v46  ;;  %v494_v25 = vsub.f32 %v4352_v12, %v4531_v46 }
  0x85   : > { %v489_v36 = vsub.f32 %v4334_v6, %v4531_v46  ;;  %v496_v37 = vsub.f32 %v4365_v17, %v4531_v46  ;;  %v491_v45 = vsub.f32 %v4340_v8, %v4531_v46  ;;  %v493_v49 = vsub.f32 %v4349_v11, %v4531_v46 }
  0x86   : > { %v520_v38 = vmul.f32 %v488_v0, %v488_v0  ;;  %v522_v43 = vmul.f32 %v490_v3, %v490_v3  ;;  %v524_v50 = vmul.f32 %v492_v19, %v492_v19  ;;  %v498_v55 = vsub.f32 %v4383_v26, %v4531_v46 }
  0x87   : > { %v526_v56 = vmul.f32 %v494_v25, %v494_v25  ;;  %v495_v58 = vsub.f32 %v4362_v16, %v4531_v46  ;;  %v497_v61 = vsub.f32 %v4368_v18, %v4531_v46  ;;  %v500_v62 = vsub.f32 %v4397_v33, %v4531_v46 }
  0x88   : > { %v521_v0 = vmul.f32 %v489_v36, %v489_v36  ;;  %v528_v3 = vmul.f32 %v496_v37, %v496_v37  ;;  %v552_v19 = vsel %vm344_vm0, %v520_v38, 0.0  ;;  %v553_v51 = vsel %vm344_vm0, %v522_v43, 0.0 }
  0x89   : > { %v523_v25 = vmul.f32 %v491_v45, %v491_v45  ;;  %v525_v44 = vmul.f32 %v493_v49, %v493_v49  ;;  %v554_v26 = vadd.f32 %v553_v51, %v552_v19  ;;  %v555_v17 = vsel %vm344_vm0, %v524_v50, 0.0 }
  0x8a   : > { %v4622_v12 = vsel %vm344_vm0, %v4459_v2, -inf  ;;  %v502_v18 = vsub.f32 %v4411_v40, %v4531_v46  ;;  %v530_v16 = vmul.f32 %v498_v55, %v498_v55  ;;  %v557_v36 = vsel %vm344_vm0, %v526_v56, 0.0 }
  0x8b   : > { %v499_v37 = vsub.f32 %v4386_v27, %v4531_v46  ;;  %v501_v38 = vsub.f32 %v4400_v34, %v4531_v46  ;;  %v527_v43 = vmul.f32 %v495_v58, %v495_v58  ;;  %v556_v45 = vadd.f32 %v555_v17, %v554_v26 }
  0x8c   : > { %v504_v49 = vsub.f32 %v4425_v47, %v4531_v46  ;;  %v529_v50 = vmul.f32 %v497_v61, %v497_v61  ;;  %v532_v51 = vmul.f32 %v500_v62, %v500_v62  ;;  %v559_v19 = vsel %vm344_vm0, %v528_v3, 0.0 }
  0x8d   : > { %v558_v33 = vadd.f32 %v557_v36, %v556_v45  ;;  %v583_v55 = vsel %vm344_vm0, %v521_v0, 0.0  ;;  %v584_v56 = vsel %vm344_vm0, %v523_v25, 0.0  ;;  %v586_v40 = vsel %vm344_vm0, %v525_v44, 0.0 }
  0x8e   : > { %v506_v27 = vsub.f32 %v4436_v53, %v4531_v46  ;;  %v534_v34 = vmul.f32 %v502_v18, %v502_v18  ;;  %v561_v17 = vsel %vm344_vm0, %v530_v16, 0.0  ;;  %v585_v26 = vadd.f32 %v584_v56, %v583_v55 }
  0x8f   : > { %v503_v58 = vsub.f32 %v4414_v41, %v4531_v46  ;;  %v531_v61 = vmul.f32 %v499_v37, %v499_v37  ;;  %v560_v62 = vadd.f32 %v559_v19, %v558_v33  ;;  %v588_v3 = vsel %vm344_vm0, %v527_v43, 0.0 }
  0x90   : > { %v508_v0 = vsub.f32 %v4446_v59, %v4531_v46  ;;  %v536_v25 = vmul.f32 %v504_v49, %v504_v49  ;;  %v563_v44 = vsel %vm344_vm0, %v532_v51, 0.0  ;;  %v587_v36 = vadd.f32 %v586_v40, %v585_v26 }
  0x91   : > { %v505_v18 = vsub.f32 %v4428_v48, %v4531_v46  ;;  %v533_v45 = vmul.f32 %v501_v38, %v501_v38  ;;  %v562_v16 = vadd.f32 %v561_v17, %v560_v62  ;;  %v590_v55 = vsel %vm344_vm0, %v529_v50, 0.0 }
  0x92   : > { %v510_v37 = vsub.f32 %v4456_v1, %v4531_v46  ;;  %v538_v33 = vmul.f32 %v506_v27, %v506_v27  ;;  %v565_v43 = vsel %vm344_vm0, %v534_v34, 0.0  ;;  %v589_v19 = vadd.f32 %v588_v3, %v587_v36 }
  0x93   : > { %v507_v49 = vsub.f32 %v4439_v54, %v4531_v46  ;;  %v535_v56 = vmul.f32 %v503_v58, %v503_v58  ;;  %v564_v51 = vadd.f32 %v563_v44, %v562_v16  ;;  %v592_v40 = vsel %vm344_vm0, %v531_v61, 0.0 }
  0x94   : > { %v512_v38 = vsub.f32 %v4466_v14, %v4531_v46  ;;  %v540_v17 = vmul.f32 %v508_v0, %v508_v0  ;;  %v567_v50 = vsel %vm344_vm0, %v536_v25, 0.0  ;;  %v591_v26 = vadd.f32 %v590_v55, %v589_v19 }
  0x95   : > { %v509_v27 = vsub.f32 %v4449_v60, %v4531_v46  ;;  %v537_v62 = vmul.f32 %v505_v18, %v505_v18  ;;  %v566_v34 = vadd.f32 %v565_v43, %v564_v51  ;;  %v594_v3 = vsel %vm344_vm0, %v533_v45, 0.0 }
  0x96   : > { %v514_v58 = vsub.f32 %v4476_v23, %v4531_v46  ;;  %v542_v44 = vmul.f32 %v510_v37, %v510_v37  ;;  %v569_v61 = vsel %vm344_vm0, %v538_v33, 0.0  ;;  %v593_v36 = vadd.f32 %v592_v40, %v591_v26 }
  0x97   : > { %v511_v0 = vsub.f32 %v4459_v2, %v4531_v46  ;;  %v539_v16 = vmul.f32 %v507_v49, %v507_v49  ;;  %v568_v25 = vadd.f32 %v567_v50, %v566_v34  ;;  %v596_v55 = vsel %vm344_vm0, %v535_v56, 0.0 }
  0x98   : > { %v516_v18 = vsub.f32 %v4486_v31, %v4531_v46  ;;  %v544_v43 = vmul.f32 %v512_v38, %v512_v38  ;;  %v571_v45 = vsel %vm344_vm0, %v540_v17, 0.0  ;;  %v595_v19 = vadd.f32 %v594_v3, %v593_v36 }
  0x99   : > { %v513_v37 = vsub.f32 %v4469_v15, %v4531_v46  ;;  %v541_v51 = vmul.f32 %v509_v27, %v509_v27  ;;  %v570_v33 = vadd.f32 %v569_v61, %v568_v25  ;;  %v598_v40 = vsel %vm344_vm0, %v537_v62, 0.0 }
  0x9a   : > { %v515_v49 = vsub.f32 %v4479_v24, %v4531_v46  ;;  %v546_v50 = vmul.f32 %v514_v58, %v514_v58  ;;  %v573_v56 = vsel %vm344_vm0, %v542_v44, 0.0  ;;  %v597_v26 = vadd.f32 %v596_v55, %v595_v19 }
  0x9b   : > { %v518_v38 = vsub.f32 %v4496_v39, %v4531_v46  ;;  %v543_v34 = vmul.f32 %v511_v0, %v511_v0  ;;  %v572_v17 = vadd.f32 %v571_v45, %v570_v33  ;;  %v600_v3 = vsel %vm344_vm0, %v539_v16, 0.0 }
  0x9c   : > { %v7511_v27 = vmax.f32 %v4561_v13, %v4573_v22  ;;  %v548_v62 = vmul.f32 %v516_v18, %v516_v18  ;;  %v575_v36 = vsel %vm344_vm0, %v544_v43, 0.0  ;;  %v599_v25 = vadd.f32 %v598_v40, %v597_v26 }
  0x9d   : > { %v517_v58 = vsub.f32 %v4489_v32, %v4531_v46  ;;  %v545_v44 = vmul.f32 %v513_v37, %v513_v37  ;;  %v574_v55 = vadd.f32 %v573_v56, %v572_v17  ;;  %v602_v19 = vsel %vm344_vm0, %v541_v51, 0.0 }
  0x9e   : > { %v463_v61 = vmax.f32 %v7511_v27, %v4587_v35  ;;  %v7512_v0 = vmax.f32 %v4569_v21, %v4583_v30  ;;  %v519_v13 = vsub.f32 %v4499_v42, %v4531_v46  ;;  %v577_v22 = vsel %vm344_vm0, %v546_v50, 0.0 }
  0x9f   : > { %v601_v35 = vadd.f32 %v600_v3, %v599_v25  ;;  %v547_v18 = vmul.f32 %v515_v49, %v515_v49  ;;  %v550_v43 = vmul.f32 %v518_v38, %v518_v38  ;;  %v576_v45 = vadd.f32 %v575_v36, %v574_v55 }
  0xa0   : > { %v465_v16 = vmax.f32 %v7512_v0, %v4603_v52  ;;  %v604_v33 = vsel %vm344_vm0, %v543_v34, 0.0  ;;  %v436_v37 = vmax.f32 %v4577_v28, %v4547_v63  ;;  %v438_v51 = vmax.f32 %v4579_v29, %v4555_v5 }
  0xa1   : > { %v579_v21 = vsel %vm344_vm0, %v548_v62, 0.0  ;;  %v603_v30 = vadd.f32 %v602_v19, %v601_v35  ;;  %v470_v52 = vsel %vm344_vm0, %v4469_v15, -inf  ;;  %v549_v40 = vmul.f32 %v517_v58, %v517_v58 }
  0xa2   : > { %v578_v50 = vadd.f32 %v577_v22, %v576_v45  ;;  %v606_v49 = vsel %vm344_vm0, %v545_v44, 0.0  ;;  %v467_v56 = vmax.f32 %v463_v61, %v4609_v57  ;;  %v469_v26 = vmax.f32 %v465_v16, %v4622_v12 }
  0xa3   : > { %v472_v63 = vsel %vm344_vm0, %v4479_v24, -inf  ;;  %v605_v28 = vadd.f32 %v604_v33, %v603_v30  ;;  %v551_v38 = vmul.f32 %v519_v13, %v519_v13  ;;  %v581_v29 = vsel %vm344_vm0, %v550_v43, 0.0 }
  0xa4   : > { %v580_v5 = vadd.f32 %v579_v21, %v578_v50  ;;  %v608_v34 = vsel %vm344_vm0, %v547_v18, 0.0  ;;  %v443_v17 = vsel %vm344_vm0, %v4486_v31, -inf  ;;  %v440_v27 = vmax.f32 %v436_v37, %v4559_v9 }
  0xa5   : > { %v607_v3 = vadd.f32 %v606_v49, %v605_v28  ;;  %v442_v57 = vmax.f32 %v438_v51, %v4567_v20  ;;  %v445_v12 = vsel %vm344_vm0, %v4496_v39, -inf  ;;  %v610_v61 = vsel %vm344_vm0, %v549_v40, 0.0 }
  0xa6   : > { %v471_v62 = vmax.f32 %v467_v56, %v470_v52  ;;  %v473_v36 = vmax.f32 %v469_v26, %v472_v63  ;;  %v582_v25 = vadd.f32 %v581_v29, %v580_v5  ;;  %v474_v44 = vsel %vm344_vm0, %v4489_v32, -inf }
  0xa7   : > { %v609_v58 = vadd.f32 %v608_v34, %v607_v3  ;;  %v476_v55 = vsel %vm344_vm0, %v4499_v42, -inf  ;;  %v612_v19 = vsel %vm344_vm0, %v551_v38, 0.0  ;;  %v444_v0 = vmax.f32 %v440_v27, %v443_v17 }
  0xa8   : > { %v446_v20 = vmax.f32 %v442_v57, %v445_v12  ;;  %v475_v16 = vmax.f32 %v471_v62, %v474_v44  ;;  %v477_v13 = vmax.f32 %v473_v36, %v476_v55  ;;  %v614_v35 = vsel %vm344_vm0, %v582_v25, 0.0  ;;  %v640_v36 = vld [vmem:[%s7397_s3] sm:$0xf] }
  0xa9   : > { %v611_v9 = vadd.f32 %v610_v61, %v609_v58  ;;  %3918 = vmatpush3.msk.msra.mxu1 %vm735_vm5, %v640_v36  ;;  %v3778_v25 = vld [vmem:[%s7396_s2] ss:$0 sm:$0xff] }
  0xaa   : > { %v447_v45 = vmax.f32 %v444_v0, %v446_v20  ;;  %v478_v33 = vmax.f32 %v475_v16, %v477_v13  ;;  %v7531_v36 = vld [vmem:[#allocation16_spill] sm:$0xff] }
  0xab   : > { %v613_v22 = vadd.f32 %v612_v19, %v611_v9 }
  0xac   : > { %v479_v21 = vsel %vm344_vm0, %v447_v45, -inf  ;;  %v480_v30 = vsel %vm344_vm0, %v478_v33, -inf  ;;  %v819_v45 = vlaneseq }
  0xad   : > { %v615_v18 = vsel %vm344_vm0, %v613_v22, 0.0  ;;  %v481_v40 = vmax.f32 %v479_v21, %v480_v30 }
  0xae   : > { %v616_v43 = vadd.f32 %v615_v18, %v614_v35  ;;  %v4738_v33 = vshrl.u32 %v819_v45, 7 }
  0xaf   : > { %v482_v56 = vrot.slane %v481_v40, 4 }
  0xb0   : > { %v617_v37 = vrot.slane %v616_v43, 4  ;;  %7513 = vst [vmem:[#allocation21_spill] sm:$0xff] %v4738_v33 }
  0xb1   : > { %v483_v28 = vmax.f32 %v481_v40, %v482_v56 }
  0xb2   : > { %v618_v51 = vadd.f32 %v617_v37, %v616_v43  ;;  %v4741_v37 = vsub.s32 0, %v4738_v33 }
  0xb3   : > { %v484_v38 = vrot.slane %v483_v28, 2 }
  0xb4   : > { %v619_v52 = vrot.slane %v618_v51, 2  ;;  %7514 = vst [vmem:[#allocation22_spill] sm:$0xff] %v4741_v37 }
  0xb5   : > { %v485_v5 = vmax.f32 %v483_v28, %v484_v38  ;;  %v7521_v28 = vld [vmem:[#allocation13_spill] sm:$0xff] }
  0xb6   : > { %v620_v50 = vadd.f32 %v619_v52, %v618_v51 }
  0xb7   : > { %v486_v29 = vrot.slane %v485_v5, 1 }
  0xb8   : > { %v621_v49 = vrot.slane %v620_v50, 1 }
  0xb9   : > { %v487_v27 = vmax.f32 %v485_v5, %v486_v29  ;;  %v7523_v5 = vld [vmem:[#allocation12_spill] sm:$0xff] }
  0xba   : > { %v622_v26 = vadd.f32 %v621_v49, %v620_v50 }
  0xbc   : > { %v623_v63 = vmul.f32 0.00390625, %v622_v26 }
  0xbe   : > { %3992 = vrsqrt.f32 %v623_v63  ;;  %vm626_vm2 = vcmp.eq.f32.partialorder %v623_v63, inf  ;;  %v629_v17 = vand.u32 2147483648, %v623_v63  ;;  %vm628_vm3 = vcmp.eq.f32.partialorder %v623_v63, 0.0 }
  0xcb   : > { %v3993_v34 = vpop.eup %3992 }
  0xcc   : > { %v625_v3 = vmul.f32 %v3993_v34, %v623_v63  ;;  %v7525_v34 = vld [vmem:[#allocation15_spill] sm:$0xff] }
  0xce   : > { %v627_v57 = vsel %vm626_vm2, %v623_v63, %v625_v3  ;;  %v7527_v3 = vld [vmem:[#allocation14_spill] sm:$0xff]  ;;  %vm1299_vm2 = vcmask 154624  }
  0xcf   : > { %v630_v12 = vsel %vm628_vm3, %v629_v17, %v627_v57  ;;  %vm1705_vm3 = vcmask 1046528  }
  0xd0   : > { %v642_v61 = vadd.f32 %v630_v12, %v4531_v46  ;;  %v3780_v46 = vld [vmem:[%s7398_s4] ss:$0 sm:$0xff] }
  0xd2   : > { %v644_v62 = vsel %vm643_vm4, %v487_v27, %v642_v61  ;;  %v7529_v61 = vld [vmem:[#allocation17_spill] sm:$0xff]  ;;  %vm1992_vm4 = vcmask 1045504  }
  0xd3   : > { %3915 = vmatmul.mubr.msk.f32.vlgmr.msra.gmra.mxu0 %vm344_vm0, %v644_v62 }
 0x193   : > { %v720_v58 = vpop.f32.mrf.mxu0 }
 0x194   : > { %v721_v44 = vadd.f32 %v3778_v25, %v720_v58 }
 0x195   : > { %v3916_v55 = vpop.f32.mrf.mxu0 }
 0x196   : > { %v724_v19 = vmax.f32 %v721_v44, 0.0  ;;  %v7533_v55 = vld [vmem:[#allocation19_spill] sm:$0xff] }
 0x198   : > { %3920 = vmatmul.mubr.msk.f32.vlgmr.msra.gmra.mxu1 %vm731_vm6, %v724_v19  ;;  %vm2279_vm6 = vcmask 1044480  }
 0x258   : > { %v805_v9 = vpop.f32.mrf.mxu1 }
 0x259   : > { %v806_v0 = vadd.f32 %v3780_v46, %v805_v9  ;;  %v7535_v46 = vld [vmem:[#allocation18_spill] sm:$0xff] }
 0x25a   : > { %v3921_v20 = vpop.f32.mrf.mxu1 }
 0x25b   : > { %v810_v16 = vrot.slane %v806_v0, 1 }
 0x25d   : > { %v812_v13 = vadd.f32 %v810_v16, %v806_v0 }
 0x25f   : > { %v813_v22 = vsub.f32 0.0, %v812_v13  ;;  %v7538_v13 = vld [vmem:[#allocation20_spill] sm:$0xff] }
 0x261   : > { %v814_v35 = vmul.f32 1.442695, %v813_v22 }
 0x263   : > { %3994 = vpow2.f32 %v814_v35 }
 0x270   : > { %v3995_v18 = vpop.eup %3994 }
 0x271   : > { %v816_v43 = vadd.f32 1.0, %v3995_v18 }
 0x273   : > { %3996 = vrcp.f32 %v816_v43 }
 0x280   : > { %v3997_v51 = vpop.eup %3996 }
 0x281   : > { %v4744_v21 = vrot.slane %v3997_v51, %v4741_v37 }
 0x283   : > { %v4748_v30 = vmul.f32 %v4744_v21, %v4337_v7  ;;  %v4752_v52 = vmul.f32 %v4744_v21, %v4326_v4  ;;  %v4760_v49 = vmul.f32 %v4744_v21, %v4340_v8  ;;  %v4764_v56 = vmul.f32 %v4744_v21, %v4334_v6 }
 0x284   : > { %v4772_v26 = vmul.f32 %v4744_v21, %v4349_v11  ;;  %v4776_v8 = vmul.f32 %v4744_v21, %v4346_v10  ;;  %v4784_v38 = vmul.f32 %v4744_v21, %v7521_v28  ;;  %v4788_v11 = vmul.f32 %v4744_v21, %v7523_v5 }
 0x285   : > { %7515 = vst [vmem:[#allocation23_spill] sm:$0xff] %v4748_v30  ;;  %7516 = vst [vmem:[#allocation24_spill] sm:$0xff] %v4752_v52  ;;  %v861_v40 = vsel %vm344_vm0, %v4748_v30, -inf  ;;  %v855_v50 = vsel %vm344_vm0, %v4752_v52, -inf  ;;  %v864_v4 = vsel %vm344_vm0, %v4760_v49, -inf  ;;  %v858_v7 = vsel %vm344_vm0, %v4764_v56, -inf }
 0x286   : > { %7517 = vst [vmem:[#allocation25_spill] sm:$0xff] %v4760_v49  ;;  %7518 = vst [vmem:[#allocation26_spill] sm:$0xff] %v4764_v56  ;;  %862 = vmax.xlane.f32.xlu1 %v861_v40  ;;  %856 = vmax.xlane.f32.xlu0 %v855_v50  ;;  %v870_v6 = vsel %vm344_vm0, %v4772_v26, -inf  ;;  %v867_v63 = vsel %vm344_vm0, %v4776_v8, -inf  ;;  %v876_v10 = vsel %vm344_vm0, %v4784_v38, -inf  ;;  %v873_v29 = vsel %vm344_vm0, %v4788_v11, -inf }
 0x287   : > { %7519 = vst [vmem:[#allocation27_spill] sm:$0xff] %v4772_v26  ;;  %7520 = vst [vmem:[#allocation28_spill] sm:$0xff] %v4776_v8  ;;  %v4796_v17 = vmul.f32 %v4744_v21, %v7525_v34  ;;  %v4800_v27 = vmul.f32 %v4744_v21, %v7527_v3  ;;  %v4808_v62 = vmul.f32 %v4744_v21, %v7529_v61 }
 0x288   : > { %7522 = vst [vmem:[#allocation13_spill] sm:$0xff] %v4784_v38  ;;  %7524 = vst [vmem:[#allocation12_spill] sm:$0xff] %v4788_v11  ;;  %v4812_v25 = vmul.f32 %v4744_v21, %v7531_v36  ;;  %v4820_v19 = vmul.f32 %v4744_v21, %v7533_v55  ;;  %v4824_v9 = vmul.f32 %v4744_v21, %v7535_v46  ;;  %v951_v55 = vsel %vm344_vm0, %v4752_v52, 0.0 }
 0x289   : > { %7526 = vst [vmem:[#allocation15_spill] sm:$0xff] %v4796_v17  ;;  %7528 = vst [vmem:[#allocation14_spill] sm:$0xff] %v4800_v27  ;;  %v882_v57 = vsel %vm344_vm0, %v4796_v17, -inf  ;;  %v879_v12 = vsel %vm344_vm0, %v4800_v27, -inf  ;;  %v888_v58 = vsel %vm344_vm0, %v4808_v62, -inf  ;;  %v4832_v16 = vmul.f32 %v4744_v21, %v4414_v41 }
 0x28a   : > { %865 = vmax.xlane.f32.xlu1 %v864_v4  ;;  %859 = vmax.xlane.f32.xlu0 %v858_v7  ;;  %7530 = vst [vmem:[#allocation17_spill] sm:$0xff] %v4808_v62  ;;  %7532 = vst [vmem:[#allocation16_spill] sm:$0xff] %v4812_v25  ;;  %v885_v44 = vsel %vm344_vm0, %v4812_v25, -inf  ;;  %v894_v0 = vsel %vm344_vm0, %v4820_v19, -inf  ;;  %v891_v20 = vsel %vm344_vm0, %v4824_v9, -inf  ;;  %v4836_v22 = vmul.f32 %v4744_v21, %v7538_v13 }
 0x28b   : > { %7534 = vst [vmem:[#allocation19_spill] sm:$0xff] %v4820_v19  ;;  %7536 = vst [vmem:[#allocation18_spill] sm:$0xff] %v4824_v9  ;;  %v900_v35 = vsel %vm344_vm0, %v4832_v16, -inf  ;;  %v4844_v43 = vmul.f32 %v4744_v21, %v4428_v48  ;;  %v4848_v41 = vmul.f32 %v4744_v21, %v4425_v47  ;;  %v4856_v50 = vmul.f32 %v4744_v21, %v4439_v54 }
 0x28c   : > { %7537 = vst [vmem:[#allocation29_spill] sm:$0xff] %v4832_v16  ;;  %7539 = vst [vmem:[#allocation20_spill] sm:$0xff] %v4836_v22  ;;  %v897_v18 = vsel %vm344_vm0, %v4836_v22, -inf  ;;  %v4860_v48 = vmul.f32 %v4744_v21, %v4436_v53  ;;  %v4868_v7 = vmul.f32 %v4744_v21, %v4449_v60  ;;  %v4872_v54 = vmul.f32 %v4744_v21, %v4446_v59 }
 0x28d   : > { %7540 = vst [vmem:[#allocation30_spill] sm:$0xff] %v4844_v43  ;;  %7541 = vst [vmem:[#allocation31_spill] sm:$0xff] %v4848_v41  ;;  %v906_v51 = vsel %vm344_vm0, %v4844_v43, -inf  ;;  %v903_v40 = vsel %vm344_vm0, %v4848_v41, -inf  ;;  %v912_v47 = vsel %vm344_vm0, %v4856_v50, -inf  ;;  %v4884_v60 = vmul.f32 %v4744_v21, %v4456_v1 }
 0x28e   : > { %871 = vmax.xlane.f32.xlu1 %v870_v6  ;;  %868 = vmax.xlane.f32.xlu0 %v867_v63  ;;  %7542 = vst [vmem:[#allocation32_spill] sm:$0xff] %v4856_v50  ;;  %7543 = vst [vmem:[#allocation33_spill] sm:$0xff] %v4860_v48  ;;  %v909_v4 = vsel %vm344_vm0, %v4860_v48, -inf  ;;  %v918_v53 = vsel %vm344_vm0, %v4868_v7, -inf  ;;  %v915_v6 = vsel %vm344_vm0, %v4872_v54, -inf  ;;  %v4880_v63 = vmul.f32 %v4744_v21, %v4459_v2 }
 0x28f   : > { %7544 = vst [vmem:[#allocation34_spill] sm:$0xff] %v4868_v7  ;;  %7545 = vst [vmem:[#allocation35_spill] sm:$0xff] %v4872_v54  ;;  %v921_v28 = vsel %vm344_vm0, %v4884_v60, -inf  ;;  %v4892_v5 = vmul.f32 %v4744_v21, %v4469_v15  ;;  %v4896_v2 = vmul.f32 %v4744_v21, %v4466_v14  ;;  %v4908_v15 = vmul.f32 %v4744_v21, %v4476_v23 }
 0x290   : > { %7546 = vst [vmem:[#allocation36_spill] sm:$0xff] %v4880_v63  ;;  %7547 = vst [vmem:[#allocation37_spill] sm:$0xff] %v4884_v60  ;;  %v924_v59 = vsel %vm344_vm0, %v4880_v63, -inf  ;;  %v4916_v3 = vmul.f32 %v4744_v21, %v4489_v32  ;;  %v981_v32 = vsel %vm344_vm0, %v4812_v25, 0.0  ;;  %v987_v61 = vsel %vm344_vm0, %v4824_v9, 0.0 }
 0x291   : > { %7548 = vst [vmem:[#allocation38_spill] sm:$0xff] %v4892_v5  ;;  %7549 = vst [vmem:[#allocation39_spill] sm:$0xff] %v4896_v2  ;;  %v930_v1 = vsel %vm344_vm0, %v4892_v5, -inf  ;;  %v933_v34 = vsel %vm344_vm0, %v4908_v15, -inf  ;;  %v996_v36 = vsel %vm344_vm0, %v4832_v16, 0.0  ;;  %v960_v46 = vsel %vm344_vm0, %v4760_v49, 0.0 }
 0x292   : > { %877 = vmax.xlane.f32.xlu1 %v876_v10  ;;  %874 = vmax.xlane.f32.xlu0 %v873_v29  ;;  %v927_v10 = vsel %vm344_vm0, %v4896_v2, -inf  ;;  %v4904_v29 = vmul.f32 %v4744_v21, %v4479_v24  ;;  %7551 = vst [vmem:[#allocation41_spill] sm:$0xff] %v4908_v15  ;;  %7552 = vst [vmem:[#allocation42_spill] sm:$0xff] %v4916_v3  ;;  %v4920_v24 = vmul.f32 %v4744_v21, %v4486_v31 }
 0x293   : > { %v942_v23 = vsel %vm344_vm0, %v4916_v3, -inf  ;;  %v990_v31 = vsel %vm344_vm0, %v4820_v19, 0.0  ;;  %v999_v13 = vsel %vm344_vm0, %v4848_v41, 0.0 }
 0x294   : > { %7550 = vst [vmem:[#allocation40_spill] sm:$0xff] %v4904_v29  ;;  %v936_v14 = vsel %vm344_vm0, %v4904_v29, -inf  ;;  %7553 = vst [vmem:[#allocation43_spill] sm:$0xff] %v4920_v24 }
 0x296   : > { %883 = vmax.xlane.f32.xlu1 %v882_v57  ;;  %880 = vmax.xlane.f32.xlu0 %v879_v12  ;;  %v939_v57 = vsel %vm344_vm0, %v4920_v24, -inf  ;;  %v984_v12 = vsel %vm344_vm0, %v4808_v62, 0.0 }
 0x29a   : > { %889 = vmax.xlane.f32.xlu1 %v888_v58  ;;  %886 = vmax.xlane.f32.xlu0 %v885_v44  ;;  %v993_v58 = vsel %vm344_vm0, %v4836_v22, 0.0  ;;  %v954_v44 = vsel %vm344_vm0, %v4764_v56, 0.0 }
 0x29e   : > { %895 = vmax.xlane.f32.xlu1 %v894_v0  ;;  %892 = vmax.xlane.f32.xlu0 %v891_v20  ;;  %v957_v0 = vsel %vm344_vm0, %v4748_v30, 0.0  ;;  %v1002_v20 = vsel %vm344_vm0, %v4844_v43, 0.0 }
 0x2a2   : > { %901 = vmax.xlane.f32.xlu1 %v900_v35  ;;  %898 = vmax.xlane.f32.xlu0 %v897_v18  ;;  %v966_v35 = vsel %vm344_vm0, %v4772_v26, 0.0  ;;  %v963_v18 = vsel %vm344_vm0, %v4776_v8, 0.0 }
 0x2a6   : > { %907 = vmax.xlane.f32.xlu1 %v906_v51  ;;  %904 = vmax.xlane.f32.xlu0 %v903_v40  ;;  %v1008_v51 = vsel %vm344_vm0, %v4856_v50, 0.0  ;;  %v1005_v40 = vsel %vm344_vm0, %v4860_v48, 0.0 }
 0x2aa   : > { %913 = vmax.xlane.f32.xlu1 %v912_v47  ;;  %910 = vmax.xlane.f32.xlu0 %v909_v4  ;;  %v972_v47 = vsel %vm344_vm0, %v4784_v38, 0.0  ;;  %v969_v4 = vsel %vm344_vm0, %v4788_v11, 0.0 }
 0x2ae   : > { %919 = vmax.xlane.f32.xlu1 %v918_v53  ;;  %916 = vmax.xlane.f32.xlu0 %v915_v6  ;;  %v1014_v53 = vsel %vm344_vm0, %v4868_v7, 0.0  ;;  %v1011_v6 = vsel %vm344_vm0, %v4872_v54, 0.0 }
 0x2b2   : > { %925 = vmax.xlane.f32.xlu1 %v924_v59  ;;  %922 = vmax.xlane.f32.xlu0 %v921_v28  ;;  %v978_v59 = vsel %vm344_vm0, %v4796_v17, 0.0  ;;  %v975_v28 = vsel %vm344_vm0, %v4800_v27, 0.0 }
 0x2b6   : > { %931 = vmax.xlane.f32.xlu1 %v930_v1  ;;  %928 = vmax.xlane.f32.xlu0 %v927_v10  ;;  %v1020_v1 = vsel %vm344_vm0, %v4880_v63, 0.0  ;;  %v1017_v10 = vsel %vm344_vm0, %v4884_v60, 0.0 }
 0x2ba   : > { %937 = vmax.xlane.f32.xlu1 %v936_v14  ;;  %934 = vmax.xlane.f32.xlu0 %v933_v34  ;;  %v1026_v14 = vsel %vm344_vm0, %v4892_v5, 0.0  ;;  %v1023_v34 = vsel %vm344_vm0, %v4896_v2, 0.0 }
 0x2be   : > { %943 = vmax.xlane.f32.xlu1 %v942_v23  ;;  %940 = vmax.xlane.f32.xlu0 %v939_v57  ;;  %v1032_v23 = vsel %vm344_vm0, %v4904_v29, 0.0  ;;  %v1029_v57 = vsel %vm344_vm0, %v4908_v15, 0.0 }
 0x2c2   : > { %985 = vadd.xlane.f32.xlu1 %v984_v12  ;;  %982 = vadd.xlane.f32.xlu0 %v981_v32  ;;  %v1038_v12 = vsel %vm344_vm0, %v4916_v3, 0.0  ;;  %v1035_v32 = vsel %vm344_vm0, %v4920_v24, 0.0 }
 0x2c6   : > { %991 = vadd.xlane.f32.xlu1 %v990_v31  ;;  %988 = vadd.xlane.f32.xlu0 %v987_v61  ;;  %v4988_v31 = vmul.f32 %v4744_v21, %v4499_v42  ;;  %v4992_v61 = vmul.f32 %v4744_v21, %v4496_v39  ;;  %v1112_v39 = vand.u32 127, %v819_v45 }
 0x2c8   : > { %7554 = vst [vmem:[#allocation44_spill] sm:$0xff] %v4988_v31  ;;  %7555 = vst [vmem:[#allocation45_spill] sm:$0xff] %v4992_v61  ;;  %v1041_v42 = vsel %vm344_vm0, %v4992_v61, 0.0 }
 0x2ca   : > { %997 = vadd.xlane.f32.xlu1 %v996_v36  ;;  %994 = vadd.xlane.f32.xlu0 %v993_v58  ;;  %v948_v36 = vsel %vm344_vm0, %v4988_v31, -inf  ;;  %v945_v58 = vsel %vm344_vm0, %v4992_v61, -inf }
 0x2ce   : > { %955 = vadd.xlane.f32.xlu1 %v954_v44  ;;  %952 = vadd.xlane.f32.xlu0 %v951_v55  ;;  %v1044_v44 = vsel %vm344_vm0, %v4988_v31, 0.0 }
 0x2d2   : > { %961 = vadd.xlane.f32.xlu1 %v960_v46  ;;  %958 = vadd.xlane.f32.xlu0 %v957_v0  ;;  %v1117_v46 = vadd.s32 4294967288, %v1112_v39 }
 0x2d6   : > { %1003 = vadd.xlane.f32.xlu1 %v1002_v20  ;;  %1000 = vadd.xlane.f32.xlu0 %v999_v13  ;;  %v5004_v13 = vsub.s32 %v1117_v46, %v4738_v33 }
 0x2da   : > { %967 = vadd.xlane.f32.xlu1 %v966_v35  ;;  %964 = vadd.xlane.f32.xlu0 %v963_v18  ;;  %v5007_v35 = vsub.s32 %v1112_v39, %v4738_v33 }
 0x2de   : > { %1009 = vadd.xlane.f32.xlu1 %v1008_v51  ;;  %1006 = vadd.xlane.f32.xlu0 %v1005_v40 }
 0x2e2   : > { %973 = vadd.xlane.f32.xlu1 %v972_v47  ;;  %970 = vadd.xlane.f32.xlu0 %v969_v4 }
 0x2e6   : > { %1015 = vadd.xlane.f32.xlu1 %v1014_v53  ;;  %1012 = vadd.xlane.f32.xlu0 %v1011_v6 }
 0x2ea   : > { %979 = vadd.xlane.f32.xlu1 %v978_v59  ;;  %976 = vadd.xlane.f32.xlu0 %v975_v28 }
 0x2ee   : > { %1021 = vadd.xlane.f32.xlu1 %v1020_v1  ;;  %1018 = vadd.xlane.f32.xlu0 %v1017_v10 }
 0x2f2   : > { %1027 = vadd.xlane.f32.xlu1 %v1026_v14  ;;  %1024 = vadd.xlane.f32.xlu0 %v1023_v34 }
 0x2f6   : > { %1033 = vadd.xlane.f32.xlu1 %v1032_v23  ;;  %1030 = vadd.xlane.f32.xlu0 %v1029_v57 }
 0x2fa   : > { %1039 = vadd.xlane.f32.xlu1 %v1038_v12  ;;  %1036 = vadd.xlane.f32.xlu0 %v1035_v32 }
 0x2fe   : > { %949 = vmax.xlane.f32.xlu1 %v948_v36  ;;  %946 = vmax.xlane.f32.xlu0 %v945_v58 }
 0x302   : > { %1045 = vadd.xlane.f32.xlu1 %v1044_v44  ;;  %1042 = vadd.xlane.f32.xlu0 %v1041_v42 }
 0x30f   : > { %v863_v21 = vpop.xlane.xlu1 %862  ;;  %v857_v55 = vpop.xlane.xlu0 %856 }
 0x310   : > { %v1127_v53 = vrot.slane %v863_v21, %v5007_v35  ;;  %v1116_v6 = vrot.slane %v857_v55, %v5007_v35 }
 0x313   : > { %v866_v0 = vpop.xlane.xlu1 %865  ;;  %v860_v20 = vpop.xlane.xlu0 %859 }
 0x314   : > { %v1131_v40 = vrot.slane %v866_v0, %v5004_v13  ;;  %v1121_v47 = vrot.slane %v860_v20, %v5004_v13 }
 0x316   : > { %v1132_v14 = vsel %vm1122_vm7, %v1131_v40, %v1127_v53  ;;  %v1123_v34 = vsel %vm1122_vm7, %v1121_v47, %v1116_v6 }
 0x317   : > { %v872_v18 = vpop.xlane.xlu1 %871  ;;  %v869_v51 = vpop.xlane.xlu0 %868  ;;  %v1260_v36 = vsel %vm1259_vm8, %v1132_v14, %v1123_v34 }
 0x318   : > { %v1140_v45 = vrot.slane %v872_v18, %v5004_v13  ;;  %v1136_v4 = vrot.slane %v869_v51, %v5007_v35 }
 0x31a   : > { %v1141_v23 = vsel %vm1122_vm7, %v1140_v45, %v1136_v4 }
 0x31b   : > { %v878_v59 = vpop.xlane.xlu1 %877  ;;  %v875_v28 = vpop.xlane.xlu0 %874  ;;  %v1262_v42 = vsel %vm1261_vm9, %v1141_v23, %v1260_v36 }
 0x31c   : > { %v1149_v1 = vrot.slane %v878_v59, %v5004_v13  ;;  %v1145_v10 = vrot.slane %v875_v28, %v5007_v35 }
 0x31e   : > { %v1150_v57 = vsel %vm1122_vm7, %v1149_v1, %v1145_v10 }
 0x31f   : > { %v884_v12 = vpop.xlane.xlu1 %883  ;;  %v881_v32 = vpop.xlane.xlu0 %880  ;;  %v1264_v21 = vsel %vm1263_vm10, %v1150_v57, %v1262_v42 }
 0x320   : > { %v1158_v58 = vrot.slane %v884_v12, %v5004_v13  ;;  %v1154_v44 = vrot.slane %v881_v32, %v5007_v35 }
 0x322   : > { %v1159_v39 = vsel %vm1122_vm7, %v1158_v58, %v1154_v44 }
 0x323   : > { %v5027_v55 = vpop.xlane.xlu1 %889  ;;  %v5029_v46 = vpop.xlane.xlu0 %886  ;;  %v1266_v0 = vsel %vm1265_vm11, %v1159_v39, %v1264_v21 }
 0x324   : > { %v1282_v20 = vsel %vm1281_vm12, 0.0, %v1266_v0 }
 0x325   : > { %1286 = vrot.lane.b32.xlu0 %v1282_v20, %s4125_s12 }
 0x327   : > { %v5034_v18 = vpop.xlane.xlu1 %895  ;;  %v5036_v51 = vpop.xlane.xlu0 %892 }
 0x32b   : > { %v5038_v40 = vpop.xlane.xlu1 %901  ;;  %v5040_v47 = vpop.xlane.xlu0 %898 }
 0x32f   : > { %v5042_v45 = vpop.xlane.xlu1 %907  ;;  %v5044_v4 = vpop.xlane.xlu0 %904 }
 0x333   : > { %v5046_v53 = vpop.xlane.xlu1 %913  ;;  %v5048_v6 = vpop.xlane.xlu0 %910 }
 0x337   : > { %v5050_v59 = vpop.xlane.xlu1 %919  ;;  %v5052_v28 = vpop.xlane.xlu0 %916 }
 0x33b   : > { %v5054_v1 = vpop.xlane.xlu1 %925  ;;  %v5056_v10 = vpop.xlane.xlu0 %922 }
 0x33f   : > { %v5058_v14 = vpop.xlane.xlu1 %931  ;;  %v5060_v34 = vpop.xlane.xlu0 %928 }
 0x343   : > { %v5062_v23 = vpop.xlane.xlu1 %937  ;;  %v5064_v57 = vpop.xlane.xlu0 %934 }
 0x347   : > { %v5066_v12 = vpop.xlane.xlu1 %943  ;;  %v5068_v32 = vpop.xlane.xlu0 %940 }
 0x34b   : > { %v986_v36 = vpop.xlane.xlu1 %985  ;;  %v983_v58 = vpop.xlane.xlu0 %982 }
 0x34c   : > { %v1058_v22 = vmul.f32 0.015625, %v986_v36  ;;  %v1057_v16 = vmul.f32 0.015625, %v983_v58 }
 0x34f   : > { %v992_v44 = vpop.xlane.xlu1 %991  ;;  %v989_v42 = vpop.xlane.xlu0 %988 }
 0x350   : > { %v1060_v54 = vmul.f32 0.015625, %v992_v44  ;;  %v1059_v7 = vmul.f32 0.015625, %v989_v42 }
 0x352   : > { %v1396_v25 = vrot.slane %v1060_v54, %v5004_v13  ;;  %v1392_v62 = vrot.slane %v1059_v7, %v5007_v35  ;;  %v1387_v54 = vrot.slane %v1058_v22, %v5004_v13  ;;  %v1383_v7 = vrot.slane %v1057_v16, %v5007_v35 }
 0x353   : > { %v998_v39 = vpop.xlane.xlu1 %997  ;;  %v995_v21 = vpop.xlane.xlu0 %994 }
 0x354   : > { %v1062_v41 = vmul.f32 0.015625, %v998_v39  ;;  %v1061_v43 = vmul.f32 0.015625, %v995_v21  ;;  %v1176_v39 = vrot.slane %v5034_v18, %v5004_v13 }
 0x356   : > { %v1405_v36 = vrot.slane %v1062_v41, %v5004_v13 }
 0x357   : > { %v5070_v0 = vpop.xlane.xlu1 %955  ;;  %v5072_v20 = vpop.xlane.xlu0 %952 }
 0x35b   : > { %v5074_v61 = vpop.xlane.xlu1 %961  ;;  %v5076_v31 = vpop.xlane.xlu0 %958 }
 0x35f   : > { %v1004_v24 = vpop.xlane.xlu1 %1003  ;;  %v1001_v3 = vpop.xlane.xlu0 %1000 }
 0x360   : > { %v1064_v9 = vmul.f32 0.015625, %v1004_v24  ;;  %v1063_v19 = vmul.f32 0.015625, %v1001_v3  ;;  %v1401_v3 = vrot.slane %v1061_v43, %v5007_v35 }
 0x363   : > { %v5078_v15 = vpop.xlane.xlu1 %967  ;;  %v5080_v29 = vpop.xlane.xlu0 %964 }
 0x367   : > { %v1010_v2 = vpop.xlane.xlu1 %1009  ;;  %v1007_v5 = vpop.xlane.xlu0 %1006 }
 0x368   : > { %v1066_v27 = vmul.f32 0.015625, %v1010_v2  ;;  %v1065_v17 = vmul.f32 0.015625, %v1007_v5  ;;  %v1414_v5 = vrot.slane %v1064_v9, %v5004_v13  ;;  %v1410_v2 = vrot.slane %v1063_v19, %v5007_v35 }
 0x369   : > { %v1167_v19 = vrot.slane %v5027_v55, %v5004_v13  ;;  %v1406_v9 = vsel %vm1122_vm7, %v1405_v36, %v1401_v3 }
 0x36a   : > { %v1423_v24 = vrot.slane %v1066_v27, %v5004_v13  ;;  %v1419_v18 = vrot.slane %v1065_v17, %v5007_v35  ;;  %v1415_v27 = vsel %vm1122_vm7, %v1414_v5, %v1410_v2  ;;  %v1185_v5 = vrot.slane %v5038_v40, %v5004_v13 }
 0x36b   : > { %v5082_v60 = vpop.xlane.xlu1 %973  ;;  %v5084_v63 = vpop.xlane.xlu0 %970  ;;  %v1203_v40 = vrot.slane %v5046_v53, %v5004_v13 }
 0x36c   : > { %v1424_v55 = vsel %vm1122_vm7, %v1423_v24, %v1419_v18 }
 0x36f   : > { %v1016_v48 = vpop.xlane.xlu1 %1015  ;;  %v1013_v50 = vpop.xlane.xlu0 %1012 }
 0x370   : > { %v1068_v44 = vmul.f32 0.015625, %v1016_v48  ;;  %v1067_v42 = vmul.f32 0.015625, %v1013_v50  ;;  %v1172_v48 = vrot.slane %v5036_v51, %v5007_v35  ;;  %v1397_v50 = vsel %vm1122_vm7, %v1396_v25, %v1392_v62 }
 0x371   : > { %v1388_v62 = vsel %vm1122_vm7, %v1387_v54, %v1383_v7  ;;  %v1163_v51 = vrot.slane %v5029_v46, %v5007_v35  ;;  %v1181_v46 = vrot.slane %v5040_v47, %v5007_v35  ;;  %v1199_v47 = vrot.slane %v5048_v6, %v5007_v35 }
 0x372   : > { %v1432_v43 = vrot.slane %v1068_v44, %v5004_v13  ;;  %v1428_v22 = vrot.slane %v1067_v42, %v5007_v35  ;;  %v1177_v44 = vsel %vm1122_vm7, %v1176_v39, %v1172_v48  ;;  %v1483_v42 = vsel %vm1267_vm13, %v1397_v50, %v1388_v62 }
 0x373   : > { %v5088_v11 = vpop.xlane.xlu1 %979  ;;  %v5090_v38 = vpop.xlane.xlu0 %976  ;;  %v1484_v36 = vsel %vm1269_vm14, %v1406_v9, %v1483_v42  ;;  %v1194_v48 = vrot.slane %v5042_v45, %v5004_v13  ;;  %v1248_v45 = vrot.slane %v5066_v12, %v5004_v13  ;;  %v1244_v9 = vrot.slane %v5068_v32, %v5007_v35 }
 0x374   : > { %v1433_v3 = vsel %vm1122_vm7, %v1432_v43, %v1428_v22  ;;  %v1485_v39 = vsel %vm1271_vm15, %v1415_v27, %v1484_v36  ;;  %v1190_v43 = vrot.slane %v5044_v4, %v5007_v35  ;;  %v1168_v53 = vsel %vm1122_vm7, %v1167_v19, %v1163_v51 }
 0x375   : > { %v1486_v18 = vsel %vm1259_vm8, %v1424_v55, %v1485_v39  ;;  %v1239_v6 = vrot.slane %v5062_v23, %v5004_v13  ;;  %v5153_v12 = vsel %vm1267_vm13, %v1177_v44, %v1168_v53  ;;  %v1186_v32 = vsel %vm1122_vm7, %v1185_v5, %v1181_v46 }
 0x376   : > { %v5157_v55 = vsel %vm1122_vm7, %v1194_v48, %v1190_v43  ;;  %v5160_v19 = vsel %vm1122_vm7, %v1203_v40, %v1199_v47  ;;  %v1212_v23 = vrot.slane %v5050_v59, %v5004_v13  ;;  %v1208_v51 = vrot.slane %v5052_v28, %v5007_v35 }
 0x377   : > { %v1022_v41 = vpop.xlane.xlu1 %1021  ;;  %v1019_v58 = vpop.xlane.xlu0 %1018  ;;  %v1221_v44 = vrot.slane %v5054_v1, %v5004_v13  ;;  %v1217_v36 = vrot.slane %v5056_v10, %v5007_v35  ;;  %v1050_v10 = vmul.f32 0.015625, %v5074_v61  ;;  %v1054_v43 = vmul.f32 0.015625, %v5082_v60 }
 0x378   : > { %v1070_v16 = vmul.f32 0.015625, %v1022_v41  ;;  %v1069_v21 = vmul.f32 0.015625, %v1019_v58  ;;  %v1056_v40 = vmul.f32 0.015625, %v5088_v11 }
 0x37a   : > { %v1441_v17 = vrot.slane %v1070_v16, %v5004_v13  ;;  %v1437_v25 = vrot.slane %v1069_v21, %v5007_v35  ;;  %v1487_v21 = vsel %vm1261_vm9, %v1433_v3, %v1486_v18  ;;  %v1230_v3 = vrot.slane %v5058_v14, %v5004_v13 }
 0x37b   : > { %v1028_v41 = vpop.xlane.xlu1 %1027  ;;  %v1025_v58 = vpop.xlane.xlu0 %1024  ;;  %v1051_v18 = vmul.f32 0.015625, %v5080_v29 }
 0x37c   : > { %v1072_v54 = vmul.f32 0.015625, %v1028_v41  ;;  %v1071_v7 = vmul.f32 0.015625, %v1025_v58  ;;  %v1442_v2 = vsel %vm1122_vm7, %v1441_v17, %v1437_v25  ;;  %v1235_v17 = vrot.slane %v5064_v57, %v5007_v35 }
 0x37d   : > { %v1488_v4 = vsel %vm1263_vm10, %v1442_v2, %v1487_v21  ;;  %v1249_v57 = vsel %vm1122_vm7, %v1248_v45, %v1244_v9  ;;  %v1047_v2 = vmul.f32 0.015625, %v5072_v20  ;;  %v1053_v20 = vmul.f32 0.015625, %v5084_v63 }
 0x37e   : > { %v1450_v50 = vrot.slane %v1072_v54, %v5004_v13  ;;  %v1446_v24 = vrot.slane %v1071_v7, %v5007_v35  ;;  %v1226_v54 = vrot.slane %v5060_v34, %v5007_v35  ;;  %v1240_v59 = vsel %vm1122_vm7, %v1239_v6, %v1235_v17 }
 0x37f   : > { %v1034_v22 = vpop.xlane.xlu1 %1033  ;;  %v1031_v16 = vpop.xlane.xlu0 %1030  ;;  %v1048_v7 = vmul.f32 0.015625, %v5070_v0  ;;  %v1277_v1 = vsel %vm1267_vm13, %v1249_v57, %v1240_v59  ;;  %v1049_v34 = vmul.f32 0.015625, %v5076_v31  ;;  %v1055_v21 = vmul.f32 0.015625, %v5090_v38 }
 0x380   : > { %v1451_v62 = vsel %vm1122_vm7, %v1450_v50, %v1446_v24  ;;  %v1074_v5 = vmul.f32 0.015625, %v1034_v22  ;;  %v1073_v28 = vmul.f32 0.015625, %v1031_v16  ;;  %v1052_v50 = vmul.f32 0.015625, %v5078_v15 }
 0x381   : > { %v1489_v27 = vsel %vm1265_vm11, %v1451_v62, %v1488_v4  ;;  %v1342_v63 = vrot.slane %v1048_v7, %v5004_v13  ;;  %v1351_v9 = vrot.slane %v1050_v10, %v5004_v13  ;;  %v1347_v11 = vrot.slane %v1049_v34, %v5007_v35 }
 0x382   : > { %1500 = vrot.lane.b32.xlu0 %v1489_v27, %s4125_s12  ;;  %v1459_v47 = vrot.slane %v1074_v5, %v5004_v13  ;;  %v1455_v31 = vrot.slane %v1073_v28, %v5007_v35  ;;  %v1360_v4 = vrot.slane %v1052_v50, %v5004_v13  ;;  %v1356_v27 = vrot.slane %v1051_v18, %v5007_v35 }
 0x383   : > { %v1040_v25 = vpop.xlane.xlu1 %1039  ;;  %v1037_v42 = vpop.xlane.xlu0 %1036  ;;  %v1338_v6 = vrot.slane %v1047_v2, %v5007_v35  ;;  %v1369_v17 = vrot.slane %v1054_v43, %v5004_v13  ;;  %v1378_v57 = vrot.slane %v1056_v40, %v5004_v13  ;;  %v1270_v7 = vsel %vm1269_vm14, %v1186_v32, %v5153_v12 }
 0x384   : > { %v1076_v41 = vmul.f32 0.015625, %v1040_v25  ;;  %v1075_v58 = vmul.f32 0.015625, %v1037_v42  ;;  %v1365_v25 = vrot.slane %v1053_v20, %v5007_v35  ;;  %v1460_v42 = vsel %vm1122_vm7, %v1459_v47, %v1455_v31 }
 0x385   : > { %v1213_v5 = vsel %vm1122_vm7, %v1212_v23, %v1208_v51  ;;  %v1352_v28 = vsel %vm1122_vm7, %v1351_v9, %v1347_v11  ;;  %v1343_v2 = vsel %vm1122_vm7, %v1342_v63, %v1338_v6  ;;  %v1231_v12 = vsel %vm1122_vm7, %v1230_v3, %v1226_v54 }
 0x386   : > { %v1468_v0 = vrot.slane %v1076_v41, %v5004_v13  ;;  %v1464_v24 = vrot.slane %v1075_v58, %v5007_v35  ;;  %v1374_v41 = vrot.slane %v1055_v21, %v5007_v35  ;;  %v1370_v23 = vsel %vm1122_vm7, %v1369_v17, %v1365_v25 }
 0x387   : > { %v950_v46 = vpop.xlane.xlu1 %949  ;;  %v947_v39 = vpop.xlane.xlu0 %946  ;;  %v1558_v18 = vstv %s5231_s5  ;;  %v1586_v20 = vstv %s5243_s19  ;;  %v1614_v40 = vstv %s5253_s25  ;;  %v1642_v31 = vstv %s5258_s22  ;;  %s5300_s5 = sld [smem:[#allocation7 + $0x35]] }
 0x388   : > { %v1257_v48 = vrot.slane %v950_v46, %v5004_v13  ;;  %v1253_v14 = vrot.slane %v947_v39, %v5007_v35  ;;  %v1469_v62 = vsel %vm1122_vm7, %v1468_v0, %v1464_v24  ;;  %v1272_v39 = vsel %vm1271_vm15, %v5157_v55, %v1270_v7  ;;  %s5307_s19 = sld [smem:[#allocation7 + $0x36]] }
 0x389   : > { %v1490_v59 = vsel %vm1267_vm13, %v1469_v62, %v1460_v42  ;;  %v1273_v32 = vsel %vm1259_vm8, %v5160_v19, %v1272_v39  ;;  %v1379_v51 = vsel %vm1122_vm7, %v1378_v57, %v1374_v41  ;;  %s3798_s25 = sld [smem:[#allocation7 + $0x8]] }
 0x38a   : > { %v1258_v61 = vsel %vm1122_vm7, %v1257_v48, %v1253_v14  ;;  %v1274_v55 = vsel %vm1261_vm9, %v1213_v5, %v1273_v32  ;;  %v1530_v14 = vstv %s5209_s17  ;;  %s5293_s17 = sld [smem:[#allocation7 + $0x34]] }
 0x38b   : > { %v1046_v22 = vpop.xlane.xlu1 %1045  ;;  %v1043_v15 = vpop.xlane.xlu0 %1042  ;;  %v1278_v16 = vsel %vm1269_vm14, %v1258_v61, %v1277_v1  ;;  %v1222_v1 = vsel %vm1122_vm7, %v1221_v44, %v1217_v36  ;;  %v1479_v44 = vsel %vm1259_vm8, %v1352_v28, %v1343_v2  ;;  %s5314_s22 = sld [smem:[#allocation7 + $0x37]] }
 0x38c   : > { %v1078_v45 = vmul.f32 0.015625, %v1046_v22  ;;  %v1077_v29 = vmul.f32 0.015625, %v1043_v15  ;;  %v1283_v60 = vsel %vm1281_vm12, %v1278_v16, 0.0  ;;  %v1275_v36 = vsel %vm1263_vm10, %v1222_v1, %v1274_v55 }
 0x38d   : > { %1290 = vrot.lane.b32.xlu1 %v1283_v60, %s4125_s12  ;;  %v1276_v54 = vsel %vm1265_vm11, %v1231_v12, %v1275_v36  ;;  %v1670_v15 = vstv %s5263_s30  ;;  %s3800_s30 = sld [smem:[#allocation7 + $0x9]] }
 0x38e   : > { %v1477_v38 = vrot.slane %v1078_v45, %v5004_v13  ;;  %v1473_v53 = vrot.slane %v1077_v29, %v5007_v35  ;;  %v1361_v13 = vsel %vm1122_vm7, %v1360_v4, %v1356_v27  ;;  %v1543_v27 = vstv %s5278_s9  ;;  %s3796_s9 = sld [smem:[#allocation7 + $0x7]] }
 0x38f   : > { %v1480_v3 = vsel %vm1261_vm9, %v1361_v13, %v1479_v44 }
 0x390   : > { %v1478_v58 = vsel %vm1122_vm7, %v1477_v38, %v1473_v53  ;;  %v1481_v19 = vsel %vm1263_vm10, %v1370_v23, %v1480_v3  ;;  %v1599_v42 = vstv %s5293_s17  ;;  %s3804_s17 = sld [smem:[#allocation7 + $0xb]]  ;;  %vm3138_vm7 = vcmask 1041408  }
 0x391   : > { %v1491_v46 = vsel %vm1269_vm14, %v1478_v58, %v1490_v59  ;;  %v1482_v48 = vsel %vm1265_vm11, %v1379_v51, %v1481_v19  ;;  %v1627_v59 = vstv %s5300_s5  ;;  %v1683_v12 = vstv %s5314_s22  ;;  %s3806_s5 = sld [smem:[#allocation7 + $0xc]] }
 0x392   : > { %v1495_v35 = vsel %vm1281_vm12, %v1491_v46, 0.0  ;;  %v1494_v0 = vsel %vm1281_vm12, 0.0, %v1482_v48  ;;  %v1655_v46 = vstv %s5307_s19  ;;  %s3808_s19 = sld [smem:[#allocation7 + $0xd]] }
 0x393   : > { %1502 = vrot.lane.b32.xlu1 %v1495_v35, %s4125_s12  ;;  %v5324_v35 = vstv %s3798_s25  ;;  %v5340_v51 = vstv %s3800_s30  ;;  %s3812_s25 = sld [smem:[#allocation7 + $0xf]] }
 0x394   : > { %v5347_v3 = vstv %s3796_s9  ;;  %s3814_s22 = sld [smem:[#allocation7 + $0x10]] }
 0x395   : > { %s3816_s30 = sld [smem:[#allocation7 + $0x11]] }
 0x396   : > { %s3818_s9 = sld [smem:[#allocation7 + $0x12]] }
 0x397   : > { %1288 = vrot.lane.b32.xlu1 %v1276_v54, %s4125_s12  ;;  %v1287_v10 = vpop.permute.xlu0 %1286 }
 0x398   : > { %v1296_v34 = vsel %vm1295_vm1, 0.0, %v1287_v10 }
 0x399   : > { %v5247_v50 = vsel %vm1299_vm2, %v1296_v34, 0.0 }
 0x39a   : > { %v1531_v24 = vmul.f32 %v1530_v14, %v5247_v50  ;;  %v1559_v43 = vmul.f32 %v1558_v18, %v5247_v50  ;;  %v1587_v61 = vmul.f32 %v1586_v20, %v5247_v50  ;;  %v1615_v47 = vmul.f32 %v1614_v40, %v5247_v50 }
 0x39b   : > { %1498 = vrot.lane.b32.xlu1 %v1494_v0, %s4125_s12  ;;  %v1643_v22 = vmul.f32 %v1642_v31, %v5247_v50  ;;  %v1671_v16 = vmul.f32 %v1670_v15, %v5247_v50  ;;  %s5284_s12 = sld [smem:[#allocation7 + $0x33]]  ;;  %v1734_v32 = vmul.f32 %v5324_v35, %v5247_v50  ;;  %v1776_v19 = vmul.f32 %v5340_v51, %v5247_v50 }
 0x39c   : > { %1535 = vrot.lane.b32.xlu0 %v1531_v24, %s4126_s16 }
 0x39d   : > { %v1740_v54 = vrot.slane %v1734_v32, 1 }
 0x3a0   : > { %1563 = vrot.lane.b32.xlu0 %v1559_v43, %s4127_s13 }
 0x3a1   : > { %v1571_v6 = vstv %s5284_s12  ;;  %s3802_s12 = sld [smem:[#allocation7 + $0xa]] }
 0x3a4   : > { %1591 = vrot.lane.b32.xlu0 %v1587_v61, %s4128_s10 }
 0x3a7   : > { %v5354_v48 = vstv %s3802_s12  ;;  %s3820_s12 = sld [smem:[#allocation7 + $0x13]] }
 0x3a8   : > { %1619 = vrot.lane.b32.xlu0 %v1615_v47, %s4129_s18  ;;  %v1818_v43 = vmul.f32 %v5354_v48, %v5247_v50 }
 0x3ac   : > { %1647 = vrot.lane.b32.xlu0 %v1643_v22, %s4130_s24 }
 0x3b0   : > { %1675 = vrot.lane.b32.xlu0 %v1671_v16, %s4131_s21 }
 0x3f4   : > { %v1501_v58 = vpop.permute.xlu0 %1500 }
 0x3f5   : > { %v1508_v28 = vsel %vm1295_vm1, 0.0, %v1501_v58 }
 0x3f6   : > { %v5327_v1 = vsel %vm1299_vm2, %v1508_v28, 0.0 }
 0x3f7   : > { %v1545_v55 = vmul.f32 %v1543_v27, %v5327_v1  ;;  %v1573_v10 = vmul.f32 %v1571_v6, %v5327_v1  ;;  %v1601_v61 = vmul.f32 %v1599_v42, %v5327_v1 }
 0x3ff   : > { %v5274_v21 = vpop.permute.xlu1 %1290 }
 0x405   : > { %v5276_v45 = vpop.permute.xlu1 %1502 }
 0x409   : > { %v1289_v29 = vpop.permute.xlu1 %1288 }
 0x40a   : > { %v1297_v60 = vsel %vm1295_vm1, 0.0, %v1289_v29  ;;  %v1824_v29 = vrot.slane %v1818_v43, 1 }
 0x40b   : > { %v5282_v63 = vsel %vm1299_vm2, %v1297_v60, 0.0 }
 0x40c   : > { %v1532_v9 = vmul.f32 %v1530_v14, %v5282_v63  ;;  %v1560_v38 = vmul.f32 %v1558_v18, %v5282_v63  ;;  %v1588_v17 = vmul.f32 %v1586_v20, %v5282_v63  ;;  %v1616_v57 = vmul.f32 %v1614_v40, %v5282_v63 }
 0x40d   : > { %v1499_v11 = vpop.permute.xlu1 %1498  ;;  %v1644_v7 = vmul.f32 %v1642_v31, %v5282_v63  ;;  %v1672_v39 = vmul.f32 %v1670_v15, %v5282_v63  ;;  %v5331_v2 = vmul.f32 %v5324_v35, %v5282_v63  ;;  %v5345_v36 = vmul.f32 %v5340_v51, %v5282_v63 }
 0x40e   : > { %v1507_v62 = vsel %vm1295_vm1, 0.0, %v1499_v11  ;;  %1537 = vrot.lane.b32.xlu1 %v1532_v9, %s4126_s16  ;;  %v1699_v14 = vmul.f32 %v5347_v3, %v5247_v50  ;;  %v5364_v24 = vmul.f32 %v5354_v48, %v5282_v63  ;;  %v1782_v18 = vrot.slane %v1776_v19, 1 }
 0x40f   : > { %v5290_v4 = vsel %vm1299_vm2, %v1507_v62, 0.0  ;;  %v1741_v44 = vrot.slane %v5331_v2, 1  ;;  %v1783_v0 = vrot.slane %v5345_v36, 1  ;;  %v5372_v20 = vmul.f32 %v5347_v3, %v5282_v63 }
 0x410   : > { %v1544_v53 = vmul.f32 %v1543_v27, %v5290_v4  ;;  %v1572_v25 = vmul.f32 %v1571_v6, %v5290_v4  ;;  %v1600_v41 = vmul.f32 %v1599_v42, %v5290_v4  ;;  %v1628_v5 = vmul.f32 %v1627_v59, %v5290_v4 }
 0x411   : > { %v1656_v13 = vmul.f32 %v1655_v46, %v5290_v4  ;;  %v1684_v23 = vmul.f32 %v1683_v12, %v5290_v4  ;;  %v1742_v34 = vsel %vm1705_vm3, %v1740_v54, %v1741_v44  ;;  %v5375_v40 = vstv %s3804_s17  ;;  %s3822_s17 = sld [smem:[#allocation7 + $0x14]] }
 0x412   : > { %1565 = vrot.lane.b32.xlu1 %v1560_v38, %s4127_s13  ;;  %1548 = vrot.lane.b32.xlu0 %v1544_v53, %s4126_s16  ;;  %v1706_v47 = vrot.slane %v1699_v14, 1  ;;  %v1784_v31 = vsel %vm1705_vm3, %v1782_v18, %v1783_v0  ;;  %v1825_v22 = vrot.slane %v5364_v24, 1  ;;  %v5383_v15 = vmul.f32 %v5375_v40, %v5282_v63 }
 0x413   : > { %v7441_v16 = vrot.slane %v5372_v20, 1  ;;  %v1860_v60 = vmul.f32 %v5375_v40, %v5247_v50  ;;  %v1629_v11 = vmul.f32 %v1627_v59, %v5327_v1  ;;  %v5396_v62 = vstv %s3806_s5  ;;  %s3826_s5 = sld [smem:[#allocation7 + $0x16]] }
 0x414   : > { %v1298_v27 = vsel %vm1295_vm1, 0.0, %v5274_v21  ;;  %v1826_v38 = vsel %vm1705_vm3, %v1824_v29, %v1825_v22  ;;  %v1867_v53 = vrot.slane %v5383_v15, 1  ;;  %v5406_v6 = vmul.f32 %v5396_v62, %v5282_v63 }
 0x415   : > { %v5393_v9 = vsel %vm1705_vm3, %v1706_v47, %v7441_v16  ;;  %v5413_v21 = vsel %vm1299_vm2, %v1298_v27, 0.0  ;;  %v1657_v42 = vmul.f32 %v1655_v46, %v5327_v1  ;;  %v1685_v46 = vmul.f32 %v1683_v12, %v5327_v1 }
 0x416   : > { %1593 = vrot.lane.b32.xlu1 %v1588_v17, %s4128_s10  ;;  %1576 = vrot.lane.b32.xlu0 %v1572_v25, %s4127_s13  ;;  %v1866_v17 = vrot.slane %v1860_v60, 1  ;;  %v1902_v25 = vmul.f32 %v5396_v62, %v5247_v50  ;;  %v1909_v58 = vrot.slane %v5406_v6, 1  ;;  %v1736_v28 = vmul.f32 %v5324_v35, %v5413_v21 }
 0x417   : > { %v1778_v54 = vmul.f32 %v5340_v51, %v5413_v21  ;;  %v5449_v19 = vstv %s3814_s22  ;;  %v1820_v2 = vmul.f32 %v5354_v48, %v5413_v21  ;;  %v1862_v36 = vmul.f32 %v5375_v40, %v5413_v21  ;;  %s3832_s22 = sld [smem:[#allocation7 + $0x19]] }
 0x418   : > { %v5460_v18 = vmul.f32 %v5449_v19, %v5282_v63  ;;  %v1904_v24 = vmul.f32 %v5396_v62, %v5413_v21 }
 0x419   : > { %v1785_v43 = vrot.slane %v1778_v54, 1 }
 0x41a   : > { %1621 = vrot.lane.b32.xlu1 %v1616_v57, %s4129_s18  ;;  %1604 = vrot.lane.b32.xlu0 %v1600_v41, %s4128_s10  ;;  %v5416_v57 = vstv %s3808_s19  ;;  %v1868_v41 = vsel %vm1705_vm3, %v1866_v17, %v1867_v53  ;;  %v2070_v29 = vrot.slane %v5460_v18, 2  ;;  %s3828_s19 = sld [smem:[#allocation7 + $0x17]] }
 0x41b   : > { %v5424_v59 = vmul.f32 %v5416_v57, %v5282_v63  ;;  %v1946_v15 = vmul.f32 %v5416_v57, %v5413_v21 }
 0x41d   : > { %v1951_v32 = vrot.slane %v5424_v59, 1  ;;  %v2065_v59 = vmul.f32 %v5449_v19, %v5413_v21 }
 0x41e   : > { %1649 = vrot.lane.b32.xlu1 %v1644_v7, %s4130_s24  ;;  %1632 = vrot.lane.b32.xlu0 %v1628_v5, %s4129_s18  ;;  %v1908_v7 = vrot.slane %v1902_v25, 1  ;;  %v1944_v5 = vmul.f32 %v5416_v57, %v5247_v50 }
 0x420   : > { %v1950_v35 = vrot.slane %v1944_v5, 1  ;;  %v5506_v5 = vstv %s3820_s12  ;;  %s3840_s12 = sld [smem:[#allocation7 + $0x1d]] }
 0x422   : > { %1677 = vrot.lane.b32.xlu1 %v1672_v39, %s4131_s21  ;;  %1660 = vrot.lane.b32.xlu0 %v1656_v13, %s4130_s24  ;;  %v5433_v39 = vstv %s3812_s25  ;;  %v1910_v13 = vsel %vm1705_vm3, %v1908_v7, %v1909_v58  ;;  %s3830_s25 = sld [smem:[#allocation7 + $0x18]] }
 0x423   : > { %v2021_v12 = vmul.f32 %v5433_v39, %v5247_v50  ;;  %v2023_v6 = vmul.f32 %v5433_v39, %v5413_v21 }
 0x425   : > { %v2027_v51 = vrot.slane %v2021_v12, 2  ;;  %v5525_v12 = vstv %s3822_s17  ;;  %s3842_s17 = sld [smem:[#allocation7 + $0x1e]] }
 0x426   : > { %1688 = vrot.lane.b32.xlu0 %v1684_v23, %s4131_s21  ;;  %1550 = vrot.lane.b32.xlu1 %v1545_v55, %s4126_s16  ;;  %v5441_v23 = vmul.f32 %v5433_v39, %v5282_v63  ;;  %v1743_v55 = vrot.slane %v1736_v28, 1 }
 0x428   : > { %v1744_v14 = vsel %vm1705_vm3, %v1741_v44, %v1743_v55  ;;  %v5468_v44 = vstv %s3816_s30  ;;  %v2189_v55 = vmul.f32 %v5506_v5, %v5247_v50  ;;  %s3834_s30 = sld [smem:[#allocation7 + $0x1a]] }
 0x429   : > { %v5479_v60 = vmul.f32 %v5468_v44, %v5282_v63  ;;  %v2105_v27 = vmul.f32 %v5468_v44, %v5247_v50 }
 0x42a   : > { %1745 = vrot.lane.b32.xlu0 %v1742_v34, %s4126_s16  ;;  %1578 = vrot.lane.b32.xlu1 %v1573_v10, %s4127_s13  ;;  %v1952_v10 = vsel %vm1705_vm3, %v1950_v35, %v1951_v32  ;;  %v2028_v34 = vrot.slane %v5441_v23, 2  ;;  %v1911_v35 = vrot.slane %v1904_v24, 1  ;;  %v2195_v57 = vrot.slane %v2189_v55, 2 }
 0x42b   : > { %v2112_v25 = vrot.slane %v5479_v60, 2  ;;  %v2111_v40 = vrot.slane %v2105_v27, 2  ;;  %v5563_v27 = vstv %s3828_s19  ;;  %v2107_v23 = vmul.f32 %v5468_v44, %v5413_v21  ;;  %s5677_s19 = sld [smem:[#allocation7]] }
 0x42c   : > { %v2029_v47 = vsel %vm1992_vm4, %v2027_v51, %v2028_v34  ;;  %v1912_v54 = vsel %vm1705_vm3, %v1909_v58, %v1911_v35  ;;  %v1953_v51 = vrot.slane %v1946_v15, 1  ;;  %v5601_v55 = vstv %s3832_s22  ;;  %s3848_s22 = sld [smem:[#allocation7 + $0x21]] }
 0x42d   : > { %v2191_v60 = vmul.f32 %v5506_v5, %v5413_v21 }
 0x42e   : > { %1787 = vrot.lane.b32.xlu0 %v1784_v31, %s4127_s13  ;;  %1606 = vrot.lane.b32.xlu1 %v1601_v61, %s4128_s10  ;;  %v2063_v61 = vmul.f32 %v5449_v19, %v5247_v50  ;;  %v1786_v31 = vsel %vm1705_vm3, %v1783_v0, %v1785_v43  ;;  %v2231_v43 = vmul.f32 %v5525_v12, %v5247_v50 }
 0x430   : > { %v2069_v48 = vrot.slane %v2063_v61, 2  ;;  %v5544_v61 = vstv %s3826_s5  ;;  %v2237_v39 = vrot.slane %v2231_v43, 2  ;;  %v5620_v43 = vstv %s3834_s30  ;;  %s3844_s5 = sld [smem:[#allocation7 + $0x1f]] }
 0x431   : > { %s5704_s30 = sld [smem:[#allocation2]] }
 0x432   : > { %1829 = vrot.lane.b32.xlu0 %v1826_v38, %s4128_s10  ;;  %1634 = vrot.lane.b32.xlu1 %v1629_v11, %s4129_s18  ;;  %v1827_v11 = vrot.slane %v1820_v2, 1  ;;  %v5487_v38 = vstv %s3818_s9  ;;  %v2071_v0 = vsel %vm1992_vm4, %v2069_v48, %v2070_v29  ;;  %v1954_v2 = vsel %vm1705_vm3, %v1951_v32, %v1953_v51  ;;  %s3836_s9 = sld [smem:[#allocation7 + $0x1b]] }
 0x433   : > { %v2147_v7 = vmul.f32 %v5487_v38, %v5247_v50  ;;  %v2030_v48 = vrot.slane %v2023_v6, 2  ;;  %v2149_v18 = vmul.f32 %v5487_v38, %v5413_v21  ;;  %v2434_v51 = vmul.f32 %v5601_v55, %v5247_v50 }
 0x434   : > { %v1828_v17 = vsel %vm1705_vm3, %v1825_v22, %v1827_v11  ;;  %v2113_v22 = vsel %vm1992_vm4, %v2111_v40, %v2112_v25  ;;  %v2308_v11 = vmul.f32 %v5544_v61, %v5247_v50  ;;  %v2072_v40 = vrot.slane %v2065_v59, 2 }
 0x435   : > { %v2153_v62 = vrot.slane %v2147_v7, 2 }
 0x436   : > { %1871 = vrot.lane.b32.xlu0 %v1868_v41, %s4129_s18  ;;  %1662 = vrot.lane.b32.xlu1 %v1657_v42, %s4130_s24  ;;  %v5498_v42 = vmul.f32 %v5487_v38, %v5282_v63  ;;  %v1869_v41 = vrot.slane %v1862_v36, 1  ;;  %v2031_v36 = vsel %vm1992_vm4, %v2028_v34, %v2030_v48  ;;  %v2314_v19 = vrot.slane %v2308_v11, 3 }
 0x437   : > { %v5582_v34 = vstv %s3830_s25  ;;  %v2073_v24 = vsel %vm1992_vm4, %v2070_v29, %v2072_v40  ;;  %v2198_v48 = vrot.slane %v2191_v60, 2  ;;  %v2476_v11 = vmul.f32 %v5620_v43, %v5247_v50  ;;  %s3846_s25 = sld [smem:[#allocation7 + $0x20]] }
 0x438   : > { %v1870_v28 = vsel %vm1705_vm3, %v1867_v53, %v1869_v41  ;;  %v2350_v41 = vmul.f32 %v5563_v27, %v5247_v50  ;;  %v2392_v35 = vmul.f32 %v5582_v34, %v5247_v50 }
 0x43a   : > { %1913 = vrot.lane.b32.xlu0 %v1910_v13, %s4130_s24  ;;  %1690 = vrot.lane.b32.xlu1 %v1685_v46, %s4131_s21  ;;  %v2154_v46 = vrot.slane %v5498_v42, 2  ;;  %v5517_v13 = vmul.f32 %v5506_v5, %v5282_v63  ;;  %v2356_v44 = vrot.slane %v2350_v41, 3  ;;  %v2398_v38 = vrot.slane %v2392_v35, 3 }
 0x43b   : > { %v2440_v5 = vrot.slane %v2434_v51, 3  ;;  %v2233_v42 = vmul.f32 %v5525_v12, %v5413_v21 }
 0x43c   : > { %v2155_v53 = vsel %vm1992_vm4, %v2153_v62, %v2154_v46  ;;  %v2114_v62 = vrot.slane %v2107_v23, 2 }
 0x43d   : > { %v2240_v40 = vrot.slane %v2233_v42, 2 }
 0x43e   : > { %1955 = vrot.lane.b32.xlu0 %v1952_v10, %s4131_s21  ;;  %1747 = vrot.lane.b32.xlu1 %v1744_v14, %s4126_s16  ;;  %v2196_v10 = vrot.slane %v5517_v13, 2  ;;  %v5536_v14 = vmul.f32 %v5525_v12, %v5282_v63  ;;  %v2115_v15 = vsel %vm1992_vm4, %v2112_v25, %v2114_v62  ;;  %v2482_v12 = vrot.slane %v2476_v11, 3 }
 0x43f   : > { %v2310_v13 = vmul.f32 %v5544_v61, %v5413_v21 }
 0x440   : > { %v2197_v58 = vsel %vm1992_vm4, %v2195_v57, %v2196_v10  ;;  %v2156_v57 = vrot.slane %v2149_v18, 2 }
 0x441   : > { %v2317_v35 = vrot.slane %v2310_v13, 3 }
 0x442   : > { %2032 = vrot.lane.b32.xlu0 %v2029_v47, %s4126_s16  ;;  %1789 = vrot.lane.b32.xlu1 %v1786_v31, %s4127_s13  ;;  %v2238_v47 = vrot.slane %v5536_v14, 2  ;;  %v5555_v31 = vmul.f32 %v5544_v61, %v5282_v63  ;;  %v2157_v6 = vsel %vm1992_vm4, %v2154_v46, %v2156_v57  ;;  %v5641_v46 = vstv %s3836_s9  ;;  %s5719_s9 = sld [smem:[#allocation7 + $0x31]] }
 0x443   : > { %v2518_v41 = vmul.f32 %v5641_v46, %v5247_v50  ;;  %v2352_v14 = vmul.f32 %v5563_v27, %v5413_v21 }
 0x444   : > { %v2239_v32 = vsel %vm1992_vm4, %v2237_v39, %v2238_v47  ;;  %v5633_v39 = vpop.permute.xlu0 %1535 }
 0x445   : > { %v2524_v61 = vrot.slane %v2518_v41, 3  ;;  %v2359_v60 = vrot.slane %v2352_v14, 3 }
 0x446   : > { %2074 = vrot.lane.b32.xlu0 %v2071_v0, %s4127_s13  ;;  %1831 = vrot.lane.b32.xlu1 %v1828_v17, %s4128_s10  ;;  %v2315_v0 = vrot.slane %v5555_v31, 3  ;;  %v5574_v17 = vmul.f32 %v5563_v27, %v5282_v63 }
 0x448   : > { %v2316_v7 = vsel %vm2279_vm6, %v2314_v19, %v2315_v0  ;;  %v5652_v19 = vmul.f32 %v5641_v46, %v5282_v63  ;;  %v5660_v23 = vpop.permute.xlu0 %1563 }
 0x44a   : > { %2116 = vrot.lane.b32.xlu0 %v2113_v22, %s4128_s10  ;;  %1873 = vrot.lane.b32.xlu1 %v1870_v28, %s4129_s18  ;;  %v2357_v22 = vrot.slane %v5574_v17, 3  ;;  %v5593_v28 = vmul.f32 %v5582_v34, %v5282_v63  ;;  %v2436_v17 = vmul.f32 %v5601_v55, %v5413_v21 }
 0x44c   : > { %v2358_v29 = vsel %vm2279_vm6, %v2356_v44, %v2357_v22  ;;  %v2525_v44 = vrot.slane %v5652_v19, 3  ;;  %v5696_v51 = vpop.permute.xlu0 %1591 }
 0x44e   : > { %2158 = vrot.lane.b32.xlu0 %v2155_v53, %s4129_s18  ;;  %1915 = vrot.lane.b32.xlu1 %v1912_v54, %s4130_s24  ;;  %v2399_v53 = vrot.slane %v5593_v28, 3  ;;  %v5612_v54 = vmul.f32 %v5601_v55, %v5282_v63 }
 0x450   : > { %v2400_v25 = vsel %vm2279_vm6, %v2398_v38, %v2399_v53 }
 0x452   : > { %2200 = vrot.lane.b32.xlu0 %v2197_v58, %s4130_s24  ;;  %1957 = vrot.lane.b32.xlu1 %v1954_v2, %s4131_s21  ;;  %v2441_v58 = vrot.slane %v5612_v54, 3  ;;  %v5631_v2 = vmul.f32 %v5620_v43, %v5282_v63 }
 0x454   : > { %v2442_v59 = vsel %vm2279_vm6, %v2440_v5, %v2441_v58  ;;  %v2360_v5 = vsel %vm2279_vm6, %v2357_v22, %v2359_v60  ;;  %v7445_v22 = vstv %s5677_s19 }
 0x456   : > { %2242 = vrot.lane.b32.xlu0 %v2239_v32, %s4131_s21  ;;  %2034 = vrot.lane.b32.xlu1 %v2031_v36, %s4126_s16  ;;  %v2199_v32 = vsel %vm1992_vm4, %v2196_v10, %v2198_v48  ;;  %v2483_v36 = vrot.slane %v5631_v2, 3  ;;  %v5662_v10 = vstv %s3840_s12  ;;  %s3850_s12 = sld [smem:[#allocation7 + $0x22]] }
 0x457   : > { %v5673_v62 = vmul.f32 %v5662_v10, %v5282_v63  ;;  %v2594_v18 = vmul.f32 %v5662_v10, %v5247_v50 }
 0x459   : > { %v2601_v38 = vrot.slane %v5673_v62, 4  ;;  %v2600_v27 = vrot.slane %v2594_v18, 4  ;;  %v1519_v18 = vmul.f32 %v7445_v22, %v5247_v50 }
 0x45a   : > { %2319 = vrot.lane.b32.xlu0 %v2316_v7, %s4126_s16  ;;  %2076 = vrot.lane.b32.xlu1 %v2073_v24, %s4127_s13  ;;  %v2484_v7 = vsel %vm2279_vm6, %v2482_v12, %v2483_v36  ;;  %v2241_v24 = vsel %vm1992_vm4, %v2238_v47, %v2240_v40  ;;  %v5683_v47 = vstv %s3842_s17  ;;  %v5730_v12 = vstv %s3846_s25  ;;  %s5755_s17 = sld [smem:[#allocation7 + $0x24]] }
 0x45b   : > { %v5694_v57 = vmul.f32 %v5683_v47, %v5282_v63  ;;  %v2636_v31 = vmul.f32 %v5683_v47, %v5247_v50  ;;  %v5741_v55 = vmul.f32 %v5730_v12, %v5282_v63  ;;  %v2720_v28 = vmul.f32 %v5730_v12, %v5247_v50  ;;  %s5801_s25 = sld [smem:[#allocation7 + $0x26]] }
 0x45d   : > { %v2643_v48 = vrot.slane %v5694_v57, 4 }
 0x45e   : > { %2361 = vrot.lane.b32.xlu0 %v2358_v29, %s4127_s13  ;;  %2118 = vrot.lane.b32.xlu1 %v2115_v15, %s4128_s10  ;;  %v2526_v29 = vsel %vm2279_vm6, %v2524_v61, %v2525_v44  ;;  %v2318_v15 = vsel %vm2279_vm6, %v2315_v0, %v2317_v35  ;;  %v2394_v0 = vmul.f32 %v5582_v34, %v5413_v21  ;;  %v2642_v34 = vrot.slane %v2636_v31, 4 }
 0x45f   : > { %v2443_v61 = vrot.slane %v2436_v17, 3  ;;  %v7444_v35 = vstv %s5704_s30 }
 0x460   : > { %v2401_v42 = vrot.slane %v2394_v0, 3  ;;  %v2644_v40 = vsel %vm735_vm5, %v2642_v34, %v2643_v48  ;;  %v5782_v34 = vstv %s3850_s12  ;;  %s5863_s12 = sld [smem:[#allocation7 + $0x28]] }
 0x462   : > { %2403 = vrot.lane.b32.xlu0 %v2400_v25, %s4128_s10  ;;  %2160 = vrot.lane.b32.xlu1 %v2157_v6, %s4129_s18  ;;  %v5706_v25 = vstv %s3844_s5  ;;  %v2602_v6 = vsel %vm735_vm5, %v2600_v27, %v2601_v38  ;;  %v2402_v41 = vsel %vm2279_vm6, %v2399_v53, %v2401_v42  ;;  %v2478_v53 = vmul.f32 %v5620_v43, %v5413_v21  ;;  %s5784_s5 = sld [smem:[#allocation7 + $0x25]] }
 0x463   : > { %v5717_v11 = vmul.f32 %v5706_v25, %v5282_v63  ;;  %v7443_v27 = vstv %s5719_s9 }
 0x464   : > { %v1524_v54 = vmul.f32 %v7443_v27, %v5290_v4  ;;  %v2485_v0 = vrot.slane %v2478_v53, 3  ;;  %v5810_v53 = vstv %s5755_s17  ;;  %s5873_s17 = sld [smem:[#allocation7 + $0x29]] }
 0x465   : > { %v2685_v13 = vrot.slane %v5717_v11, 4 }
 0x466   : > { %2445 = vrot.lane.b32.xlu0 %v2442_v59, %s4129_s18  ;;  %2202 = vrot.lane.b32.xlu1 %v2199_v32, %s4130_s24  ;;  %v2678_v59 = vmul.f32 %v5706_v25, %v5247_v50  ;;  %v5728_v32 = vpop.permute.xlu0 %1619 }
 0x46a   : > { %2487 = vrot.lane.b32.xlu0 %v2484_v7, %s4130_s24  ;;  %2244 = vrot.lane.b32.xlu1 %v2241_v24, %s4131_s21  ;;  %v5745_v7 = vstv %s3848_s22  ;;  %v2684_v24 = vrot.slane %v2678_v59, 4  ;;  %v5769_v60 = vpop.permute.xlu0 %1647  ;;  %v2486_v59 = vsel %vm2279_vm6, %v2483_v36, %v2485_v0  ;;  %v2804_v36 = vmul.f32 %v5782_v34, %v5247_v50  ;;  %s5827_s22 = sld [smem:[#allocation7 + $0x27]] }
 0x46b   : > { %v5766_v43 = vmul.f32 %v5745_v7, %v5282_v63  ;;  %v2762_v31 = vmul.f32 %v5745_v7, %v5247_v50  ;;  %v2764_v11 = vmul.f32 %v5745_v7, %v5413_v21 }
 0x46c   : > { %v2686_v14 = vsel %vm735_vm5, %v2684_v24, %v2685_v13 }
 0x46d   : > { %v2769_v17 = vrot.slane %v5766_v43, 4  ;;  %v2768_v24 = vrot.slane %v2762_v31, 4 }
 0x46e   : > { %2529 = vrot.lane.b32.xlu0 %v2526_v29, %s4131_s21  ;;  %2321 = vrot.lane.b32.xlu1 %v2318_v15, %s4126_s16  ;;  %v2444_v29 = vsel %vm2279_vm6, %v2441_v58, %v2443_v61  ;;  %v2727_v15 = vrot.slane %v5741_v55, 4  ;;  %v2726_v58 = vrot.slane %v2720_v28, 4  ;;  %v5805_v61 = vpop.permute.xlu0 %1675  ;;  %v2771_v55 = vrot.slane %v2764_v11, 4 }
 0x470   : > { %v2728_v42 = vsel %vm735_vm5, %v2726_v58, %v2727_v15  ;;  %v2880_v58 = vmul.f32 %v5810_v53, %v5247_v50 }
 0x472   : > { %2605 = vrot.lane.b32.xlu0 %v2602_v6, %s4126_s16  ;;  %2363 = vrot.lane.b32.xlu1 %v2360_v5, %s4127_s13  ;;  %v2520_v6 = vmul.f32 %v5641_v46, %v5413_v21  ;;  %v1521_v5 = vadd.f32 %v1519_v18, %v7444_v35  ;;  %v5795_v46 = vmul.f32 %v5782_v34, %v5282_v63  ;;  %v1509_v35 = vsel %vm1295_vm1, 0.0, %v5276_v45 }
 0x473   : > { %v2770_v18 = vsel %vm735_vm5, %v2768_v24, %v2769_v17  ;;  %v2886_v24 = vrot.slane %v2880_v58, 5 }
 0x474   : > { %v2527_v2 = vrot.slane %v2520_v6, 3 }
 0x476   : > { %2647 = vrot.lane.b32.xlu0 %v2644_v40, %s4127_s13  ;;  %2405 = vrot.lane.b32.xlu1 %v2402_v41, %s4128_s10  ;;  %v2596_v40 = vmul.f32 %v5662_v10, %v5413_v21  ;;  %v1526_v41 = vadd.f32 %v1524_v54, %v1521_v5  ;;  %v2528_v10 = vsel %vm2279_vm6, %v2525_v44, %v2527_v2  ;;  %v2810_v44 = vrot.slane %v2804_v36, 4 }
 0x477   : > { %v2638_v54 = vmul.f32 %v5683_v47, %v5413_v21  ;;  %v2680_v36 = vmul.f32 %v5706_v25, %v5413_v21  ;;  %v5880_v25 = vstv %s5827_s22  ;;  %s5933_s22 = sld [smem:[#allocation7 + $0x39]] }
 0x478   : > { %v2603_v31 = vrot.slane %v2596_v40, 4  ;;  %v1541_v19 = vadd.f32 %v5633_v39, %v1526_v41  ;;  %v5851_v41 = vstv %s5801_s25  ;;  %s5904_s25 = sld [smem:[#allocation7 + $0x2b]] }
 0x479   : > { %v2645_v62 = vrot.slane %v2638_v54, 4  ;;  %v2964_v57 = vmul.f32 %v5851_v41, %v5247_v50 }
 0x47a   : > { %2689 = vrot.lane.b32.xlu0 %v2686_v14, %s4128_s10  ;;  %2447 = vrot.lane.b32.xlu1 %v2444_v29, %s4129_s18  ;;  %v2811_v14 = vrot.slane %v5795_v46, 4  ;;  %v5821_v29 = vmul.f32 %v5810_v53, %v5282_v63  ;;  %v2604_v5 = vsel %vm735_vm5, %v2601_v38, %v2603_v31 }
 0x47b   : > { %v2646_v31 = vsel %vm735_vm5, %v2643_v48, %v2645_v62  ;;  %v5891_v62 = vmul.f32 %v5880_v25, %v5282_v63 }
 0x47c   : > { %v2812_v47 = vsel %vm735_vm5, %v2810_v44, %v2811_v14  ;;  %v2887_v39 = vrot.slane %v5821_v29, 5  ;;  %v5871_v44 = vmul.f32 %v5851_v41, %v5282_v63 }
 0x47e   : > { %2731 = vrot.lane.b32.xlu0 %v2728_v42, %s4129_s18  ;;  %2489 = vrot.lane.b32.xlu1 %v2486_v59, %s4130_s24  ;;  %v5838_v42 = vstv %s5784_s5  ;;  %s5882_s5 = sld [smem:[#allocation7 + $0x38]]  ;;  %v5964_v43 = vstv %s5904_s25 }
 0x47f   : > { %v5846_v40 = vmul.f32 %v5838_v42, %v5282_v63  ;;  %v2922_v2 = vmul.f32 %v5838_v42, %v5247_v50  ;;  %v2924_v46 = vmul.f32 %v5838_v42, %v5413_v21  ;;  %s3807_s25 = sld [smem:[#allocation7 + $0x3d]] }
 0x480   : > { %v5807_v28 = vpop.permute.xlu1 %1537 }
 0x481   : > { %v2928_v58 = vrot.slane %v2922_v2, 5  ;;  %v2971_v2 = vrot.slane %v5871_v44, 5 }
 0x482   : > { %2773 = vrot.lane.b32.xlu0 %v2770_v18, %s4130_s24  ;;  %2531 = vrot.lane.b32.xlu1 %v2528_v10, %s4131_s21 }
 0x484   : > { %v5832_v0 = vpop.permute.xlu1 %1565  ;;  %v1549_v6 = vpop.permute.xlu0 %1548 }
 0x485   : > { %v1554_v59 = vadd.f32 %v1549_v6, %v1541_v19  ;;  %v2929_v19 = vrot.slane %v5846_v40, 5  ;;  %v2687_v6 = vrot.slane %v2680_v36, 4  ;;  %v3008_v40 = vmul.f32 %v5880_v25, %v5413_v21 }
 0x486   : > { %2815 = vrot.lane.b32.xlu0 %v2812_v47, %s4131_s21  ;;  %2607 = vrot.lane.b32.xlu1 %v2604_v5, %s4126_s16  ;;  %v2722_v5 = vmul.f32 %v5730_v12, %v5413_v21  ;;  %v3006_v12 = vmul.f32 %v5880_v25, %v5247_v50 }
 0x487   : > { %v1569_v38 = vadd.f32 %v5660_v23, %v1554_v59  ;;  %v2888_v23 = vsel %vm1281_vm12, %v2886_v24, %v2887_v39  ;;  %v2930_v24 = vsel %vm1281_vm12, %v2928_v58, %v2929_v19  ;;  %v3015_v27 = vrot.slane %v3008_v40, 5 }
 0x488   : > { %v5858_v18 = vpop.permute.xlu1 %1593  ;;  %v1577_v10 = vpop.permute.xlu0 %1576  ;;  %v3012_v7 = vrot.slane %v3006_v12, 5 }
 0x489   : > { %v1582_v54 = vadd.f32 %v1577_v10, %v1569_v38  ;;  %v2970_v10 = vrot.slane %v2964_v57, 5 }
 0x48a   : > { %2891 = vrot.lane.b32.xlu0 %v2888_v23, %s4126_s16  ;;  %2649 = vrot.lane.b32.xlu1 %v2646_v31, %s4127_s13  ;;  %v2729_v31 = vrot.slane %v2722_v5, 4  ;;  %v3013_v23 = vrot.slane %v5891_v62, 5  ;;  %v5928_v5 = vstv %s5882_s5  ;;  %s3805_s5 = sld [smem:[#allocation7 + $0x3c]] }
 0x48b   : > { %v1597_v48 = vadd.f32 %v5696_v51, %v1582_v54  ;;  %v2688_v51 = vsel %vm735_vm5, %v2685_v13, %v2687_v6  ;;  %v2972_v6 = vsel %vm1281_vm12, %v2970_v10, %v2971_v2  ;;  %v1716_v10 = vmul.f32 %v5928_v5, %v5290_v4 }
 0x48c   : > { %v5887_v59 = vpop.permute.xlu1 %1621  ;;  %v1605_v47 = vpop.permute.xlu0 %1604  ;;  %v3014_v12 = vsel %vm1281_vm12, %v3012_v7, %v3013_v23  ;;  %v2882_v7 = vmul.f32 %v5810_v53, %v5413_v21  ;;  %v3016_v40 = vsel %vm1281_vm12, %v3013_v23, %v3015_v27 }
 0x48d   : > { %v1610_v38 = vadd.f32 %v1605_v47, %v1597_v48  ;;  %v5913_v48 = vstv %s5863_s12  ;;  %v5931_v47 = vstv %s5873_s17  ;;  %s5975_s12 = sld [smem:[#allocation7 + $0x3a]] }
 0x48e   : > { %2933 = vrot.lane.b32.xlu0 %v2930_v24, %s4127_s13  ;;  %2691 = vrot.lane.b32.xlu1 %v2688_v51, %s4128_s10  ;;  %v5923_v57 = vmul.f32 %v5913_v48, %v5282_v63  ;;  %v2806_v24 = vmul.f32 %v5782_v34, %v5413_v21  ;;  %v5953_v34 = vmul.f32 %v5931_v47, %v5282_v63  ;;  %s3803_s17 = sld [smem:[#allocation7 + $0x3b]] }
 0x48f   : > { %v1625_v36 = vadd.f32 %v5728_v32, %v1610_v38  ;;  %v2730_v32 = vsel %vm735_vm5, %v2727_v15, %v2729_v31  ;;  %v3048_v15 = vmul.f32 %v5913_v48, %v5247_v50  ;;  %v3050_v44 = vmul.f32 %v5913_v48, %v5413_v21 }
 0x490   : > { %v5909_v13 = vpop.permute.xlu1 %1649  ;;  %v1633_v54 = vpop.permute.xlu0 %1632  ;;  %v3055_v11 = vrot.slane %v5923_v57, 5  ;;  %v3097_v53 = vrot.slane %v5953_v34, 5  ;;  %v6061_v25 = vstv %s3805_s5  ;;  %v3092_v62 = vmul.f32 %v5931_v47, %v5413_v21  ;;  %s3815_s5 = sld [smem:[#allocation7 + $0x41]] }
 0x491   : > { %v1638_v58 = vadd.f32 %v1633_v54, %v1625_v36  ;;  %v5959_v54 = vmul.f32 %v5928_v5, %v5327_v1  ;;  %v6086_v48 = vmul.f32 %v6061_v25, %v5327_v1  ;;  %v3169_v57 = vmul.f32 %v5964_v43, %v5413_v21 }
 0x492   : > { %2975 = vrot.lane.b32.xlu0 %v2972_v6, %s4128_s10  ;;  %2733 = vrot.lane.b32.xlu1 %v2730_v32, %s4129_s18  ;;  %v3054_v6 = vrot.slane %v3048_v15, 5  ;;  %v2813_v32 = vrot.slane %v2806_v24, 4 }
 0x493   : > { %v1653_v38 = vadd.f32 %v5769_v60, %v1638_v58  ;;  %v2772_v60 = vsel %vm735_vm5, %v2769_v17, %v2771_v55  ;;  %v3090_v58 = vmul.f32 %v5931_v47, %v5247_v50  ;;  %v1722_v55 = vrot.slane %v1716_v10, 1 }
 0x494   : > { %v5940_v51 = vpop.permute.xlu1 %1677  ;;  %v1661_v36 = vpop.permute.xlu0 %1660  ;;  %v2814_v15 = vsel %vm735_vm5, %v2811_v14, %v2813_v32  ;;  %v7442_v24 = vrot.slane %v5959_v54, 1  ;;  %v3167_v10 = vmul.f32 %v5964_v43, %v5247_v50  ;;  %v6108_v47 = vsel %vm1299_vm2, %v1509_v35, 0.0 }
 0x495   : > { %v1666_v31 = vadd.f32 %v1661_v36, %v1653_v38 }
 0x496   : > { %3017 = vrot.lane.b32.xlu0 %v3014_v12, %s4129_s18  ;;  %2775 = vrot.lane.b32.xlu1 %v2772_v60, %s4130_s24  ;;  %v5973_v12 = vmul.f32 %v5964_v43, %v5282_v63  ;;  %v1724_v14 = vsel %vm1705_vm3, %v1722_v55, %v7442_v24  ;;  %v2931_v55 = vrot.slane %v2924_v46, 5 }
 0x497   : > { %v1681_v17 = vadd.f32 %v5805_v61, %v1666_v31  ;;  %v3056_v61 = vsel %vm1281_vm12, %v3054_v6, %v3055_v11  ;;  %v5990_v31 = vstv %s5933_s22  ;;  %v3096_v6 = vrot.slane %v3090_v58, 5  ;;  %s3809_s22 = sld [smem:[#allocation7 + $0x3e]] }
 0x498   : > { %v5969_v38 = vpop.permute.xlu1 %1550  ;;  %v1689_v36 = vpop.permute.xlu0 %1688  ;;  %v3174_v58 = vrot.slane %v5973_v12, 6  ;;  %v1756_v43 = vmul.f32 %v5990_v31, %v6108_v47 }
 0x499   : > { %v1694_v60 = vadd.f32 %v1689_v36, %v1681_v17  ;;  %v2889_v36 = vrot.slane %v2882_v7, 5  ;;  %v3173_v7 = vrot.slane %v3167_v10, 6  ;;  %v2932_v10 = vsel %vm1281_vm12, %v2929_v19, %v2931_v55 }
 0x49a   : > { %3059 = vrot.lane.b32.xlu0 %v3056_v61, %s4130_s24  ;;  %2817 = vrot.lane.b32.xlu1 %v2814_v15, %s4131_s21  ;;  %v1754_v15 = vmul.f32 %v5990_v31, %v5290_v4  ;;  %v1763_v8 = vrot.slane %v1756_v43, 1 }
 0x49b   : > { %v1713_v17 = vadd.f32 %v5393_v9, %v1694_v60  ;;  %v3098_v9 = vsel %vm1281_vm12, %v3096_v6, %v3097_v53  ;;  %v2890_v42 = vsel %vm1281_vm12, %v2887_v39, %v2889_v36  ;;  %v6017_v60 = vmul.f32 %v5990_v31, %v5327_v1 }
 0x49c   : > { %v5998_v32 = vpop.permute.xlu1 %1578  ;;  %v6000_v61 = vpop.permute.xlu0 %1745  ;;  %v6026_v39 = vstv %s5975_s12  ;;  %v3175_v36 = vsel %vm3138_vm7, %v3173_v7, %v3174_v58  ;;  %v1760_v46 = vrot.slane %v1754_v15, 1  ;;  %v6049_v15 = vstv %s3803_s17  ;;  %s3870_s12 = sld [smem:[#allocation7 + $0x2c]] }
 0x49d   : > { %v6004_v16 = vadd.f32 %v1724_v14, %v1713_v17  ;;  %v2966_v17 = vmul.f32 %v5851_v41, %v5413_v21  ;;  %v1796_v14 = vmul.f32 %v6026_v39, %v5290_v4  ;;  %v7446_v41 = vrot.slane %v6017_v60, 1  ;;  %s3813_s17 = sld [smem:[#allocation7 + $0x40]] }
 0x49e   : > { %3101 = vrot.lane.b32.xlu0 %v3098_v9, %s4131_s21  ;;  %2893 = vrot.lane.b32.xlu1 %v2890_v42, %s4126_s16  ;;  %v6041_v42 = vmul.f32 %v6026_v39, %v5327_v1  ;;  %v1798_v31 = vmul.f32 %v6026_v39, %v6108_v47  ;;  %v1840_v12 = vmul.f32 %v6049_v15, %v6108_v47 }
 0x49f   : > { %v2973_v9 = vrot.slane %v2966_v17, 5  ;;  %v1762_v55 = vsel %vm1705_vm3, %v1760_v46, %v7446_v41  ;;  %v6066_v46 = vmul.f32 %v6049_v15, %v5327_v1  ;;  %v3057_v41 = vrot.slane %v3050_v44, 5 }
 0x4a0   : > { %v6021_v6 = vpop.permute.xlu1 %1606  ;;  %v6023_v29 = vpop.permute.xlu0 %1787  ;;  %v7449_v24 = vrot.slane %v6041_v42, 1 }
 0x4a1   : > { %v2974_v17 = vsel %vm1281_vm12, %v2971_v2, %v2973_v9  ;;  %v1880_v9 = vmul.f32 %v6061_v25, %v5290_v4  ;;  %v7447_v22 = vrot.slane %v6066_v46, 1  ;;  %v3058_v45 = vsel %vm1281_vm12, %v3055_v11, %v3057_v41 }
 0x4a2   : > { %3178 = vrot.lane.b32.xlu0 %v3175_v36, %s4126_s16  ;;  %2935 = vrot.lane.b32.xlu1 %v2932_v10, %s4127_s13  ;;  %v1802_v36 = vrot.slane %v1796_v14, 1  ;;  %v1838_v10 = vmul.f32 %v6049_v15, %v5290_v4  ;;  %v6142_v34 = vstv %s3870_s12  ;;  %s3821_s12 = sld [smem:[#allocation7 + $0x44]] }
 0x4a3   : > { %v3209_v26 = vmul.f32 %v6142_v34, %v5247_v50 }
 0x4a4   : > { %v6045_v7 = vpop.permute.xlu1 %1634  ;;  %v6047_v19 = vpop.permute.xlu0 %1829 }
 0x4a5   : > { %v3215_v15 = vrot.slane %v3209_v26, 6 }
 0x4a6   : > { %1765 = vrot.lane.b32.xlu0 %v1762_v55, %s4126_s16  ;;  %2977 = vrot.lane.b32.xlu1 %v2974_v17, %s4128_s10  ;;  %v1804_v55 = vsel %vm1705_vm3, %v1802_v36, %v7449_v24  ;;  %v1844_v17 = vrot.slane %v1838_v10, 1  ;;  %v1886_v36 = vrot.slane %v1880_v9, 1  ;;  %v6097_v10 = vstv %s3807_s25  ;;  %s3817_s25 = sld [smem:[#allocation7 + $0x42]] }
 0x4a7   : > { %v1922_v44 = vmul.f32 %v6097_v10, %v5290_v4  ;;  %v7448_v9 = vrot.slane %v6086_v48, 1 }
 0x4a8   : > { %v6070_v2 = vpop.permute.xlu1 %1662  ;;  %v6072_v14 = vpop.permute.xlu0 %1871 }
 0x4a9   : > { %v1888_v35 = vsel %vm1705_vm3, %v1886_v36, %v7448_v9  ;;  %v3176_v9 = vrot.slane %v3169_v57, 6 }
 0x4aa   : > { %1807 = vrot.lane.b32.xlu0 %v1804_v55, %s4127_s13  ;;  %3019 = vrot.lane.b32.xlu1 %v3016_v40, %s4129_s18  ;;  %v1846_v55 = vsel %vm1705_vm3, %v1844_v17, %v7447_v22  ;;  %v3099_v40 = vrot.slane %v3092_v62, 5  ;;  %v6115_v17 = vmul.f32 %v6097_v10, %v5327_v1 }
 0x4ac   : > { %v6093_v27 = vpop.permute.xlu1 %1690  ;;  %v6095_v23 = vpop.permute.xlu0 %1913  ;;  %v3100_v62 = vsel %vm1281_vm12, %v3097_v53, %v3099_v40  ;;  %v7454_v36 = vrot.slane %v6115_v17, 1  ;;  %v6152_v40 = vmul.f32 %v6142_v34, %v5282_v63 }
 0x4ae   : > { %1849 = vrot.lane.b32.xlu0 %v1846_v55, %s4128_s10  ;;  %3061 = vrot.lane.b32.xlu1 %v3058_v45, %s4130_s24  ;;  %v6126_v55 = vstv %s3809_s22  ;;  %v1928_v45 = vrot.slane %v1922_v44, 1  ;;  %s3819_s22 = sld [smem:[#allocation7 + $0x43]] }
 0x4af   : > { %v1964_v22 = vmul.f32 %v6126_v55, %v5290_v4  ;;  %v6140_v24 = vmul.f32 %v6126_v55, %v5327_v1 }
 0x4b0   : > { %v6119_v11 = vpop.permute.xlu1 %1747  ;;  %v6121_v41 = vpop.permute.xlu0 %1955  ;;  %v1930_v57 = vsel %vm1705_vm3, %v1928_v45, %v7454_v36  ;;  %v1805_v45 = vrot.slane %v1798_v31, 1 }
 0x4b1   : > { %v7455_v39 = vrot.slane %v6140_v24, 1 }
 0x4b2   : > { %1891 = vrot.lane.b32.xlu0 %v1888_v35, %s4129_s18  ;;  %3103 = vrot.lane.b32.xlu1 %v3100_v62, %s4131_s21  ;;  %v3177_v35 = vsel %vm3138_vm7, %v3174_v58, %v3176_v9  ;;  %v1970_v62 = vrot.slane %v1964_v22, 1  ;;  %v6171_v58 = vstv %s3813_s17  ;;  %v7556_v9 = vrot.slane %v6017_v60, 1  ;;  %s3823_s17 = sld [smem:[#allocation7 + $0x45]] }
 0x4b3   : > { %v6186_v31 = vmul.f32 %v6171_v58, %v5327_v1 }
 0x4b4   : > { %v6144_v53 = vpop.permute.xlu1 %1789  ;;  %v6146_v44 = vpop.permute.xlu0 %2032  ;;  %v1972_v22 = vsel %vm1705_vm3, %v1970_v62, %v7455_v39  ;;  %v1764_v43 = vsel %vm1705_vm3, %v7556_v9, %v1763_v8  ;;  %v7558_v8 = vrot.slane %v6041_v42, 1  ;;  %v1847_v9 = vrot.slane %v1840_v12, 1 }
 0x4b5   : > { %v6195_v39 = vstv %s3815_s5  ;;  %v7461_v42 = vrot.slane %v6186_v31, 2  ;;  %s3872_s5 = sld [smem:[#allocation7 + $0x2d]] }
 0x4b6   : > { %1933 = vrot.lane.b32.xlu0 %v1930_v57, %s4130_s24  ;;  %3180 = vrot.lane.b32.xlu1 %v3177_v35, %s4126_s16  ;;  %v7457_v57 = vrot.slane %v6152_v40, 6  ;;  %v2041_v35 = vmul.f32 %v6171_v58, %v5290_v4  ;;  %v1806_v60 = vsel %vm1705_vm3, %v7558_v8, %v1805_v45  ;;  %v2083_v52 = vmul.f32 %v6195_v39, %v5290_v4 }
 0x4b7   : > { %v6209_v45 = vmul.f32 %v6195_v39, %v5327_v1  ;;  %v1924_v8 = vmul.f32 %v6097_v10, %v6108_v47 }
 0x4b8   : > { %v6165_v30 = vpop.permute.xlu1 %1831  ;;  %v6167_v49 = vpop.permute.xlu0 %2074  ;;  %v3217_v26 = vsel %vm3138_vm7, %v3215_v15, %v7457_v57  ;;  %v2089_v56 = vrot.slane %v2083_v52, 2  ;;  %v1966_v52 = vmul.f32 %v6126_v55, %v6108_v47 }
 0x4ba   : > { %1975 = vrot.lane.b32.xlu0 %v1972_v22, %s4131_s21  ;;  %1767 = vrot.lane.b32.xlu1 %v1764_v43, %s4126_s16  ;;  %v2047_v22 = vrot.slane %v2041_v35, 2  ;;  %v1882_v43 = vmul.f32 %v6061_v25, %v6108_v47  ;;  %v7560_v35 = vrot.slane %v6066_v46, 1  ;;  %v7464_v46 = vrot.slane %v6209_v45, 2 }
 0x4bc   : > { %v6188_v36 = vpop.permute.xlu1 %1873  ;;  %v6190_v62 = vpop.permute.xlu0 %2116  ;;  %v1848_v25 = vsel %vm1705_vm3, %v7560_v35, %v1847_v9  ;;  %v1889_v57 = vrot.slane %v1882_v43, 1  ;;  %v6240_v43 = vstv %s3819_s22  ;;  %s3829_s22 = sld [smem:[#allocation7 + $0x48]] }
 0x4bd   : > { %7557 = vst [vmem:[#allocation46_spill] sm:$0xff] %v6190_v62 }
 0x4be   : > { %1809 = vrot.lane.b32.xlu1 %v1806_v60, %s4127_s13  ;;  %3220 = vrot.lane.b32.xlu0 %v3217_v26, %s4127_s13  ;;  %v6220_v60 = vstv %s3817_s25  ;;  %v2049_v26 = vsel %vm1992_vm4, %v2047_v22, %v7461_v42  ;;  %v1931_v22 = vrot.slane %v1924_v8, 1  ;;  %v2091_v42 = vsel %vm1992_vm4, %v2089_v56, %v7464_v46  ;;  %s3827_s25 = sld [smem:[#allocation7 + $0x47]] }
 0x4bf   : > { %v2125_v33 = vmul.f32 %v6220_v60, %v5290_v4  ;;  %v6232_v10 = vmul.f32 %v6220_v60, %v5327_v1  ;;  %v6255_v8 = vmul.f32 %v6240_v43, %v5327_v1  ;;  %v6261_v56 = vstv %s3821_s12  ;;  %s3831_s12 = sld [smem:[#allocation7 + $0x49]] }
 0x4c0   : > { %v6211_v12 = vpop.permute.xlu1 %1915  ;;  %v6213_v15 = vpop.permute.xlu0 %2158 }
 0x4c1   : > { %7559 = vst [vmem:[#allocation47_spill] sm:$0xff] %v6213_v15  ;;  %v2131_v37 = vrot.slane %v2125_v33, 2  ;;  %v2167_v15 = vmul.f32 %v6240_v43, %v5290_v4  ;;  %v7465_v55 = vrot.slane %v6232_v10, 2  ;;  %v7566_v33 = vrot.slane %v6115_v17, 1 }
 0x4c2   : > { %1851 = vrot.lane.b32.xlu1 %v1848_v25, %s4128_s10  ;;  %2052 = vrot.lane.b32.xlu0 %v2049_v26, %s4126_s16  ;;  %v7563_v25 = vrot.slane %v6086_v48, 1  ;;  %v6278_v17 = vmul.f32 %v6261_v56, %v5327_v1 }
 0x4c3   : > { %v2173_v46 = vrot.slane %v2167_v15, 2  ;;  %v7569_v15 = vrot.slane %v6140_v24, 1 }
 0x4c4   : > { %v6234_v9 = vpop.permute.xlu1 %1957  ;;  %v6236_v35 = vpop.permute.xlu0 %2200  ;;  %v1890_v26 = vsel %vm1705_vm3, %v7563_v25, %v1889_v57  ;;  %v1973_v25 = vrot.slane %v1966_v52, 1  ;;  %v3211_v52 = vmul.f32 %v6142_v34, %v5413_v21 }
 0x4c5   : > { %7561 = vst [vmem:[#allocation48_spill] sm:$0xff] %v6234_v9  ;;  %7562 = vst [vmem:[#allocation49_spill] sm:$0xff] %v6236_v35  ;;  %v2209_v35 = vmul.f32 %v6261_v56, %v5290_v4 }
 0x4c6   : > { %1893 = vrot.lane.b32.xlu1 %v1890_v26, %s4129_s18  ;;  %2094 = vrot.lane.b32.xlu0 %v2091_v42, %s4127_s13  ;;  %v1932_v26 = vsel %vm1705_vm3, %v7566_v33, %v1931_v22  ;;  %v2133_v42 = vsel %vm1992_vm4, %v2131_v37, %v7465_v55  ;;  %v1974_v33 = vsel %vm1705_vm3, %v7569_v15, %v1973_v25  ;;  %v3218_v24 = vrot.slane %v3211_v52, 6 }
 0x4c7   : > { %v2043_v55 = vmul.f32 %v6171_v58, %v6108_v47  ;;  %v7467_v25 = vrot.slane %v6278_v17, 2  ;;  %v7572_v58 = vrot.slane %v6152_v40, 6 }
 0x4c8   : > { %v6257_v48 = vpop.permute.xlu1 %2034  ;;  %v6259_v57 = vpop.permute.xlu0 %2242 }
 0x4c9   : > { %7564 = vst [vmem:[#allocation50_spill] sm:$0xff] %v6257_v48  ;;  %7565 = vst [vmem:[#allocation51_spill] sm:$0xff] %v6259_v57  ;;  %v7466_v57 = vrot.slane %v6255_v8, 2 }
 0x4ca   : > { %1935 = vrot.lane.b32.xlu1 %v1932_v26, %s4130_s24  ;;  %2136 = vrot.lane.b32.xlu0 %v2133_v42, %s4128_s10  ;;  %v6287_v26 = vstv %s3823_s17  ;;  %v2215_v42 = vrot.slane %v2209_v35, 2  ;;  %s3833_s17 = sld [smem:[#allocation7 + $0x4a]] }
 0x4cb   : > { %v2175_v34 = vsel %vm1992_vm4, %v2173_v46, %v7466_v57  ;;  %v6301_v15 = vmul.f32 %v6287_v26, %v5327_v1  ;;  %v3219_v57 = vsel %vm3138_vm7, %v7572_v58, %v3218_v24 }
 0x4cc   : > { %v6280_v22 = vpop.permute.xlu1 %2076  ;;  %v6282_v37 = vpop.permute.xlu0 %2319  ;;  %v2217_v52 = vsel %vm1992_vm4, %v2215_v42, %v7467_v25 }
 0x4cd   : > { %7567 = vst [vmem:[#allocation52_spill] sm:$0xff] %v6280_v22  ;;  %7568 = vst [vmem:[#allocation53_spill] sm:$0xff] %v6282_v37  ;;  %v2251_v22 = vmul.f32 %v6287_v26, %v5290_v4  ;;  %v2050_v37 = vrot.slane %v2043_v55, 2  ;;  %v7468_v40 = vrot.slane %v6301_v15, 2  ;;  %v2127_v55 = vmul.f32 %v6220_v60, %v6108_v47 }
 0x4ce   : > { %1977 = vrot.lane.b32.xlu1 %v1974_v33, %s4131_s21  ;;  %2178 = vrot.lane.b32.xlu0 %v2175_v34, %s4129_s18  ;;  %v2085_v33 = vmul.f32 %v6195_v39, %v6108_v47  ;;  %v6312_v34 = vstv %s3872_s5  ;;  %s3835_s5 = sld [smem:[#allocation7 + $0x4b]] }
 0x4cf   : > { %v2257_v48 = vrot.slane %v2251_v22, 2  ;;  %v3251_v39 = vmul.f32 %v6312_v34, %v5247_v50  ;;  %v6332_v22 = vstv %s3827_s25  ;;  %s3837_s25 = sld [smem:[#allocation7 + $0x4c]] }
 0x4d0   : > { %v6303_v46 = vpop.permute.xlu1 %2118  ;;  %v6305_v35 = vpop.permute.xlu0 %2361  ;;  %v2092_v42 = vrot.slane %v2085_v33, 2  ;;  %v6347_v33 = vmul.f32 %v6332_v22, %v5327_v1 }
 0x4d1   : > { %7570 = vst [vmem:[#allocation54_spill] sm:$0xff] %v6303_v46  ;;  %7571 = vst [vmem:[#allocation55_spill] sm:$0xff] %v6305_v35  ;;  %v6319_v46 = vmul.f32 %v6312_v34, %v5282_v63  ;;  %v2259_v25 = vsel %vm1992_vm4, %v2257_v48, %v7468_v40  ;;  %v3257_v60 = vrot.slane %v3251_v39, 6  ;;  %v2169_v48 = vmul.f32 %v6240_v43, %v6108_v47 }
 0x4d2   : > { %3222 = vrot.lane.b32.xlu1 %v3219_v57, %s4127_s13  ;;  %2220 = vrot.lane.b32.xlu0 %v2217_v52, %s4130_s24  ;;  %v7575_v57 = vrot.slane %v6186_v31, 2  ;;  %v6349_v31 = vstv %s3829_s22  ;;  %s3874_s22 = sld [smem:[#allocation7 + $0x2e]] }
 0x4d3   : > { %v7469_v35 = vrot.slane %v6319_v46, 6  ;;  %v2370_v40 = vmul.f32 %v6349_v31, %v5290_v4  ;;  %v6369_v43 = vmul.f32 %v6349_v31, %v5327_v1 }
 0x4d4   : > { %v6326_v24 = vpop.permute.xlu1 %2160  ;;  %v6328_v58 = vpop.permute.xlu0 %2403  ;;  %v2051_v52 = vsel %vm1992_vm4, %v7575_v57, %v2050_v37 }
 0x4d5   : > { %7573 = vst [vmem:[#allocation56_spill] sm:$0xff] %v6326_v24  ;;  %7574 = vst [vmem:[#allocation57_spill] sm:$0xff] %v6328_v58  ;;  %v2328_v58 = vmul.f32 %v6332_v22, %v5290_v4  ;;  %v2134_v24 = vrot.slane %v2127_v55, 2 }
 0x4d6   : > { %2054 = vrot.lane.b32.xlu1 %v2051_v52, %s4126_s16  ;;  %2262 = vrot.lane.b32.xlu0 %v2259_v25, %s4131_s21  ;;  %v7578_v25 = vrot.slane %v6209_v45, 2  ;;  %v3259_v52 = vsel %vm3138_vm7, %v3257_v60, %v7469_v35  ;;  %v6376_v60 = vstv %s3831_s12  ;;  %s6449_s12 = sld [smem:[#allocation7 + $0x4e]] }
 0x4d7   : > { %v2334_v9 = vrot.slane %v2328_v58, 3  ;;  %v7581_v58 = vrot.slane %v6232_v10, 2  ;;  %v2412_v35 = vmul.f32 %v6376_v60, %v5290_v4  ;;  %v6393_v10 = vmul.f32 %v6376_v60, %v5327_v1 }
 0x4d8   : > { %v6351_v37 = vpop.permute.xlu1 %2202  ;;  %v6353_v57 = vpop.permute.xlu0 %2445  ;;  %v2093_v39 = vsel %vm1992_vm4, %v7578_v25, %v2092_v42  ;;  %v2176_v25 = vrot.slane %v2169_v48, 2 }
 0x4d9   : > { %7576 = vst [vmem:[#allocation58_spill] sm:$0xff] %v6351_v37  ;;  %7577 = vst [vmem:[#allocation59_spill] sm:$0xff] %v6353_v57  ;;  %v7470_v57 = vrot.slane %v6347_v33, 3  ;;  %v2376_v37 = vrot.slane %v2370_v40, 3  ;;  %v2135_v55 = vsel %vm1992_vm4, %v7581_v58, %v2134_v24  ;;  %v7471_v40 = vrot.slane %v6369_v43, 3 }
 0x4da   : > { %2096 = vrot.lane.b32.xlu1 %v2093_v39, %s4127_s13  ;;  %3262 = vrot.lane.b32.xlu0 %v3259_v52, %s4128_s10  ;;  %v2211_v52 = vmul.f32 %v6261_v56, %v6108_v47 }
 0x4db   : > { %v2336_v39 = vsel %vm2279_vm6, %v2334_v9, %v7470_v57  ;;  %v7584_v9 = vrot.slane %v6255_v8, 2  ;;  %v2378_v58 = vsel %vm2279_vm6, %v2376_v37, %v7471_v40  ;;  %v2418_v57 = vrot.slane %v2412_v35, 3 }
 0x4dc   : > { %v6372_v45 = vpop.permute.xlu1 %2244  ;;  %v6374_v42 = vpop.permute.xlu0 %2487  ;;  %v7472_v8 = vrot.slane %v6393_v10, 3  ;;  %v6507_v62 = vstv %s6449_s12  ;;  %s3857_s12 = sld [smem:[#allocation7 + $0x56]] }
 0x4dd   : > { %7579 = vst [vmem:[#allocation60_spill] sm:$0xff] %v6372_v45  ;;  %7580 = vst [vmem:[#allocation61_spill] sm:$0xff] %v6374_v42  ;;  %v2177_v56 = vsel %vm1992_vm4, %v7584_v9, %v2176_v25  ;;  %v2253_v42 = vmul.f32 %v6287_v26, %v6108_v47  ;;  %v6418_v25 = vstv %s3835_s5  ;;  %v7587_v9 = vrot.slane %v6278_v17, 2  ;;  %s3851_s5 = sld [smem:[#allocation7 + $0x53]] }
 0x4de   : > { %2138 = vrot.lane.b32.xlu1 %v2135_v55, %s4128_s10  ;;  %2339 = vrot.lane.b32.xlu0 %v2336_v39, %s4126_s16  ;;  %v6405_v55 = vstv %s3833_s17  ;;  %v2218_v39 = vrot.slane %v2211_v52, 2  ;;  %v2496_v26 = vmul.f32 %v6418_v25, %v5290_v4  ;;  %v6439_v17 = vmul.f32 %v6418_v25, %v5327_v1  ;;  %s6469_s17 = sld [smem:[#allocation7 + $0x4f]] }
 0x4df   : > { %v6416_v37 = vmul.f32 %v6405_v55, %v5327_v1  ;;  %v2260_v40 = vrot.slane %v2253_v42, 2  ;;  %v6447_v42 = vstv %s3837_s25  ;;  %s3876_s25 = sld [smem:[#allocation7 + $0x2f]] }
 0x4e0   : > { %v6395_v24 = vpop.permute.xlu1 %2321  ;;  %v6397_v48 = vpop.permute.xlu0 %2529 }
 0x4e1   : > { %7582 = vst [vmem:[#allocation62_spill] sm:$0xff] %v6395_v24  ;;  %7583 = vst [vmem:[#allocation63_spill] sm:$0xff] %v6397_v48  ;;  %v2454_v24 = vmul.f32 %v6405_v55, %v5290_v4 }
 0x4e2   : > { %2180 = vrot.lane.b32.xlu1 %v2177_v56, %s4129_s18  ;;  %2381 = vrot.lane.b32.xlu0 %v2378_v58, %s4127_s13  ;;  %v2219_v56 = vsel %vm1992_vm4, %v7587_v9, %v2218_v39  ;;  %v2420_v58 = vsel %vm2279_vm6, %v2418_v57, %v7472_v8  ;;  %v2330_v57 = vmul.f32 %v6332_v22, %v6108_v47  ;;  %v7591_v22 = vstv %s5677_s19  ;;  %s6509_s19 = sld [smem:[#allocation7 + $0x50]] }
 0x4e3   : > { %v2460_v48 = vrot.slane %v2454_v24, 3  ;;  %v7590_v24 = vrot.slane %v6301_v15, 2  ;;  %v2538_v8 = vmul.f32 %v6447_v42, %v5290_v4  ;;  %v7474_v15 = vrot.slane %v6439_v17, 3 }
 0x4e4   : > { %v6420_v52 = vpop.permute.xlu1 %2363  ;;  %v6422_v35 = vpop.permute.xlu0 %2605 }
 0x4e5   : > { %7585 = vst [vmem:[#allocation64_spill] sm:$0xff] %v6420_v52  ;;  %7586 = vst [vmem:[#allocation65_spill] sm:$0xff] %v6422_v35  ;;  %v7473_v35 = vrot.slane %v6416_v37, 3  ;;  %v3253_v52 = vmul.f32 %v6312_v34, %v5413_v21  ;;  %v2544_v45 = vrot.slane %v2538_v8, 3 }
 0x4e6   : > { %2222 = vrot.lane.b32.xlu1 %v2219_v56, %s4130_s24  ;;  %2423 = vrot.lane.b32.xlu0 %v2420_v58, %s4128_s10  ;;  %v2261_v56 = vsel %vm1992_vm4, %v7590_v24, %v2260_v40  ;;  %v2502_v58 = vrot.slane %v2496_v26, 3  ;;  %v6467_v40 = vmul.f32 %v6447_v42, %v5327_v1  ;;  %v2337_v24 = vrot.slane %v2330_v57, 3 }
 0x4e7   : > { %v2462_v34 = vsel %vm2279_vm6, %v2460_v48, %v7473_v35 }
 0x4e8   : > { %v6441_v39 = vpop.permute.xlu1 %2405  ;;  %v6443_v9 = vpop.permute.xlu0 %2647  ;;  %v2504_v35 = vsel %vm2279_vm6, %v2502_v58, %v7474_v15  ;;  %v7598_v15 = vrot.slane %v6347_v33, 3 }
 0x4e9   : > { %7588 = vst [vmem:[#allocation66_spill] sm:$0xff] %v6441_v39  ;;  %7589 = vst [vmem:[#allocation67_spill] sm:$0xff] %v6443_v9  ;;  %v1520_v9 = vmul.f32 %v7591_v22, %v5282_v63  ;;  %v3260_v39 = vrot.slane %v3253_v52, 6  ;;  %v7594_v52 = vrot.slane %v6319_v46, 6 }
 0x4ea   : > { %2264 = vrot.lane.b32.xlu1 %v2261_v56, %s4131_s21  ;;  %2465 = vrot.lane.b32.xlu0 %v2462_v34, %s4129_s18  ;;  %v2372_v56 = vmul.f32 %v6349_v31, %v6108_v47  ;;  %v6477_v34 = vstv %s3874_s22  ;;  %v7595_v31 = vstv %s5704_s30  ;;  %s3847_s30 = sld [smem:[#allocation7 + $0x51]] }
 0x4eb   : > { %v3261_v22 = vsel %vm3138_vm7, %v7594_v52, %v3260_v39  ;;  %v1522_v57 = vadd.f32 %v1520_v9, %v7595_v31  ;;  %v3293_v46 = vmul.f32 %v6477_v34, %v5247_v50  ;;  %v7596_v39 = vstv %s5719_s9  ;;  %s3849_s9 = sld [smem:[#allocation7 + $0x52]] }
 0x4ec   : > { %v6471_v48 = vpop.permute.xlu1 %2447  ;;  %v6473_v26 = vpop.permute.xlu0 %2689  ;;  %v1525_v52 = vmul.f32 %v7596_v39, %v5327_v1  ;;  %v2414_v39 = vmul.f32 %v6376_v60, %v6108_v47  ;;  %v7601_v60 = vrot.slane %v6369_v43, 3  ;;  %s3855_s22 = sld [smem:[#allocation7 + $0x55]] }
 0x4ed   : > { %7592 = vst [vmem:[#allocation68_spill] sm:$0xff] %v6471_v48  ;;  %7593 = vst [vmem:[#allocation69_spill] sm:$0xff] %v6473_v26  ;;  %v6487_v48 = vmul.f32 %v6477_v34, %v5282_v63  ;;  %v7475_v26 = vrot.slane %v6467_v40, 3 }
 0x4ee   : > { %3264 = vrot.lane.b32.xlu1 %v3261_v22, %s4128_s10  ;;  %2507 = vrot.lane.b32.xlu0 %v2504_v35, %s4130_s24  ;;  %v2338_v22 = vsel %vm2279_vm6, %v7598_v15, %v2337_v24  ;;  %v2379_v35 = vrot.slane %v2372_v56, 3  ;;  %v1527_v33 = vadd.f32 %v1525_v52, %v1522_v57  ;;  %v3299_v15 = vrot.slane %v3293_v46, 6 }
 0x4ef   : > { %v2546_v9 = vsel %vm2279_vm6, %v2544_v45, %v7475_v26  ;;  %v6523_v24 = vmul.f32 %v6507_v62, %v5327_v1  ;;  %v6526_v56 = vstv %s6469_s17  ;;  %v7602_v52 = vrot.slane %v6487_v48, 6  ;;  %s3859_s17 = sld [smem:[#allocation7 + $0x57]] }
 0x4f0   : > { %v6499_v8 = vpop.permute.xlu1 %2489  ;;  %v6501_v58 = vpop.permute.xlu0 %2731  ;;  %v2380_v31 = vsel %vm2279_vm6, %v7601_v60, %v2379_v35  ;;  %v2656_v57 = vmul.f32 %v6526_v56, %v5290_v4  ;;  %v1542_v46 = vadd.f32 %v5807_v28, %v1527_v33  ;;  %v6547_v43 = vmul.f32 %v6526_v56, %v5327_v1 }
 0x4f1   : > { %7597 = vst [vmem:[#allocation70_spill] sm:$0xff] %v6501_v58  ;;  %v2614_v58 = vmul.f32 %v6507_v62, %v5290_v4  ;;  %v7476_v35 = vrot.slane %v6523_v24, 4 }
 0x4f2   : > { %2341 = vrot.lane.b32.xlu1 %v2338_v22, %s4126_s16  ;;  %2549 = vrot.lane.b32.xlu0 %v2546_v9, %s4131_s21  ;;  %v2456_v22 = vmul.f32 %v6405_v55, %v6108_v47  ;;  %v3301_v9 = vsel %vm3138_vm7, %v3299_v15, %v7602_v52  ;;  %v1555_v55 = vadd.f32 %v5969_v38, %v1542_v46 }
 0x4f3   : > { %v2498_v38 = vmul.f32 %v6418_v25, %v6108_v47  ;;  %v7605_v25 = vrot.slane %v6416_v37, 3 }
 0x4f4   : > { %v6528_v45 = vpop.permute.xlu1 %2531  ;;  %v6530_v26 = vpop.permute.xlu0 %2773  ;;  %v2463_v15 = vrot.slane %v2456_v22, 3  ;;  %v7477_v22 = vrot.slane %v6547_v43, 4 }
 0x4f5   : > { %7599 = vst [vmem:[#allocation71_spill] sm:$0xff] %v6528_v45  ;;  %7600 = vst [vmem:[#allocation72_spill] sm:$0xff] %v6530_v26  ;;  %v2421_v45 = vrot.slane %v2414_v39, 3  ;;  %v2620_v26 = vrot.slane %v2614_v58, 4  ;;  %v2662_v39 = vrot.slane %v2656_v57, 4  ;;  %v6556_v58 = vstv %s6509_s19  ;;  %s6704_s19 = sld [smem:[#allocation7 + $0x58]] }
 0x4f6   : > { %2383 = vrot.lane.b32.xlu1 %v2380_v31, %s4127_s13  ;;  %3304 = vrot.lane.b32.xlu0 %v3301_v9, %s4129_s18  ;;  %v7603_v31 = vrot.slane %v6393_v10, 3  ;;  %v2698_v46 = vmul.f32 %v6556_v58, %v5290_v4  ;;  %v1570_v10 = vadd.f32 %v5832_v0, %v1555_v55  ;;  %v2464_v9 = vsel %vm2279_vm6, %v7605_v25, %v2463_v15 }
 0x4f7   : > { %v2622_v52 = vsel %vm735_vm5, %v2620_v26, %v7476_v35  ;;  %v2505_v0 = vrot.slane %v2498_v38, 3  ;;  %v6600_v38 = vstv %s3849_s9  ;;  %s6732_s9 = sld [smem:[#allocation7 + $0x59]] }
 0x4f8   : > { %v6551_v28 = vpop.permute.xlu1 %2607  ;;  %v6553_v33 = vpop.permute.xlu0 %2815  ;;  %v2422_v60 = vsel %vm2279_vm6, %v7603_v31, %v2421_v45  ;;  %v6574_v45 = vmul.f32 %v6556_v58, %v5327_v1  ;;  %v2664_v31 = vsel %vm735_vm5, %v2662_v39, %v7477_v22  ;;  %v2704_v55 = vrot.slane %v2698_v46, 4 }
 0x4f9   : > { %v1583_v37 = vadd.f32 %v5998_v32, %v1570_v10  ;;  %v2782_v25 = vmul.f32 %v6600_v38, %v5290_v4 }
 0x4fa   : > { %2425 = vrot.lane.b32.xlu1 %v2422_v60, %s4128_s10  ;;  %2625 = vrot.lane.b32.xlu0 %v2622_v52, %s4126_s16  ;;  %v6586_v60 = vstv %s3847_s30  ;;  %v2540_v52 = vmul.f32 %v6447_v42, %v6108_v47  ;;  %v7478_v15 = vrot.slane %v6574_v45, 4  ;;  %s6716_s30 = sld [smem:[#allocation7 + $0xe]] }
 0x4fb   : > { %v2740_v35 = vmul.f32 %v6586_v60, %v5290_v4  ;;  %v6598_v39 = vmul.f32 %v6586_v60, %v5327_v1 }
 0x4fc   : > { %v6576_v57 = vpop.permute.xlu1 %2649  ;;  %v6578_v26 = vpop.permute.xlu0 %2891  ;;  %v2706_v10 = vsel %vm735_vm5, %v2704_v55, %v7478_v15 }
 0x4fd   : > { %7604 = vst [vmem:[#allocation73_spill] sm:$0xff] %v6578_v26  ;;  %v2746_v22 = vrot.slane %v2740_v35, 4  ;;  %v6620_v26 = vmul.f32 %v6600_v38, %v5327_v1  ;;  %v2788_v35 = vrot.slane %v2782_v25, 4 }
 0x4fe   : > { %2467 = vrot.lane.b32.xlu1 %v2464_v9, %s4129_s18  ;;  %2667 = vrot.lane.b32.xlu0 %v2664_v31, %s4127_s13  ;;  %v7607_v9 = vrot.slane %v6439_v17, 3  ;;  %v2547_v31 = vrot.slane %v2540_v52, 3  ;;  %v1598_v17 = vadd.f32 %v5858_v18, %v1583_v37  ;;  %v6628_v52 = vstv %s3851_s5  ;;  %s6744_s5 = sld [smem:[#allocation7 + $0x30]] }
 0x4ff   : > { %v2616_v18 = vmul.f32 %v6507_v62, %v6108_v47  ;;  %v2824_v37 = vmul.f32 %v6628_v52, %v5290_v4  ;;  %v7480_v15 = vrot.slane %v6620_v26, 4  ;;  %v7611_v62 = vrot.slane %v6487_v48, 6 }
 0x500   : > { %v6602_v46 = vpop.permute.xlu1 %2691  ;;  %v6604_v42 = vpop.permute.xlu0 %2933  ;;  %v2506_v32 = vsel %vm2279_vm6, %v7607_v9, %v2505_v0  ;;  %v7479_v0 = vrot.slane %v6598_v39, 4 }
 0x501   : > { %7606 = vst [vmem:[#allocation74_spill] sm:$0xff] %v6604_v42  ;;  %v3295_v42 = vmul.f32 %v6477_v34, %v5413_v21 }
 0x502   : > { %2509 = vrot.lane.b32.xlu1 %v2506_v32, %s4130_s24  ;;  %2709 = vrot.lane.b32.xlu0 %v2706_v10, %s4128_s10  ;;  %v7609_v32 = vrot.slane %v6467_v40, 3  ;;  %v2748_v10 = vsel %vm735_vm5, %v2746_v22, %v7479_v0  ;;  %v1611_v40 = vadd.f32 %v6021_v6, %v1598_v17  ;;  %v2623_v6 = vrot.slane %v2616_v18, 4 }
 0x503   : > { %v3302_v25 = vrot.slane %v3295_v42, 6  ;;  %v2790_v42 = vsel %vm735_vm5, %v2788_v35, %v7480_v15  ;;  %v2830_v17 = vrot.slane %v2824_v37, 4  ;;  %v6672_v18 = vstv %s3855_s22  ;;  %s6793_s22 = sld [smem:[#allocation7 + $0x3f]] }
 0x504   : > { %v6624_v9 = vpop.permute.xlu1 %2733  ;;  %v6626_v55 = vpop.permute.xlu0 %2975  ;;  %v2548_v34 = vsel %vm2279_vm6, %v7609_v32, %v2547_v31  ;;  %v6646_v31 = vmul.f32 %v6628_v52, %v5327_v1  ;;  %v1626_v48 = vadd.f32 %v5887_v59, %v1611_v40  ;;  %v7614_v59 = vrot.slane %v6523_v24, 4 }
 0x505   : > { %7608 = vst [vmem:[#allocation75_spill] sm:$0xff] %v6626_v55  ;;  %v3303_v0 = vsel %vm3138_vm7, %v7611_v62, %v3302_v25  ;;  %v2700_v62 = vmul.f32 %v6556_v58, %v6108_v47 }
 0x506   : > { %2551 = vrot.lane.b32.xlu1 %v2548_v34, %s4131_s21  ;;  %2751 = vrot.lane.b32.xlu0 %v2748_v10, %s4129_s18  ;;  %v6658_v34 = vstv %s3876_s25  ;;  %v2658_v10 = vmul.f32 %v6526_v56, %v6108_v47  ;;  %v7483_v35 = vrot.slane %v6646_v31, 4  ;;  %v2624_v40 = vsel %vm735_vm5, %v7614_v59, %v2623_v6  ;;  %s6764_s25 = sld [smem:[#allocation7 + $0x5a]] }
 0x507   : > { %v6664_v55 = vmul.f32 %v6658_v34, %v5282_v63  ;;  %v3335_v25 = vmul.f32 %v6658_v34, %v5247_v50  ;;  %v1639_v58 = vadd.f32 %v6045_v7, %v1626_v48  ;;  %v2707_v59 = vrot.slane %v2700_v62, 4 }
 0x508   : > { %v6648_v22 = vpop.permute.xlu1 %2775  ;;  %v6650_v32 = vpop.permute.xlu0 %3017  ;;  %v2665_v15 = vrot.slane %v2658_v10, 4  ;;  %v6702_v10 = vstv %s3857_s12  ;;  %s6813_s12 = sld [smem:[#allocation7 + $0x5c]] }
 0x509   : > { %7610 = vst [vmem:[#allocation76_spill] sm:$0xff] %v6650_v32  ;;  %v7481_v32 = vrot.slane %v6664_v55, 6 }
 0x50a   : > { %3306 = vrot.lane.b32.xlu1 %v3303_v0, %s4129_s18  ;;  %2793 = vrot.lane.b32.xlu0 %v2790_v42, %s4130_s24  ;;  %v2900_v0 = vmul.f32 %v6672_v18, %v5290_v4  ;;  %v2832_v42 = vsel %vm735_vm5, %v2830_v17, %v7483_v35  ;;  %v2742_v17 = vmul.f32 %v6586_v60, %v6108_v47 }
 0x50b   : > { %v1654_v60 = vadd.f32 %v5909_v13, %v1639_v58  ;;  %v7616_v13 = vrot.slane %v6574_v45, 4  ;;  %v1751_v45 = vadd.f32 %v6000_v61, %v6004_v16  ;;  %v2826_v16 = vmul.f32 %v6628_v52, %v6108_v47 }
 0x50c   : > { %v6674_v37 = vpop.permute.xlu1 %2817  ;;  %v6676_v56 = vpop.permute.xlu0 %3059  ;;  %v6762_v61 = vstv %s6704_s19  ;;  %s6883_s19 = sld [smem:[#allocation7 + $0x5e]] }
 0x50d   : > { %7612 = vst [vmem:[#allocation77_spill] sm:$0xff] %v6674_v37  ;;  %7613 = vst [vmem:[#allocation78_spill] sm:$0xff] %v6676_v56  ;;  %v3341_v56 = vrot.slane %v3335_v25, 6  ;;  %v6694_v37 = vmul.f32 %v6672_v18, %v5327_v1  ;;  %v2906_v25 = vrot.slane %v2900_v0, 5  ;;  %v2749_v0 = vrot.slane %v2742_v17, 4 }
 0x50e   : > { %2627 = vrot.lane.b32.xlu1 %v2624_v40, %s4126_s16  ;;  %2835 = vrot.lane.b32.xlu0 %v2832_v42, %s4131_s21  ;;  %v7615_v40 = vrot.slane %v6547_v43, 4  ;;  %v2942_v42 = vmul.f32 %v6702_v10, %v5290_v4  ;;  %v2708_v58 = vsel %vm735_vm5, %v7616_v13, %v2707_v59 }
 0x50f   : > { %v3343_v48 = vsel %vm3138_vm7, %v3341_v56, %v7481_v32  ;;  %v7482_v43 = vrot.slane %v6694_v37, 5 }
 0x510   : > { %v6696_v24 = vpop.permute.xlu1 %2893  ;;  %v6698_v6 = vpop.permute.xlu0 %3101  ;;  %v2666_v7 = vsel %vm735_vm5, %v7615_v40, %v2665_v15  ;;  %v6722_v15 = vmul.f32 %v6702_v10, %v5327_v1  ;;  %v2784_v40 = vmul.f32 %v6600_v38, %v6108_v47  ;;  %v2948_v32 = vrot.slane %v2942_v42, 5 }
 0x511   : > { %v1667_v38 = vadd.f32 %v6070_v2, %v1654_v60 }
 0x512   : > { %2669 = vrot.lane.b32.xlu1 %v2666_v7, %s4127_s13  ;;  %3346 = vrot.lane.b32.xlu0 %v3343_v48, %s4130_s24  ;;  %v6730_v7 = vstv %s3859_s17  ;;  %v2908_v48 = vsel %vm1281_vm12, %v2906_v25, %v7482_v43  ;;  %v7484_v59 = vrot.slane %v6722_v15, 5  ;;  %v2791_v43 = vrot.slane %v2784_v40, 4  ;;  %s6844_s17 = sld [smem:[#allocation7 + $0x5d]] }
 0x513   : > { %v2984_v17 = vmul.f32 %v6730_v7, %v5290_v4  ;;  %v6752_v25 = vmul.f32 %v6730_v7, %v5327_v1  ;;  %v1682_v52 = vadd.f32 %v5940_v51, %v1667_v38  ;;  %v2833_v51 = vrot.slane %v2826_v16, 4 }
 0x514   : > { %v6724_v62 = vpop.permute.xlu1 %2935  ;;  %v6726_v56 = vpop.permute.xlu0 %3178  ;;  %v2950_v60 = vsel %vm1281_vm12, %v2948_v32, %v7484_v59  ;;  %v1701_v32 = vmul.f32 %v5347_v3, %v5413_v21  ;;  %v6791_v38 = vstv %s6732_s9  ;;  %s6941_s9 = sld [smem:[#allocation7 + $0x60]] }
 0x515   : > { %v2990_v35 = vrot.slane %v2984_v17, 5  ;;  %v3068_v3 = vmul.f32 %v6791_v38, %v5290_v4  ;;  %v1695_v16 = vadd.f32 %v6093_v27, %v1682_v52  ;;  %v6830_v27 = vstv %s6764_s25  ;;  %s6990_s25 = sld [smem:[#allocation7 + $0x15]] }
 0x516   : > { %2711 = vrot.lane.b32.xlu1 %v2708_v58, %s4128_s10  ;;  %2911 = vrot.lane.b32.xlu0 %v2908_v48, %s4126_s16  ;;  %v7617_v58 = vrot.slane %v6598_v39, 4  ;;  %v3026_v39 = vmul.f32 %v6762_v61, %v5290_v4 }
 0x518   : > { %v6754_v42 = vpop.permute.xlu1 %2977  ;;  %v1766_v13 = vpop.permute.xlu0 %1765  ;;  %v2750_v48 = vsel %vm735_vm5, %v7617_v58, %v2749_v0  ;;  %v6774_v0 = vstv %s6716_s30  ;;  %v3032_v59 = vrot.slane %v3026_v39, 5  ;;  %s6911_s30 = sld [smem:[#allocation7 + $0x5f]] }
 0x519   : > { %v1771_v2 = vadd.f32 %v1766_v13, %v1751_v45  ;;  %v7485_v45 = vrot.slane %v6752_v25, 5  ;;  %v6781_v13 = vmul.f32 %v6762_v61, %v5327_v1 }
 0x51a   : > { %2753 = vrot.lane.b32.xlu1 %v2750_v48, %s4129_s18  ;;  %2953 = vrot.lane.b32.xlu0 %v2950_v60, %s4127_s13  ;;  %v7619_v48 = vrot.slane %v6620_v26, 4  ;;  %v3337_v26 = vmul.f32 %v6658_v34, %v5413_v21 }
 0x51b   : > { %v1793_v40 = vadd.f32 %v6023_v29, %v1771_v2  ;;  %v2992_v2 = vsel %vm1281_vm12, %v2990_v35, %v7485_v45  ;;  %v6811_v35 = vstv %s6744_s5  ;;  %v7487_v39 = vrot.slane %v6781_v13, 5  ;;  %s6966_s5 = sld [smem:[#allocation7 + $0x61]] }
 0x51c   : > { %v6785_v17 = vpop.permute.xlu1 %3019  ;;  %v1808_v58 = vpop.permute.xlu0 %1807  ;;  %v2792_v60 = vsel %vm735_vm5, %v7619_v48, %v2791_v43  ;;  %v6808_v43 = vmul.f32 %v6774_v0, %v5247_v50  ;;  %v2902_v45 = vmul.f32 %v6672_v18, %v6108_v47  ;;  %v3344_v18 = vrot.slane %v3337_v26, 6 }
 0x51d   : > { %7618 = vst [vmem:[#allocation79_spill] sm:$0xff] %v6785_v17  ;;  %v1813_v29 = vadd.f32 %v1808_v58, %v1793_v40  ;;  %v1718_v17 = vmul.f32 %v5928_v5, %v6108_v47  ;;  %v6820_v40 = vmul.f32 %v6791_v38, %v5327_v1  ;;  %v1709_v58 = vrot.slane %v1701_v32, 1 }
 0x51e   : > { %2795 = vrot.lane.b32.xlu1 %v2792_v60, %s4130_s24  ;;  %2995 = vrot.lane.b32.xlu0 %v2992_v2, %s4128_s10  ;;  %v7621_v60 = vrot.slane %v6646_v31, 4  ;;  %v3034_v52 = vsel %vm1281_vm12, %v3032_v59, %v7487_v39  ;;  %v3110_v32 = vmul.f32 %v6830_v27, %v5290_v4  ;;  %v7623_v26 = vrot.slane %v6664_v55, 6 }
 0x51f   : > { %v1835_v5 = vadd.f32 %v6047_v19, %v1813_v29  ;;  %v3074_v29 = vrot.slane %v3068_v3, 5  ;;  %v7624_v55 = vrot.slane %v5959_v54, 1 }
 0x520   : > { %v6822_v34 = vpop.permute.xlu1 %3061  ;;  %v1850_v48 = vpop.permute.xlu0 %1849  ;;  %v2834_v2 = vsel %vm735_vm5, %v7621_v60, %v2833_v51  ;;  %v1725_v51 = vrot.slane %v1718_v17, 1  ;;  %v2909_v60 = vrot.slane %v2902_v45, 5 }
 0x521   : > { %7620 = vst [vmem:[#allocation80_spill] sm:$0xff] %v6822_v34  ;;  %v1855_v19 = vadd.f32 %v1850_v48, %v1835_v5  ;;  %v7622_v34 = vrot.slane %v5372_v20, 1  ;;  %v3377_v5 = vmul.f32 %v6811_v35, %v5247_v50  ;;  %v7486_v48 = vrot.slane %v6820_v40, 5 }
 0x522   : > { %2837 = vrot.lane.b32.xlu1 %v2834_v2, %s4131_s21  ;;  %3037 = vrot.lane.b32.xlu0 %v3034_v52, %s4129_s18  ;;  %v6850_v20 = vmul.f32 %v6830_v27, %v5327_v1  ;;  %v6858_v2 = vstv %s6793_s22  ;;  %v3116_v52 = vrot.slane %v3110_v32, 5  ;;  %s7023_s22 = sld [smem:[#allocation7 + $0x46]] }
 0x523   : > { %v1710_v31 = vsel %vm1705_vm3, %v7622_v34, %v1709_v58  ;;  %v1877_v3 = vadd.f32 %v6072_v14, %v1855_v19  ;;  %v3345_v34 = vsel %vm3138_vm7, %v7623_v26, %v3344_v18  ;;  %v2944_v14 = vmul.f32 %v6702_v10, %v6108_v47 }
 0x524   : > { %v1714_v59 = vadd.f32 %v1710_v31, %v1695_v16  ;;  %v6852_v17 = vpop.permute.xlu1 %3103  ;;  %v1892_v58 = vpop.permute.xlu0 %1891  ;;  %v3076_v19 = vsel %vm1281_vm12, %v3074_v29, %v7486_v48  ;;  %v6867_v31 = vmul.f32 %v6811_v35, %v5282_v63  ;;  %v1726_v18 = vsel %vm1705_vm3, %v7624_v55, %v1725_v51 }
 0x525   : > { %v1897_v16 = vadd.f32 %v1892_v58, %v1877_v3  ;;  %v6876_v10 = vmul.f32 %v6774_v0, %v5282_v63  ;;  %v2003_v45 = vmul.f32 %v6858_v2, %v5290_v4  ;;  %v6881_v29 = vstv %s6813_s12  ;;  %s7248_s12 = scalar_lea.vmem [#allocation8], %s3775_s23  ;;  %s3886_s23 = sshll.u32 %s4199_s6, 12 }
 0x526   : > { %3348 = vrot.lane.b32.xlu1 %v3345_v34, %s4130_s24  ;;  %3079 = vrot.lane.b32.xlu0 %v3076_v19, %s4130_s24  ;;  %v1730_v32 = vadd.f32 %v1726_v18, %v1714_v59  ;;  %v7488_v51 = vrot.slane %v6850_v20, 5  ;;  %v6889_v3 = vmul.f32 %v6858_v2, %v5327_v1  ;;  %v1993_v34 = vrot.slane %v6808_v43, 2  ;;  %s3669_s6 = scalar_lea.sflag [#allocation5], %s4298_s20 }
 0x527   : > { %v1919_v54 = vadd.f32 %v6095_v23, %v1897_v16  ;;  %v2951_v19 = vrot.slane %v2944_v14, 5  ;;  %v2986_v55 = vmul.f32 %v6730_v7, %v6108_v47  ;;  %v3187_v59 = vmul.f32 %v6881_v29, %v5290_v4 }
 0x528   : > { %v6891_v58 = vpop.permute.xlu1 %3180  ;;  %v1934_v26 = vpop.permute.xlu0 %1933  ;;  %v7626_v16 = vrot.slane %v6694_v37, 5  ;;  %v3118_v48 = vsel %vm1281_vm12, %v3116_v52, %v7488_v51  ;;  %v3384_v39 = vrot.slane %v6867_v31, 6  ;;  %v1994_v7 = vrot.slane %v6876_v10, 2 }
 0x529   : > { %7625 = vst [vmem:[#allocation81_spill] sm:$0xff] %v6891_v58  ;;  %v1939_v23 = vadd.f32 %v1934_v26, %v1919_v54  ;;  %v2009_v43 = vrot.slane %v2003_v45, 2  ;;  %v3383_v14 = vrot.slane %v3377_v5, 6  ;;  %v6909_v58 = vstv %s6844_s17  ;;  %s3682_s17 = sshll.u32 %s7248_s12, 4  ;;  %s7345_s17 = int_to_ptr.vmem [resolvable:$true] %s3682_s17 }
 0x52a   : > { %v2910_v18 = vsel %vm1281_vm12, %v7626_v16, %v2909_v60  ;;  %3121 = vrot.lane.b32.xlu0 %v3118_v48, %s4131_s21  ;;  %v1752_v37 = vadd.f32 %v6119_v11, %v1730_v32  ;;  %v2010_v52 = vrot.slane %v6889_v3, 2  ;;  %v6918_v54 = vmul.f32 %v6881_v29, %v5327_v1 }
 0x52b   : > { %2913 = vrot.lane.b32.xlu1 %v2910_v18, %s4126_s16  ;;  %v1961_v60 = vadd.f32 %v6121_v41, %v1939_v23  ;;  %v7627_v45 = vrot.slane %v6722_v15, 5  ;;  %v2993_v16 = vrot.slane %v2986_v55, 5  ;;  %v3193_v18 = vrot.slane %v3187_v59, 6 }
 0x52c   : > { %v1768_v48 = vpop.permute.xlu1 %1767  ;;  %v1976_v26 = vpop.permute.xlu0 %1975  ;;  %v3028_v11 = vmul.f32 %v6762_v61, %v6108_v47  ;;  %v3385_v23 = vsel %vm3138_vm7, %v3383_v14, %v3384_v39  ;;  %v3229_v51 = vmul.f32 %v6909_v58, %v5290_v4  ;;  %v1995_v15 = vsel %vm1992_vm4, %v1993_v34, %v1994_v7 }
 0x52d   : > { %v2952_v5 = vsel %vm1281_vm12, %v7627_v45, %v2951_v19  ;;  %v1772_v32 = vadd.f32 %v1768_v48, %v1752_v37  ;;  %v1981_v41 = vadd.f32 %v1976_v26, %v1961_v60  ;;  %v2011_v19 = vsel %vm1992_vm4, %v2009_v43, %v2010_v52 }
 0x52e   : > { %3388 = vrot.lane.b32.xlu0 %v3385_v23, %s4131_s21  ;;  %v6939_v61 = vstv %s6883_s19  ;;  %v3194_v14 = vrot.slane %v6918_v54, 6  ;;  %v6947_v34 = vmul.f32 %v6909_v58, %v5327_v1  ;;  %v7628_v60 = vrot.slane %v6752_v25, 5 }
 0x52f   : > { %2955 = vrot.lane.b32.xlu1 %v2952_v5, %s4127_s13  ;;  %v1794_v55 = vadd.f32 %v6144_v53, %v1772_v32  ;;  %v2000_v59 = vadd.f32 %v1995_v15, %v1981_v41  ;;  %v3035_v26 = vrot.slane %v3028_v11, 5  ;;  %v3070_v45 = vmul.f32 %v6791_v38, %v6108_v47 }
 0x530   : > { %v1810_v37 = vpop.permute.xlu1 %1809  ;;  %v6949_v43 = vpop.permute.xlu0 %3220  ;;  %v2994_v48 = vsel %vm1281_vm12, %v7628_v60, %v2993_v16  ;;  %v3271_v53 = vmul.f32 %v6939_v61, %v5290_v4  ;;  %v3195_v41 = vsel %vm3138_vm7, %v3193_v18, %v3194_v14  ;;  %v3235_v23 = vrot.slane %v3229_v51, 6 }
 0x531   : > { %v2016_v5 = vadd.f32 %v2011_v19, %v2000_v59  ;;  %v1814_v32 = vadd.f32 %v1810_v37, %v1794_v55  ;;  %v6964_v25 = vstv %s6911_s30  ;;  %v3236_v11 = vrot.slane %v6947_v34, 6 }
 0x532   : > { %3198 = vrot.lane.b32.xlu0 %v3195_v41, %s4126_s16  ;;  %v6973_v15 = vmul.f32 %v6939_v61, %v5327_v1  ;;  %v7629_v19 = vrot.slane %v6781_v13, 5  ;;  %v3077_v59 = vrot.slane %v3070_v45, 5  ;;  %v3277_v37 = vrot.slane %v3271_v53, 6 }
 0x533   : > { %2997 = vrot.lane.b32.xlu1 %v2994_v48, %s4128_s10  ;;  %v1836_v38 = vadd.f32 %v6165_v30, %v1814_v32  ;;  %v2038_v16 = vadd.f32 %v6146_v44, %v2016_v5  ;;  %v3112_v30 = vmul.f32 %v6830_v27, %v6108_v47  ;;  %v3237_v44 = vsel %vm3138_vm7, %v3235_v23, %v3236_v11 }
 0x534   : > { %v1852_v51 = vpop.permute.xlu1 %1851  ;;  %v2053_v18 = vpop.permute.xlu0 %2052  ;;  %v3036_v55 = vsel %vm1281_vm12, %v7629_v19, %v3035_v26  ;;  %v3313_v5 = vmul.f32 %v6964_v25, %v5290_v4  ;;  %v6988_v13 = vstv %s6941_s9  ;;  %v3278_v45 = vrot.slane %v6973_v15, 6  ;;  %s7343_s9 = scalar_lea.hbm %s7401_s7, %s3886_s23 }
 0x535   : > { %v1856_v60 = vadd.f32 %v1852_v51, %v1836_v38  ;;  %v2058_v48 = vadd.f32 %v2053_v18, %v2038_v16  ;;  %v6997_v53 = vmul.f32 %v6964_v25, %v5327_v1  ;;  %v7630_v23 = vrot.slane %v6820_v40, 5 }
 0x536   : > { %3240 = vrot.lane.b32.xlu0 %v3237_v44, %s4127_s13  ;;  %v3119_v16 = vrot.slane %v3112_v30, 5  ;;  %v3355_v51 = vmul.f32 %v6988_v13, %v5290_v4  ;;  %v3319_v19 = vrot.slane %v3313_v5, 6  ;;  %v3379_v40 = vmul.f32 %v6811_v35, %v5413_v21 }
 0x537   : > { %3039 = vrot.lane.b32.xlu1 %v3036_v55, %s4129_s18  ;;  %v1878_v26 = vadd.f32 %v6188_v36, %v1856_v60  ;;  %v2080_v27 = vadd.f32 %v6167_v49, %v2058_v48  ;;  %v3078_v38 = vsel %vm1281_vm12, %v7630_v23, %v3077_v59  ;;  %v3279_v49 = vsel %vm3138_vm7, %v3277_v37, %v3278_v45  ;;  %v7631_v60 = vld [vmem:[#allocation46_spill] sm:$0xff] }
 0x538   : > { %v1894_v32 = vpop.permute.xlu1 %1893  ;;  %v2095_v41 = vpop.permute.xlu0 %2094  ;;  %v7013_v55 = vmul.f32 %v6988_v13, %v5327_v1  ;;  %v7016_v59 = vstv %s6966_s5  ;;  %v3320_v37 = vrot.slane %v6997_v53, 6  ;;  %v1988_v44 = vmul.f32 %v6774_v0, %v5413_v21  ;;  %v7643_v53 = vld [vmem:[#allocation58_spill] sm:$0xff]  ;;  %s4049_s5 = scalar_lea.vmem %s7345_s17, 4096 }
 0x539   : > { %v1898_v36 = vadd.f32 %v1894_v32, %v1878_v26  ;;  %v2100_v18 = vadd.f32 %v2095_v41, %v2080_v27  ;;  %v7632_v26 = vrot.slane %v6850_v20, 5  ;;  %v2005_v32 = vmul.f32 %v6858_v2, %v6108_v47  ;;  %p4050_p12 = scmp.ne.s32.totalorder %s7345_s17, %s4049_s5 }
 0x53a   : > { %3282 = vrot.lane.b32.xlu0 %v3279_v49, %s4128_s10  ;;  %v3189_v41 = vmul.f32 %v6881_v29, %v6108_v47  ;;  %v3321_v0 = vsel %vm3138_vm7, %v3319_v19, %v3320_v37  ;;  %v3386_v20 = vrot.slane %v3379_v40, 6  ;;  %v3362_v2 = vrot.slane %v7013_v55, 6  ;;  %v7634_v49 = vld [vmem:[#allocation47_spill] sm:$0xff] }
 0x53b   : > { %3081 = vrot.lane.b32.xlu1 %v3078_v38, %s4130_s24  ;;  %v1920_v30 = vadd.f32 %v6211_v12, %v1898_v36  ;;  %v2122_v48 = vadd.f32 %v7631_v60, %v2100_v18  ;;  %v3120_v27 = vsel %vm1281_vm12, %v7632_v26, %v3119_v16  ;;  %v3361_v12 = vrot.slane %v3355_v51, 6  ;;  %v7633_v51 = vld [vmem:[#allocation48_spill] sm:$0xff]  ;;  %p4051_p2 = pnand %p4050_p12, %p7702_p0 }
 0x53c   : > { %v1936_v5 = vpop.permute.xlu1 %1935  ;;  %v2137_v35 = vpop.permute.xlu0 %2136  ;;  %v3397_v36 = vmul.f32 %v7016_v59, %v5290_v4  ;;  %v7041_v16 = vstv %s6990_s25  ;;  %v1996_v18 = vrot.slane %v1988_v44, 2  ;;  %v7047_v19 = vmul.f32 %v7016_v59, %v5327_v1  ;;  %s4132_s25 = smov [#allocation8]  }
 0x53d   : > { %v1940_v23 = vadd.f32 %v1936_v5, %v1920_v30  ;;  %v2142_v38 = vadd.f32 %v2137_v35, %v2122_v48  ;;  %v2012_v60 = vrot.slane %v2005_v32, 2  ;;  %v3387_v40 = vsel %vm3138_vm7, %v3384_v39, %v3386_v20  ;;  %p4052_p7 = pneg %p4051_p2 }
 0x53e   : > { %3324 = vrot.lane.b32.xlu0 %v3321_v0, %s4129_s18  ;;  %v3363_v35 = vsel %vm3138_vm7, %v3361_v12, %v3362_v2  ;;  %v3196_v26 = vrot.slane %v3189_v41, 6  ;;  %v1997_v32 = vsel %vm1992_vm4, %v1994_v7, %v1996_v18  ;;  %v2273_v39 = vmul.f32 %v7041_v16, %v5247_v50  ;;  %v7635_v41 = vld [vmem:[#allocation49_spill] sm:$0xff] }
 0x53f   : > { %3123 = vrot.lane.b32.xlu1 %v3120_v27, %s4131_s21  ;;  %v1962_v29 = vadd.f32 %v7633_v51, %v1940_v23  ;;  %v2164_v30 = vadd.f32 %v7634_v49, %v2142_v38  ;;  %v3403_v23 = vrot.slane %v3397_v36, 6  ;;  %v3231_v38 = vmul.f32 %v6909_v58, %v6108_v47 }
 0x540   : > { %v1978_v48 = vpop.permute.xlu1 %1977  ;;  %v2179_v5 = vpop.permute.xlu0 %2178  ;;  %v7066_v31 = vmul.f32 %v7041_v16, %v5282_v63  ;;  %v3404_v58 = vrot.slane %v7047_v19, 6  ;;  %v7071_v36 = vstv %s7023_s22  ;;  %v2013_v10 = vsel %vm1992_vm4, %v2010_v52, %v2012_v60  ;;  %s4053_s22 = sshll.u32 %s4132_s25, 4  ;;  %s4054_s22 = int_to_ptr.vmem [resolvable:$false] %s4053_s22 }
 0x541   : > { %v1982_v44 = vadd.f32 %v1978_v48, %v1962_v29  ;;  %v2184_v27 = vadd.f32 %v2179_v5, %v2164_v30  ;;  %v3197_v51 = vsel %vm3138_vm7, %v3194_v14, %v3196_v26  ;;  %v3273_v29 = vmul.f32 %v6939_v61, %v6108_v47  ;;  %v7636_v61 = vld [vmem:[#allocation50_spill] sm:$0xff]  ;;  %v7637_v48 = vld [vmem:[#allocation51_spill] sm:$0xff]  ;;  %p4056_p8 = scmp.lt.s32.totalorder %s7345_s17, %s4054_s22 }
 0x542   : > { %3366 = vrot.lane.b32.xlu0 %v3363_v35, %s4130_s24  ;;  %v2290_v18 = vmul.f32 %v7071_v36, %v5290_v4  ;;  %v3405_v3 = vsel %vm3138_vm7, %v3403_v23, %v3404_v58  ;;  %v3238_v52 = vrot.slane %v3231_v38, 6  ;;  %v2281_v54 = vrot.slane %v7066_v31, 3 }
 0x543   : > { %3390 = vrot.lane.b32.xlu1 %v3387_v40, %s4131_s21  ;;  %v2001_v12 = vadd.f32 %v1997_v32, %v1982_v44  ;;  %v2206_v0 = vadd.f32 %v7635_v41, %v2184_v27  ;;  %v7093_v14 = vmul.f32 %v7071_v36, %v5327_v1  ;;  %v2280_v35 = vrot.slane %v2273_v39, 3 }
 0x544   : > { %v7076_v7 = vpop.permute.xlu1 %3222  ;;  %v2221_v20 = vpop.permute.xlu0 %2220  ;;  %v3280_v44 = vrot.slane %v3273_v29, 6  ;;  %v2296_v27 = vrot.slane %v2290_v18, 3  ;;  %v3239_v32 = vsel %vm3138_vm7, %v3236_v11, %v3238_v52  ;;  %v3399_v15 = vmul.f32 %v7016_v59, %v6108_v47 }
 0x545   : > { %v2017_v49 = vadd.f32 %v2013_v10, %v2001_v12  ;;  %v2226_v30 = vadd.f32 %v2221_v20, %v2206_v0  ;;  %v3315_v12 = vmul.f32 %v6964_v25, %v6108_v47  ;;  %v2282_v41 = vsel %vm2279_vm6, %v2280_v35, %v2281_v54  ;;  %v7638_v10 = vld [vmem:[#allocation52_spill] sm:$0xff] }
 0x546   : > { %3408 = vrot.lane.b32.xlu0 %v3405_v3, %s4131_s21  ;;  %v2297_v39 = vrot.slane %v7093_v14, 3  ;;  %v3281_v34 = vsel %vm3138_vm7, %v3278_v45, %v3280_v44  ;;  %v7639_v3 = vld [vmem:[#allocation54_spill] sm:$0xff]  ;;  %v7640_v14 = vld [vmem:[#allocation53_spill] sm:$0xff]  ;;  %v7642_v44 = vld [vmem:[#allocation55_spill] sm:$0xff] }
 0x547   : > { %3200 = vrot.lane.b32.xlu1 %v3197_v51, %s4126_s16  ;;  %v2039_v60 = vadd.f32 %v7636_v61, %v2017_v49  ;;  %v2248_v5 = vadd.f32 %v7637_v48, %v2226_v30  ;;  %v3322_v49 = vrot.slane %v3315_v12, 6  ;;  %v3357_v30 = vmul.f32 %v6988_v13, %v6108_v47  ;;  %v7641_v13 = vld [vmem:[#allocation56_spill] sm:$0xff]  ;;  %s3838_s16 = sld [smem:[#allocation7 + $0x1c]] }
 0x548   : > { %v2055_v40 = vpop.permute.xlu1 %2054  ;;  %v2263_v26 = vpop.permute.xlu0 %2262  ;;  %v2298_v25 = vsel %vm2279_vm6, %v2296_v27, %v2297_v39 }
 0x549   : > { %v2059_v23 = vadd.f32 %v2055_v40, %v2039_v60  ;;  %v2268_v38 = vadd.f32 %v2263_v26, %v2248_v5  ;;  %v3323_v40 = vsel %vm3138_vm7, %v3320_v37, %v3322_v49  ;;  %v3364_v35 = vrot.slane %v3357_v30, 6  ;;  %v7646_v30 = vld [vmem:[#allocation59_spill] sm:$0xff] }
 0x54b   : > { %3242 = vrot.lane.b32.xlu1 %v3239_v32, %s4127_s13  ;;  %v2287_v0 = vadd.f32 %v2282_v41, %v2268_v38  ;;  %v2081_v20 = vadd.f32 %v7638_v10, %v2059_v23  ;;  %v3365_v59 = vsel %vm3138_vm7, %v3362_v2, %v3364_v35  ;;  %v3406_v41 = vrot.slane %v3399_v15, 6  ;;  %s3839_s13 = sld [smem:[#allocation7 + $0x4d]] }
 0x54c   : > { %v2097_v51 = vpop.permute.xlu1 %2096  ;;  %v7108_v29 = vpop.permute.xlu0 %3262 }
 0x54d   : > { %v2101_v11 = vadd.f32 %v2097_v51, %v2081_v20  ;;  %v2303_v18 = vadd.f32 %v2298_v25, %v2287_v0  ;;  %v7644_v0 = vld [vmem:[#allocation57_spill] sm:$0xff]  ;;  %v2292_v25 = vmul.f32 %v7071_v36, %v6108_v47  ;;  %v3407_v2 = vsel %vm3138_vm7, %v3404_v58, %v3406_v41 }
 0x54e   : > { %v2559_v15 = vstv %s3838_s16  ;;  %s4055_s16 = scalar_lea.vmem %s4054_s22, 8192 }
 0x54f   : > { %3284 = vrot.lane.b32.xlu1 %v3281_v34, %s4128_s10  ;;  %v2123_v52 = vadd.f32 %v7639_v3, %v2101_v11  ;;  %v2325_v61 = vadd.f32 %v7640_v14, %v2303_v18  ;;  %v2275_v34 = vmul.f32 %v7041_v16, %v5413_v21  ;;  %v7645_v18 = vld [vmem:[#allocation60_spill] sm:$0xff]  ;;  %v7147_v19 = vmul.f32 %v2559_v15, %v5282_v63  ;;  %s3852_s10 = sld [smem:[#allocation7 + $0x23]]  ;;  %p4057_p9 = scmp.lt.s32.totalorder %s4055_s16, %s4049_s5 }
 0x550   : > { %v2139_v60 = vpop.permute.xlu1 %2138  ;;  %v2340_v48 = vpop.permute.xlu0 %2339 }
 0x551   : > { %v2143_v45 = vadd.f32 %v2139_v60, %v2123_v52  ;;  %v2345_v5 = vadd.f32 %v2340_v48, %v2325_v61  ;;  %v2283_v52 = vrot.slane %v2275_v34, 3  ;;  %v2299_v60 = vrot.slane %v2292_v25, 3  ;;  %p4058_p10 = por %p4057_p9, %p4056_p8 }
 0x553   : > { %3326 = vrot.lane.b32.xlu1 %v3323_v40, %s4129_s18  ;;  %v2165_v26 = vadd.f32 %v7641_v13, %v2143_v45  ;;  %v2367_v27 = vadd.f32 %v7642_v44, %v2345_v5  ;;  %v2284_v36 = vsel %vm2279_vm6, %v2281_v54, %v2283_v52  ;;  %v7647_v45 = vld [vmem:[#allocation61_spill] sm:$0xff]  ;;  %v2575_v40 = vstv %s3839_s13  ;;  %v7651_v52 = vld [vmem:[#allocation66_spill] sm:$0xff]  ;;  %s3853_s18 = sld [smem:[#allocation7 + $0x54]]  ;;  %p4059_p1 = pnand %p4058_p10, %p4052_p7 }
 0x554   : > { %v2181_v23 = vpop.permute.xlu1 %2180  ;;  %v2382_v38 = vpop.permute.xlu0 %2381  ;;  %v2560_v44 = vmul.f32 %v2559_v15, %v5247_v50  ;;  %v2567_v54 = vrot.slane %v7147_v19, 4 }
 0x555   : > { %v2185_v32 = vadd.f32 %v2181_v23, %v2165_v26  ;;  %v2387_v12 = vadd.f32 %v2382_v38, %v2367_v27  ;;  %v2300_v26 = vsel %vm2279_vm6, %v2297_v39, %v2299_v60  ;;  %v2576_v27 = vmul.f32 %v2575_v40, %v5290_v4 }
 0x556   : > { %v2577_v38 = vmul.f32 %v2575_v40, %v5327_v1 }
 0x557   : > { %3368 = vrot.lane.b32.xlu1 %v3365_v59, %s4130_s24  ;;  %v2207_v37 = vadd.f32 %v7643_v53, %v2185_v32  ;;  %v2409_v10 = vadd.f32 %v7644_v0, %v2387_v12  ;;  %v7648_v32 = vld [vmem:[#allocation62_spill] sm:$0xff]  ;;  %v7649_v59 = vld [vmem:[#allocation63_spill] sm:$0xff]  ;;  %s3866_s24 = sld [smem:[#allocation7 + $0x2a]] }
 0x558   : > { %v2223_v20 = vpop.permute.xlu1 %2222  ;;  %v2424_v51 = vpop.permute.xlu0 %2423  ;;  %v2583_v34 = vrot.slane %v2577_v38, 4  ;;  %v7655_v38 = vld [vmem:[#allocation69_spill] sm:$0xff] }
 0x559   : > { %v2227_v55 = vadd.f32 %v2223_v20, %v2207_v37  ;;  %v2429_v11 = vadd.f32 %v2424_v51, %v2409_v10  ;;  %v2566_v37 = vrot.slane %v2560_v44, 4  ;;  %v2582_v10 = vrot.slane %v2576_v27, 4 }
 0x55b   : > { %3410 = vrot.lane.b32.xlu1 %v3407_v2, %s4131_s21  ;;  %v2249_v49 = vadd.f32 %v7645_v18, %v2227_v55  ;;  %v2451_v3 = vadd.f32 %v7646_v30, %v2429_v11  ;;  %v2568_v51 = vsel %vm735_vm5, %v2566_v37, %v2567_v54  ;;  %v7650_v55 = vld [vmem:[#allocation64_spill] sm:$0xff]  ;;  %s3867_s21 = sld [smem:[#allocation7 + $0x5b]] }
 0x55c   : > { %v2265_v14 = vpop.permute.xlu1 %2264  ;;  %v2466_v61 = vpop.permute.xlu0 %2465 }
 0x55d   : > { %v2269_v16 = vadd.f32 %v2265_v14, %v2249_v49  ;;  %v2471_v48 = vadd.f32 %v2466_v61, %v2451_v3  ;;  %v2584_v49 = vsel %vm735_vm5, %v2582_v10, %v2583_v34  ;;  %v7652_v61 = vld [vmem:[#allocation65_spill] sm:$0xff]  ;;  %v7656_v10 = vld [vmem:[#allocation71_spill] sm:$0xff] }
 0x55f   : > { %v2288_v58 = vadd.f32 %v2284_v36, %v2269_v16  ;;  %v2493_v5 = vadd.f32 %v7647_v45, %v2471_v48 }
 0x560   : > { %v7150_v35 = vpop.permute.xlu1 %3264  ;;  %v2508_v13 = vpop.permute.xlu0 %2507 }
 0x561   : > { %v2513_v23 = vadd.f32 %v2508_v13, %v2493_v5  ;;  %v2304_v31 = vadd.f32 %v2300_v26, %v2288_v58  ;;  %v7653_v58 = vld [vmem:[#allocation68_spill] sm:$0xff]  ;;  %v7654_v5 = vld [vmem:[#allocation67_spill] sm:$0xff] }
 0x563   : > { %v2326_v12 = vadd.f32 %v7648_v32, %v2304_v31  ;;  %v2535_v41 = vadd.f32 %v7649_v59, %v2513_v23 }
 0x564   : > { %v2342_v53 = vpop.permute.xlu1 %2341  ;;  %v2550_v0 = vpop.permute.xlu0 %2549 }
 0x565   : > { %v2346_v20 = vadd.f32 %v2342_v53, %v2326_v12  ;;  %v2555_v39 = vadd.f32 %v2550_v0, %v2535_v41  ;;  %v2562_v41 = vmul.f32 %v2559_v15, %v5413_v21  ;;  %v2578_v53 = vmul.f32 %v2575_v40, %v6108_v47  ;;  %v7658_v40 = vld [vmem:[#allocation72_spill] sm:$0xff] }
 0x567   : > { %v2573_v25 = vadd.f32 %v2568_v51, %v2555_v39  ;;  %v2368_v11 = vadd.f32 %v7650_v55, %v2346_v20  ;;  %v7657_v39 = vld [vmem:[#allocation70_spill] sm:$0xff] }
 0x568   : > { %v2384_v2 = vpop.permute.xlu1 %2383  ;;  %v7161_v18 = vpop.permute.xlu0 %3304 }
 0x569   : > { %v2388_v30 = vadd.f32 %v2384_v2, %v2368_v11  ;;  %v2589_v3 = vadd.f32 %v2584_v49, %v2573_v25  ;;  %v2569_v25 = vrot.slane %v2562_v41, 4  ;;  %v2585_v2 = vrot.slane %v2578_v53, 4 }
 0x56b   : > { %v2410_v14 = vadd.f32 %v7651_v52, %v2388_v30  ;;  %v2611_v60 = vadd.f32 %v7652_v61, %v2589_v3  ;;  %v2845_v30 = vstv %s3852_s10  ;;  %v2570_v3 = vsel %vm735_vm5, %v2567_v54, %v2569_v25 }
 0x56c   : > { %v2426_v16 = vpop.permute.xlu1 %2425  ;;  %v2626_v48 = vpop.permute.xlu0 %2625  ;;  %v7176_v52 = vmul.f32 %v2845_v30, %v5282_v63  ;;  %v2861_v61 = vstv %s3853_s18 }
 0x56d   : > { %v2430_v36 = vadd.f32 %v2426_v16, %v2410_v14  ;;  %v2631_v19 = vadd.f32 %v2626_v48, %v2611_v60  ;;  %v2586_v48 = vsel %vm735_vm5, %v2583_v34, %v2585_v2 }
 0x56e   : > { %v2853_v54 = vrot.slane %v7176_v52, 5 }
 0x56f   : > { %v2452_v45 = vadd.f32 %v7653_v58, %v2430_v36  ;;  %v2653_v13 = vadd.f32 %v7654_v5, %v2631_v19  ;;  %v2846_v36 = vmul.f32 %v2845_v30, %v5247_v50  ;;  %v2862_v19 = vmul.f32 %v2861_v61, %v5290_v4 }
 0x570   : > { %v2468_v26 = vpop.permute.xlu1 %2467  ;;  %v2668_v44 = vpop.permute.xlu0 %2667  ;;  %v2863_v5 = vmul.f32 %v2861_v61, %v5327_v1 }
 0x571   : > { %v2472_v27 = vadd.f32 %v2468_v26, %v2452_v45  ;;  %v2673_v23 = vadd.f32 %v2668_v44, %v2653_v13 }
 0x573   : > { %v2494_v31 = vadd.f32 %v6499_v8, %v2472_v27  ;;  %v2695_v32 = vadd.f32 %v7655_v38, %v2673_v23  ;;  %v2852_v27 = vrot.slane %v2846_v36, 5  ;;  %v2848_v36 = vmul.f32 %v2845_v30, %v5413_v21 }
 0x574   : > { %v2510_v12 = vpop.permute.xlu1 %2509  ;;  %v2710_v59 = vpop.permute.xlu0 %2709 }
 0x575   : > { %v2514_v37 = vadd.f32 %v2510_v12, %v2494_v31  ;;  %v2715_v0 = vadd.f32 %v2710_v59, %v2695_v32  ;;  %v2868_v31 = vrot.slane %v2862_v19, 5  ;;  %v2854_v32 = vsel %vm1281_vm12, %v2852_v27, %v2853_v54 }
 0x576   : > { %v2869_v12 = vrot.slane %v2863_v5, 5  ;;  %v2864_v19 = vmul.f32 %v2861_v61, %v6108_v47 }
 0x577   : > { %v2536_v20 = vadd.f32 %v7656_v10, %v2514_v37  ;;  %v2737_v51 = vadd.f32 %v7657_v39, %v2715_v0 }
 0x578   : > { %v2552_v55 = vpop.permute.xlu1 %2551  ;;  %v2752_v11 = vpop.permute.xlu0 %2751  ;;  %v2870_v0 = vsel %vm1281_vm12, %v2868_v31, %v2869_v12  ;;  %v2871_v31 = vrot.slane %v2864_v19, 5 }
 0x579   : > { %v2556_v8 = vadd.f32 %v2552_v55, %v2536_v20  ;;  %v2757_v49 = vadd.f32 %v2752_v11, %v2737_v51  ;;  %v7659_v20 = vld [vmem:[#allocation73_spill] sm:$0xff] }
 0x57b   : > { %v2574_v15 = vadd.f32 %v2570_v3, %v2556_v8  ;;  %v2779_v14 = vadd.f32 %v7658_v40, %v2757_v49  ;;  %v7660_v8 = vld [vmem:[#allocation74_spill] sm:$0xff] }
 0x57c   : > { %v7179_v60 = vpop.permute.xlu1 %3306  ;;  %v2794_v16 = vpop.permute.xlu0 %2793 }
 0x57d   : > { %v2799_v58 = vadd.f32 %v2794_v16, %v2779_v14  ;;  %v2590_v45 = vadd.f32 %v2586_v48, %v2574_v15  ;;  %v7661_v14 = vld [vmem:[#allocation75_spill] sm:$0xff] }
 0x57f   : > { %v2612_v13 = vadd.f32 %v6551_v28, %v2590_v45  ;;  %v2821_v26 = vadd.f32 %v6553_v33, %v2799_v58  ;;  %v7662_v45 = vld [vmem:[#allocation77_spill] sm:$0xff] }
 0x580   : > { %v2628_v44 = vpop.permute.xlu1 %2627  ;;  %v2836_v23 = vpop.permute.xlu0 %2835 }
 0x581   : > { %v2632_v38 = vadd.f32 %v2628_v44, %v2612_v13  ;;  %v2841_v34 = vadd.f32 %v2836_v23, %v2821_v26  ;;  %v7663_v13 = vld [vmem:[#allocation76_spill] sm:$0xff]  ;;  %v2855_v44 = vrot.slane %v2848_v36, 5 }
 0x583   : > { %v2859_v59 = vadd.f32 %v2854_v32, %v2841_v34  ;;  %v2654_v41 = vadd.f32 %v6576_v57, %v2632_v38  ;;  %v3131_v34 = vstv %s3866_s24  ;;  %v2856_v32 = vsel %vm1281_vm12, %v2853_v54, %v2855_v44  ;;  %v7666_v44 = vld [vmem:[#allocation80_spill] sm:$0xff] }
 0x584   : > { %v2670_v53 = vpop.permute.xlu1 %2669  ;;  %v7190_v37 = vpop.permute.xlu0 %3346 }
 0x585   : > { %v2674_v28 = vadd.f32 %v2670_v53, %v2654_v41  ;;  %v2875_v10 = vadd.f32 %v2870_v0, %v2859_v59  ;;  %v3133_v59 = vmul.f32 %v3131_v34, %v5282_v63  ;;  %v7664_v41 = vld [vmem:[#allocation78_spill] sm:$0xff]  ;;  %v3148_v53 = vstv %s3867_s21 }
 0x586   : > { %v3150_v54 = vmul.f32 %v3148_v53, %v5327_v1 }
 0x587   : > { %v2696_v33 = vadd.f32 %v6602_v46, %v2674_v28  ;;  %v2897_v39 = vadd.f32 %v7659_v20, %v2875_v10  ;;  %v2872_v10 = vsel %vm1281_vm12, %v2869_v12, %v2871_v31  ;;  %v3149_v20 = vmul.f32 %v3148_v53, %v5290_v4 }
 0x588   : > { %v2712_v51 = vpop.permute.xlu1 %2711  ;;  %v2912_v25 = vpop.permute.xlu0 %2911 }
 0x589   : > { %v2716_v55 = vadd.f32 %v2712_v51, %v2696_v33  ;;  %v2917_v11 = vadd.f32 %v2912_v25, %v2897_v39  ;;  %v3132_v33 = vmul.f32 %v3131_v34, %v5247_v50  ;;  %v3140_v25 = vrot.slane %v3133_v59, 6 }
 0x58a   : > { %v3156_v50 = vrot.slane %v3150_v54, 6 }
 0x58b   : > { %v2738_v2 = vadd.f32 %v6624_v9, %v2716_v55  ;;  %v2939_v49 = vadd.f32 %v7660_v8, %v2917_v11 }
 0x58c   : > { %v2754_v57 = vpop.permute.xlu1 %2753  ;;  %v2954_v3 = vpop.permute.xlu0 %2953 }
 0x58d   : > { %v2758_v52 = vadd.f32 %v2754_v57, %v2738_v2  ;;  %v2959_v15 = vadd.f32 %v2954_v3, %v2939_v49  ;;  %v3139_v2 = vrot.slane %v3132_v33, 6  ;;  %v3155_v49 = vrot.slane %v3149_v20, 6 }
 0x58f   : > { %v2780_v40 = vadd.f32 %v6648_v22, %v2758_v52  ;;  %v2981_v16 = vadd.f32 %v7661_v14, %v2959_v15  ;;  %v3141_v12 = vsel %vm3138_vm7, %v3139_v2, %v3140_v25  ;;  %v3157_v1 = vsel %vm3138_vm7, %v3155_v49, %v3156_v50 }
 0x590   : > { %v2796_v46 = vpop.permute.xlu1 %2795  ;;  %v2996_v48 = vpop.permute.xlu0 %2995 }
 0x591   : > { %v2800_v58 = vadd.f32 %v2796_v46, %v2780_v40  ;;  %v3001_v9 = vadd.f32 %v2996_v48, %v2981_v16 }
 0x593   : > { %v2822_v5 = vadd.f32 %v7662_v45, %v2800_v58  ;;  %v3023_v26 = vadd.f32 %v7663_v13, %v3001_v9  ;;  %v7665_v58 = vld [vmem:[#allocation79_spill] sm:$0xff] }
 0x594   : > { %v2838_v27 = vpop.permute.xlu1 %2837  ;;  %v3038_v23 = vpop.permute.xlu0 %3037 }
 0x595   : > { %v2842_v22 = vadd.f32 %v2838_v27, %v2822_v5  ;;  %v3043_v38 = vadd.f32 %v3038_v23, %v3023_v26 }
 0x597   : > { %v2860_v30 = vadd.f32 %v2856_v32, %v2842_v22  ;;  %v3065_v61 = vadd.f32 %v7664_v41, %v3043_v38  ;;  %v3151_v22 = vmul.f32 %v3148_v53, %v6108_v47 }
 0x598   : > { %v7206_v0 = vpop.permute.xlu1 %3348  ;;  %v3080_v28 = vpop.permute.xlu0 %3079 }
 0x599   : > { %v3085_v39 = vadd.f32 %v3080_v28, %v3065_v61  ;;  %v2876_v51 = vadd.f32 %v2872_v10, %v2860_v30  ;;  %v3158_v28 = vrot.slane %v3151_v22, 6 }
 0x59b   : > { %v2898_v63 = vadd.f32 %v6696_v24, %v2876_v51  ;;  %v3107_v55 = vadd.f32 %v6698_v6, %v3085_v39  ;;  %v3159_v47 = vsel %vm3138_vm7, %v3156_v50, %v3158_v28 }
 0x59c   : > { %v3122_v8 = vpop.permute.xlu0 %3121 }
 0x59d   : > { %v2914_v11 = vpop.permute.xlu1 %2913  ;;  %v3127_v3 = vadd.f32 %v3122_v8, %v3107_v55 }
 0x59e   : > { %v2918_v57 = vadd.f32 %v2914_v11, %v2898_v63 }
 0x59f   : > { %v3146_v52 = vadd.f32 %v3141_v12, %v3127_v3 }
 0x5a0   : > { %v2940_v4 = vadd.f32 %v6724_v62, %v2918_v57  ;;  %v3389_v40 = vpop.permute.xlu0 %3388 }
 0x5a1   : > { %v2956_v15 = vpop.permute.xlu1 %2955  ;;  %v3162_v24 = vadd.f32 %v3157_v1, %v3146_v52 }
 0x5a2   : > { %v2960_v14 = vadd.f32 %v2956_v15, %v2940_v4 }
 0x5a3   : > { %v3184_v16 = vadd.f32 %v6726_v56, %v3162_v24  ;;  %v3134_v56 = vmul.f32 %v3131_v34, %v5413_v21 }
 0x5a4   : > { %v2982_v6 = vadd.f32 %v6754_v42, %v2960_v14  ;;  %v3199_v48 = vpop.permute.xlu0 %3198 }
 0x5a5   : > { %v2998_v46 = vpop.permute.xlu1 %2997  ;;  %v3204_v19 = vadd.f32 %v3199_v48, %v3184_v16  ;;  %v3142_v30 = vrot.slane %v3134_v56, 6 }
 0x5a6   : > { %v3002_v36 = vadd.f32 %v2998_v46, %v2982_v6 }
 0x5a7   : > { %v3226_v45 = vadd.f32 %v6949_v43, %v3204_v19  ;;  %v7668_v19 = vld [vmem:[#allocation22_spill] sm:$0xff] }
 0x5a8   : > { %v3024_v9 = vadd.f32 %v7665_v58, %v3002_v36  ;;  %v3241_v62 = vpop.permute.xlu0 %3240 }
 0x5a9   : > { %v3040_v5 = vpop.permute.xlu1 %3039  ;;  %v3246_v26 = vadd.f32 %v3241_v62, %v3226_v45 }
 0x5aa   : > { %v3044_v13 = vadd.f32 %v3040_v5, %v3024_v9  ;;  %v7669_v9 = vld [vmem:[#allocation21_spill] sm:$0xff] }
 0x5ab   : > { %v3268_v23 = vadd.f32 %v7108_v29, %v3246_v26  ;;  %v3143_v29 = vsel %vm3138_vm7, %v3140_v25, %v3142_v30  ;;  %v3463_v62 = vsub.s32 3, %v7669_v9  ;;  %v3496_v56 = vsub.s32 6, %v7669_v9 }
 0x5ac   : > { %v3066_v27 = vadd.f32 %v7666_v44, %v3044_v13  ;;  %v3283_v42 = vpop.permute.xlu0 %3282 }
 0x5ad   : > { %v3082_v31 = vpop.permute.xlu1 %3081  ;;  %v3288_v32 = vadd.f32 %v3283_v42, %v3268_v23 }
 0x5ae   : > { %v3086_v38 = vadd.f32 %v3082_v31, %v3066_v27  ;;  %v3474_v27 = vsub.s32 4, %v7669_v9  ;;  %v3485_v31 = vsub.s32 5, %v7669_v9 }
 0x5af   : > { %v3310_v43 = vadd.f32 %v7161_v18, %v3288_v32 }
 0x5b0   : > { %v3108_v59 = vadd.f32 %v6852_v17, %v3086_v38  ;;  %v3325_v61 = vpop.permute.xlu0 %3324  ;;  %v7667_v17 = vld [vmem:[#allocation81_spill] sm:$0xff]  ;;  %v3507_v38 = vsub.s32 7, %v7669_v9 }
 0x5b1   : > { %v3124_v41 = vpop.permute.xlu1 %3123  ;;  %v3330_v33 = vadd.f32 %v3325_v61, %v3310_v43 }
 0x5b2   : > { %v3128_v10 = vadd.f32 %v3124_v41, %v3108_v59 }
 0x5b3   : > { %v3352_v39 = vadd.f32 %v7190_v37, %v3330_v33 }
 0x5b4   : > { %v3147_v20 = vadd.f32 %v3143_v29, %v3128_v10  ;;  %v3367_v34 = vpop.permute.xlu0 %3366 }
 0x5b5   : > { %v3391_v21 = vpop.permute.xlu1 %3390  ;;  %v3372_v53 = vadd.f32 %v3367_v34, %v3352_v39 }
 0x5b6   : > { %v3163_v51 = vadd.f32 %v3159_v47, %v3147_v20  ;;  %v7671_v47 = vld [vmem:[#allocation24_spill] sm:$0xff] }
 0x5b7   : > { %v3394_v18 = vadd.f32 %v3389_v40, %v3372_v53 }
 0x5b8   : > { %v3185_v54 = vadd.f32 %v7667_v17, %v3163_v51  ;;  %v3409_v55 = vpop.permute.xlu0 %3408 }
 0x5b9   : > { %v3201_v63 = vpop.permute.xlu1 %3200  ;;  %v3414_v2 = vadd.f32 %v3409_v55, %v3394_v18 }
 0x5ba   : > { %v3205_v11 = vadd.f32 %v3201_v63, %v3185_v54  ;;  %v7672_v54 = vld [vmem:[#allocation25_spill] sm:$0xff]  ;;  %v7673_v63 = vld [vmem:[#allocation23_spill] sm:$0xff] }
 0x5bb   : > { %v3416_v8 = vsub.f32 0.0, %v3414_v2 }
 0x5bc   : > { %v3227_v49 = vadd.f32 %v7076_v7, %v3205_v11 }
 0x5bd   : > { %v3243_v25 = vpop.permute.xlu1 %3242  ;;  %v3418_v57 = vmul.f32 1.442695, %v3416_v8  ;;  %v7674_v8 = vld [vmem:[#allocation27_spill] sm:$0xff] }
 0x5be   : > { %v3247_v3 = vadd.f32 %v3243_v25, %v3227_v49  ;;  %v7675_v25 = vld [vmem:[#allocation28_spill] sm:$0xff] }
 0x5bf   : > { %3998 = vpow2.f32 %v3418_v57 }
 0x5c0   : > { %v3269_v37 = vadd.f32 %v7150_v35, %v3247_v3 }
 0x5c1   : > { %v3285_v12 = vpop.permute.xlu1 %3284 }
 0x5c2   : > { %v3289_v50 = vadd.f32 %v3285_v12, %v3269_v37  ;;  %v7676_v12 = vld [vmem:[#allocation13_spill] sm:$0xff] }
 0x5c4   : > { %v3311_v52 = vadd.f32 %v7179_v60, %v3289_v50  ;;  %v3441_v60 = vsub.s32 1, %v7669_v9 }
 0x5c5   : > { %v3327_v4 = vpop.permute.xlu1 %3326 }
 0x5c6   : > { %v3331_v15 = vadd.f32 %v3327_v4, %v3311_v52  ;;  %v7677_v52 = vld [vmem:[#allocation12_spill] sm:$0xff] }
 0x5c8   : > { %v3353_v40 = vadd.f32 %v7206_v0, %v3331_v15  ;;  %v3452_v0 = vsub.s32 2, %v7669_v9  ;;  %v7682_v9 = vld [vmem:[#allocation19_spill] sm:$0xff] }
 0x5c9   : > { %v3369_v1 = vpop.permute.xlu1 %3368 }
 0x5ca   : > { %v3373_v14 = vadd.f32 %v3369_v1, %v3353_v40  ;;  %v7678_v1 = vld [vmem:[#allocation15_spill] sm:$0xff] }
 0x5cc   : > { %v3395_v24 = vadd.f32 %v3391_v21, %v3373_v14  ;;  %v3999_v6 = vpop.eup %3998  ;;  %v7670_v21 = vld [vmem:[#allocation26_spill] sm:$0xff] }
 0x5cd   : > { %v3411_v16 = vpop.permute.xlu1 %3410  ;;  %v3422_v7 = vadd.f32 1.0, %v3999_v6 }
 0x5ce   : > { %v3415_v46 = vadd.f32 %v3411_v16, %v3395_v24  ;;  %v7679_v24 = vld [vmem:[#allocation14_spill] sm:$0xff] }
 0x5cf   : > { %4000 = vrcp.f32 %v3422_v7 }
 0x5d0   : > { %v3417_v48 = vsub.f32 0.0, %v3415_v46  ;;  %v7680_v46 = vld [vmem:[#allocation17_spill] sm:$0xff] }
 0x5d2   : > { %v3420_v36 = vmul.f32 1.442695, %v3417_v48 }
 0x5d4   : > { %4002 = vpow2.f32 %v3420_v36  ;;  %v7681_v36 = vld [vmem:[#allocation16_spill] sm:$0xff] }
 0x5dc   : > { %v4001_v35 = vpop.eup %4000 }
 0x5dd   : > { %v3431_v58 = vrot.slane %v4001_v35, %v7668_v19  ;;  %v3442_v45 = vrot.slane %v4001_v35, %v3441_v60  ;;  %v3453_v5 = vrot.slane %v4001_v35, %v3452_v0  ;;  %v3464_v44 = vrot.slane %v4001_v35, %v3463_v62 }
 0x5de   : > { %v3475_v23 = vrot.slane %v4001_v35, %v3474_v27  ;;  %v3486_v42 = vrot.slane %v4001_v35, %v3485_v31  ;;  %v3497_v22 = vrot.slane %v4001_v35, %v3496_v56  ;;  %v3508_v32 = vrot.slane %v4001_v35, %v3507_v38 }
 0x5df   : > { %3437 = vbcast.lane.b32.xlu1 %v3431_v58, 264  ;;  %3433 = vbcast.lane.b32.xlu0 %v3431_v58, 256 }
 0x5e1   : > { %v4003_v13 = vpop.eup %4002 }
 0x5e2   : > { %v3423_v26 = vadd.f32 1.0, %v4003_v13  ;;  %v7684_v13 = vld [vmem:[#allocation29_spill] sm:$0xff] }
 0x5e3   : > { %3448 = vbcast.lane.b32.xlu1 %v3442_v45, 264  ;;  %3444 = vbcast.lane.b32.xlu0 %v3442_v45, 256  ;;  %v7683_v45 = vld [vmem:[#allocation18_spill] sm:$0xff] }
 0x5e4   : > { %4004 = vrcp.f32 %v3423_v26 }
 0x5e7   : > { %3459 = vbcast.lane.b32.xlu1 %v3453_v5, 264  ;;  %3455 = vbcast.lane.b32.xlu0 %v3453_v5, 256 }
 0x5eb   : > { %3470 = vbcast.lane.b32.xlu1 %v3464_v44, 264  ;;  %3466 = vbcast.lane.b32.xlu0 %v3464_v44, 256  ;;  %v7685_v44 = vld [vmem:[#allocation20_spill] sm:$0xff] }
 0x5ef   : > { %3481 = vbcast.lane.b32.xlu1 %v3475_v23, 264  ;;  %3477 = vbcast.lane.b32.xlu0 %v3475_v23, 256 }
 0x5f1   : > { %v4005_v59 = vpop.eup %4004 }
 0x5f2   : > { %v3519_v43 = vrot.slane %v4005_v59, %v7668_v19  ;;  %v3530_v30 = vrot.slane %v4005_v59, %v3441_v60  ;;  %v3541_v41 = vrot.slane %v4005_v59, %v3452_v0  ;;  %v3552_v61 = vrot.slane %v4005_v59, %v3463_v62 }
 0x5f3   : > { %3492 = vbcast.lane.b32.xlu1 %v3486_v42, 264  ;;  %3488 = vbcast.lane.b32.xlu0 %v3486_v42, 256  ;;  %v3563_v28 = vrot.slane %v4005_v59, %v3474_v27  ;;  %v3574_v10 = vrot.slane %v4005_v59, %v3485_v31  ;;  %v3585_v33 = vrot.slane %v4005_v59, %v3496_v56  ;;  %v7686_v42 = vld [vmem:[#allocation30_spill] sm:$0xff] }
 0x5f4   : > { %v3596_v29 = vrot.slane %v4005_v59, %v3507_v38 }
 0x5f7   : > { %3503 = vbcast.lane.b32.xlu1 %v3497_v22, 264  ;;  %3499 = vbcast.lane.b32.xlu0 %v3497_v22, 256  ;;  %v7687_v22 = vld [vmem:[#allocation31_spill] sm:$0xff] }
 0x5fb   : > { %3514 = vbcast.lane.b32.xlu1 %v3508_v32, 264  ;;  %3510 = vbcast.lane.b32.xlu0 %v3508_v32, 256 }
 0x5ff   : > { %3525 = vbcast.lane.b32.xlu1 %v3519_v43, 264  ;;  %3521 = vbcast.lane.b32.xlu0 %v3519_v43, 256  ;;  %v7688_v43 = vld [vmem:[#allocation32_spill] sm:$0xff] }
 0x603   : > { %3536 = vbcast.lane.b32.xlu1 %v3530_v30, 264  ;;  %3532 = vbcast.lane.b32.xlu0 %v3530_v30, 256 }
 0x607   : > { %3547 = vbcast.lane.b32.xlu1 %v3541_v41, 264  ;;  %3543 = vbcast.lane.b32.xlu0 %v3541_v41, 256  ;;  %v7689_v41 = vld [vmem:[#allocation33_spill] sm:$0xff] }
 0x60b   : > { %3558 = vbcast.lane.b32.xlu1 %v3552_v61, 264  ;;  %3554 = vbcast.lane.b32.xlu0 %v3552_v61, 256 }
 0x60f   : > { %3569 = vbcast.lane.b32.xlu1 %v3563_v28, 264  ;;  %3565 = vbcast.lane.b32.xlu0 %v3563_v28, 256 }
 0x613   : > { %3580 = vbcast.lane.b32.xlu1 %v3574_v10, 264  ;;  %3576 = vbcast.lane.b32.xlu0 %v3574_v10, 256 }
 0x617   : > { %3591 = vbcast.lane.b32.xlu1 %v3585_v33, 264  ;;  %3587 = vbcast.lane.b32.xlu0 %v3585_v33, 256  ;;  %v7690_v33 = vld [vmem:[#allocation34_spill] sm:$0xff] }
 0x61b   : > { %3602 = vbcast.lane.b32.xlu1 %v3596_v29, 264  ;;  %3598 = vbcast.lane.b32.xlu0 %v3596_v29, 256 }
 0x651   : > { %v3438_v20 = vpop.permute.xlu1 %3437  ;;  %v3434_v39 = vpop.permute.xlu0 %3433 }
 0x652   : > { %v3605_v34 = vmul.f32 %v3438_v20, %v7670_v21  ;;  %v3604_v53 = vmul.f32 %v3434_v39, %v7671_v47  ;;  %v7691_v20 = vld [vmem:[#allocation35_spill] sm:$0xff]  ;;  %v7692_v47 = vld [vmem:[#allocation36_spill] sm:$0xff] }
 0x654   : > { %3637 = vst.msk [vmem:[%s7248_s12 + $0x8] sm:$0xff] %vm344_vm0, %v3605_v34  ;;  %3636 = vst.msk [vmem:[%s7248_s12] sm:$0xff] %vm344_vm0, %v3604_v53 }
 0x655   : > { %v3449_v51 = vpop.permute.xlu1 %3448  ;;  %v3445_v17 = vpop.permute.xlu0 %3444 }
 0x656   : > { %v3607_v18 = vmul.f32 %v3449_v51, %v7672_v54  ;;  %v3606_v55 = vmul.f32 %v3445_v17, %v7673_v63  ;;  %v7693_v51 = vld [vmem:[#allocation37_spill] sm:$0xff]  ;;  %v7694_v63 = vld [vmem:[#allocation38_spill] sm:$0xff] }
 0x658   : > { %3639 = vst.msk [vmem:[%s7248_s12 + $0x18] sm:$0xff] %vm344_vm0, %v3607_v18  ;;  %3638 = vst.msk [vmem:[%s7248_s12 + $0x10] sm:$0xff] %vm344_vm0, %v3606_v55 }
 0x659   : > { %v3460_v11 = vpop.permute.xlu1 %3459  ;;  %v3456_v2 = vpop.permute.xlu0 %3455 }
 0x65a   : > { %v3609_v49 = vmul.f32 %v3460_v11, %v7674_v8  ;;  %v3608_v57 = vmul.f32 %v3456_v2, %v7675_v25  ;;  %v7695_v11 = vld [vmem:[#allocation39_spill] sm:$0xff]  ;;  %v7696_v25 = vld [vmem:[#allocation40_spill] sm:$0xff] }
 0x65c   : > { %3641 = vst.msk [vmem:[%s7248_s12 + $0x28] sm:$0xff] %vm344_vm0, %v3609_v49  ;;  %3640 = vst.msk [vmem:[%s7248_s12 + $0x20] sm:$0xff] %vm344_vm0, %v3608_v57 }
 0x65d   : > { %v3471_v3 = vpop.permute.xlu1 %3470  ;;  %v3467_v37 = vpop.permute.xlu0 %3466 }
 0x65e   : > { %v3611_v50 = vmul.f32 %v3471_v3, %v7676_v12  ;;  %v3610_v4 = vmul.f32 %v3467_v37, %v7677_v52  ;;  %v7697_v3 = vld [vmem:[#allocation41_spill] sm:$0xff]  ;;  %v7698_v52 = vld [vmem:[#allocation42_spill] sm:$0xff] }
 0x660   : > { %3643 = vst.msk [vmem:[%s7248_s12 + $0x38] sm:$0xff] %vm344_vm0, %v3611_v50  ;;  %3642 = vst.msk [vmem:[%s7248_s12 + $0x30] sm:$0xff] %vm344_vm0, %v3610_v4 }
 0x661   : > { %v3482_v15 = vpop.permute.xlu1 %3481  ;;  %v3478_v40 = vpop.permute.xlu0 %3477 }
 0x662   : > { %v3613_v14 = vmul.f32 %v3482_v15, %v7678_v1  ;;  %v3612_v6 = vmul.f32 %v3478_v40, %v7679_v24  ;;  %v7699_v15 = vld [vmem:[#allocation43_spill] sm:$0xff]  ;;  %v7700_v24 = vld [vmem:[#allocation44_spill] sm:$0xff] }
 0x664   : > { %3645 = vst.msk [vmem:[%s7248_s12 + $0x48] sm:$0xff] %vm344_vm0, %v3613_v14  ;;  %3644 = vst.msk [vmem:[%s7248_s12 + $0x40] sm:$0xff] %vm344_vm0, %v3612_v6 }
 0x665   : > { %v3493_v16 = vpop.permute.xlu1 %3492  ;;  %v3489_v7 = vpop.permute.xlu0 %3488 }
 0x666   : > { %v3615_v48 = vmul.f32 %v3493_v16, %v7680_v46  ;;  %v3614_v35 = vmul.f32 %v3489_v7, %v7681_v36  ;;  %v7701_v16 = vld [vmem:[#allocation45_spill] sm:$0xff] }
 0x668   : > { %3647 = vst.msk [vmem:[%s7248_s12 + $0x58] sm:$0xff] %vm344_vm0, %v3615_v48  ;;  %3646 = vst.msk [vmem:[%s7248_s12 + $0x50] sm:$0xff] %vm344_vm0, %v3614_v35 }
 0x669   : > { %v3504_v19 = vpop.permute.xlu1 %3503  ;;  %v3500_v58 = vpop.permute.xlu0 %3499 }
 0x66a   : > { %v3617_v60 = vmul.f32 %v3504_v19, %v7682_v9  ;;  %v3616_v0 = vmul.f32 %v3500_v58, %v7683_v45 }
 0x66c   : > { %3649 = vst.msk [vmem:[%s7248_s12 + $0x68] sm:$0xff] %vm344_vm0, %v3617_v60  ;;  %3648 = vst.msk [vmem:[%s7248_s12 + $0x60] sm:$0xff] %vm344_vm0, %v3616_v0 }
 0x66d   : > { %v3515_v5 = vpop.permute.xlu1 %3514  ;;  %v3511_v62 = vpop.permute.xlu0 %3510 }
 0x66e   : > { %v3619_v26 = vmul.f32 %v3515_v5, %v7684_v13  ;;  %v3618_v27 = vmul.f32 %v3511_v62, %v7685_v44 }
 0x670   : > { %3651 = vst.msk [vmem:[%s7248_s12 + $0x78] sm:$0xff] %vm344_vm0, %v3619_v26  ;;  %3650 = vst.msk [vmem:[%s7248_s12 + $0x70] sm:$0xff] %vm344_vm0, %v3618_v27 }
 0x671   : > { %v3526_v23 = vpop.permute.xlu1 %3525  ;;  %v3522_v31 = vpop.permute.xlu0 %3521 }
 0x672   : > { %v3621_v56 = vmul.f32 %v3526_v23, %v7686_v42  ;;  %v3620_v38 = vmul.f32 %v3522_v31, %v7687_v22 }
 0x674   : > { %3653 = vst.msk [vmem:[%s7248_s12 + $0x88] sm:$0xff] %vm344_vm0, %v3621_v56  ;;  %3652 = vst.msk [vmem:[%s7248_s12 + $0x80] sm:$0xff] %vm344_vm0, %v3620_v38 }
 0x675   : > { %v3537_v32 = vpop.permute.xlu1 %3536  ;;  %v3533_v59 = vpop.permute.xlu0 %3532 }
 0x676   : > { %v3623_v30 = vmul.f32 %v3537_v32, %v7688_v43  ;;  %v3622_v61 = vmul.f32 %v3533_v59, %v7689_v41 }
 0x678   : > { %3655 = vst.msk [vmem:[%s7248_s12 + $0x98] sm:$0xff] %vm344_vm0, %v3623_v30  ;;  %3654 = vst.msk [vmem:[%s7248_s12 + $0x90] sm:$0xff] %vm344_vm0, %v3622_v61 }
 0x679   : > { %v3548_v28 = vpop.permute.xlu1 %3547  ;;  %v3544_v10 = vpop.permute.xlu0 %3543 }
 0x67a   : > { %v3625_v29 = vmul.f32 %v3548_v28, %v7690_v33  ;;  %v3624_v39 = vmul.f32 %v3544_v10, %v7691_v20 }
 0x67c   : > { %3657 = vst.msk [vmem:[%s7248_s12 + $0xa8] sm:$0xff] %vm344_vm0, %v3625_v29  ;;  %3656 = vst.msk [vmem:[%s7248_s12 + $0xa0] sm:$0xff] %vm344_vm0, %v3624_v39 }
 0x67d   : > { %v3559_v21 = vpop.permute.xlu1 %3558  ;;  %v3555_v34 = vpop.permute.xlu0 %3554 }
 0x67e   : > { %v3627_v53 = vmul.f32 %v3559_v21, %v7692_v47  ;;  %v3626_v17 = vmul.f32 %v3555_v34, %v7693_v51 }
 0x680   : > { %3659 = vst.msk [vmem:[%s7248_s12 + $0xb8] sm:$0xff] %vm344_vm0, %v3627_v53  ;;  %3658 = vst.msk [vmem:[%s7248_s12 + $0xb0] sm:$0xff] %vm344_vm0, %v3626_v17 }
 0x681   : > { %v3570_v54 = vpop.permute.xlu1 %3569  ;;  %v3566_v18 = vpop.permute.xlu0 %3565 }
 0x682   : > { %v3629_v55 = vmul.f32 %v3570_v54, %v7694_v63  ;;  %v3628_v2 = vmul.f32 %v3566_v18, %v7695_v11 }
 0x684   : > { %3661 = vst.msk [vmem:[%s7248_s12 + $0xc8] sm:$0xff] %vm344_vm0, %v3629_v55  ;;  %3660 = vst.msk [vmem:[%s7248_s12 + $0xc0] sm:$0xff] %vm344_vm0, %v3628_v2 }
 0x685   : > { %v3581_v8 = vpop.permute.xlu1 %3580  ;;  %v3577_v49 = vpop.permute.xlu0 %3576 }
 0x686   : > { %v3631_v57 = vmul.f32 %v3581_v8, %v7696_v25  ;;  %v3630_v37 = vmul.f32 %v3577_v49, %v7697_v3 }
 0x688   : > { %3663 = vst.msk [vmem:[%s7248_s12 + $0xd8] sm:$0xff] %vm344_vm0, %v3631_v57  ;;  %3662 = vst.msk [vmem:[%s7248_s12 + $0xd0] sm:$0xff] %vm344_vm0, %v3630_v37 }
 0x689   : > { %v3592_v12 = vpop.permute.xlu1 %3591  ;;  %v3588_v50 = vpop.permute.xlu0 %3587 }
 0x68a   : > { %v3633_v4 = vmul.f32 %v3592_v12, %v7698_v52  ;;  %v3632_v40 = vmul.f32 %v3588_v50, %v7699_v15 }
 0x68c   : > { %3665 = vst.msk [vmem:[%s7248_s12 + $0xe8] sm:$0xff] %vm344_vm0, %v3633_v4  ;;  %3664 = vst.msk [vmem:[%s7248_s12 + $0xe0] sm:$0xff] %vm344_vm0, %v3632_v40 }
 0x68d   : > { %v3603_v1 = vpop.permute.xlu1 %3602  ;;  %v3599_v14 = vpop.permute.xlu0 %3598 }
 0x68e   : > { %v3635_v6 = vmul.f32 %v3603_v1, %v7700_v24  ;;  %v3634_v7 = vmul.f32 %v3599_v14, %v7701_v16 }
 0x690   : > { %3667 = vst.msk [vmem:[%s7248_s12 + $0xf8] sm:$0xff] %vm344_vm0, %v3635_v6  ;;  %3666 = vst.msk [vmem:[%s7248_s12 + $0xf0] sm:$0xff] %vm344_vm0, %v3634_v7 }
 0x691   : > { %4062 = shalt.err (!%p4059_p1)
}
 0x692   : > { %s4063_s13 = scalar_lea.hbm %s7343_s9, 4096  ;;  %s4067_s24 = scalar_lea.hbm %s7401_s7, 8192 }
 0x693   : > { %p4064_p4 = scmp.ne.s32.totalorder %s7343_s9, %s4063_s13  ;;  %p4068_p6 = scmp.lt.s32.totalorder %s7343_s9, %s7401_s7 }
 0x694   : > { %p4069_p13 = scmp.lt.s32.totalorder %s4067_s24, %s4063_s13 }
 0x695   : > { %p4065_p11 = pnand %p4064_p4, %p7702_p0 }
 0x696   : > { %p4070_p3 = por %p4069_p13, %p4068_p6 }
 0x697   : > { %p4066_p5 = pneg %p4065_p11 }
 0x699   : > { %p4071_p12 = pnand %p4070_p3, %p4066_p5 }
 0x69b   : > { %4074 = shalt.err (!%p4071_p12)
}
 0x69c   : > { %s4133_s23 = smov 128   ;;  %s4134_s19 = smov 8  }
 0x69d   : > { %3928 = dma.vmem_to_hbm [thread:$0]  (%p7702_p0), %s7345_s17, 4096, %s7343_s9, %s3669_s6, %s4133_s23, %s4133_s23, %s4134_s19  }
 0x69e PF: > { %s3697_s30 = sand.u32 1, %s4105_s26   ;;  %p7703_p2 = scmp.ne.s32.totalorder %s7493_s15, 0 }
 0x69f   : > { %p7704_p7 = scmp.ge.s32.totalorder %s4117_s29, 2  ;;  %s3698_s5 = scalar_lea.sflag [#allocation5], %s3697_s30 }
 0x6a1   : > { %p3939_p8 = pnand %p7704_p7, %p7703_p2 }
 0x6a3   : > { %p3940_p9 = pneg %p3939_p8 }
 0x6a5   : > { %4100 = dma.done.wait (%p3940_p9), %s3698_s5, 4096  }
 0x6a6   : > { %4102 = vsyncadd (%p3940_p9), %s3698_s5, 4294963200  ;;  %p22_p10 = scmp.ge.s32.totalorder %s4203_s8, 4   ;;  %s7705_s26 = smov %s4109_s27 }
 0x6a7   : > { %s7706_s27 = smov %s4113_s28  ;;  %s7707_s28 = smov %s4215_s11 }
 0x6a8   : > { %s7708_s29 = smov %s4203_s8  ;;  %24 = sbr.rel (!%p22_p10) target bundleno = 9 (0x9), region = 98 }
 0x6ad   :  { %3703 = vsyncpa [#allocation4], 1 }
 0x6ae   :  { %3705 = vsyncpa [#allocation4 + $0x1], 1 }
 0x6af   :  { %3706 = vsyncpa [#allocation5], 1 }
 0x6b0   :  { %3708 = vsyncpa [#allocation5 + $0x1], 1 }
 0x6b1   :  { %3709 = vsyncpa [#allocation6], 1 }
 0x6b2   :  { %3711 = vsyncpa [#allocation6 + $0x1], 1 }

</bundles_post_ra>
